<compile_context>
chip_gen: v7x
topology: tpu7x:2x2x1
jax: 0.10.0
libtpu: 0.0.40
codegen_flags: <defaults>
</compile_context>

<pallas_src>
import jax
import jax.numpy as jnp
import numpy as np
from jax.experimental import pallas as pl
from jax.experimental.pallas import tpu as pltpu

LANE_PAD = 128  # pad every feature dim to one full vreg lane width


def _round_up(a, m):
    return (a + m - 1) // m * m


def _num_tensorcores_per_chip():
    """Best-effort: of v5e/v6e/v7x only v7x has 2 TensorCores per chip."""
    try:
        kind = jax.devices()[0].device_kind.lower()
    except Exception:
        return 1
    return 2 if ("v7" in kind or "7x" in kind) else 1


# --------------------------------------------------------------------------
# One-time parameter packing (hoisted out of the forward path).
# --------------------------------------------------------------------------
def prepare_params(params, *, n_enc_layers, n_dec_layers, input_dim, latent_dim):
    """params: ordered list [(W, b), ...] as enc*, mu, logvar, dec*, out.
    W is (in_features, out_features) (transpose of torch's (out, in)),
    b is (1, out_features) or (out_features,).

    Returns (w_blob bf16 (L,128,128), b_blob f32 (L,1,128)) with
    L = n_enc_layers + 1 (fused mu/logvar head) + n_dec_layers + 1 (out)."""
    mu_off = input_dim
    lv_off = input_dim + latent_dim
    assert lv_off + latent_dim <= LANE_PAD, "packed output does not fit in 128 lanes"
    assert len(params) == n_enc_layers + 2 + n_dec_layers + 1

    def pad_wb(w, b, row_off=0, col_off=0):
        w = np.asarray(w, np.float32)
        b = np.asarray(b, np.float32).reshape(1, -1)
        fi, fo = w.shape
        W = np.zeros((LANE_PAD, LANE_PAD), np.float32)
        B = np.zeros((1, LANE_PAD), np.float32)
        W[row_off:row_off + fi, col_off:col_off + fo] = w
        B[:, col_off:col_off + fo] = b
        return W, B

    w_list, b_list = [], []
    idx = 0

    # ---- encoder: rows 0:fan_in, cols 0:enc_dim -------------------------
    for _ in range(n_enc_layers):
        W, B = pad_wb(*params[idx]); idx += 1
        w_list.append(W); b_list.append(B)

    # ---- fused mu/logvar head: mu cols at mu_off, logvar cols at lv_off --
    w_mu, b_mu = params[idx]; idx += 1
    w_lv, b_lv = params[idx]; idx += 1
    w_mu = np.asarray(w_mu, np.float32); w_lv = np.asarray(w_lv, np.float32)
    enc_dim = w_mu.shape[0]
    Wh = np.zeros((LANE_PAD, LANE_PAD), np.float32)
    Bh = np.zeros((1, LANE_PAD), np.float32)
    Wh[:enc_dim, mu_off:mu_off + latent_dim] = w_mu
    Wh[:enc_dim, lv_off:lv_off + latent_dim] = w_lv
    Bh[:, mu_off:mu_off + latent_dim] = np.asarray(b_mu, np.float32).reshape(1, -1)
    Bh[:, lv_off:lv_off + latent_dim] = np.asarray(b_lv, np.float32).reshape(1, -1)
    w_list.append(Wh); b_list.append(Bh)

    # ---- decoder layer 0: weight rows duplicated at mu lanes (carry mu) ---
    #      and at logvar lanes (carry eps*std); dec1 is linear so the matmul
    #      sums them into dec1(mu + eps*std) = dec1(z).
    w0, b0 = params[idx]; idx += 1
    w0 = np.asarray(w0, np.float32)
    lat, dec_dim0 = w0.shape
    assert lat == latent_dim
    W0 = np.zeros((LANE_PAD, LANE_PAD), np.float32)
    B0 = np.zeros((1, LANE_PAD), np.float32)
    W0[mu_off:mu_off + lat, :dec_dim0] = w0
    W0[lv_off:lv_off + lat, :dec_dim0] = w0
    B0[:, :dec_dim0] = np.asarray(b0, np.float32).reshape(1, -1)
    w_list.append(W0); b_list.append(B0)

    # ---- remaining decoder layers ----------------------------------------
    for _ in range(n_dec_layers - 1):
        W, B = pad_wb(*params[idx]); idx += 1
        w_list.append(W); b_list.append(B)

    # ---- out layer: recon columns at lanes 0:input_dim --------------------
    W, B = pad_wb(*params[idx]); idx += 1
    w_list.append(W); b_list.append(B)

    assert idx == len(params)
    w_blob = jnp.asarray(np.stack(w_list), dtype=jnp.bfloat16)  # (L,128,128)
    b_blob = jnp.asarray(np.stack(b_list), dtype=jnp.float32)   # (L,1,128)
    return w_blob, b_blob


# --------------------------------------------------------------------------
# Kernel
# --------------------------------------------------------------------------
def make_vae_kernel(n_enc_layers, n_dec_layers, input_dim, latent_dim):
    mu_off = input_dim
    lv_off = input_dim + latent_dim

    def kernel(x_ref, w_ref, b_ref, out_ref):
        def dense(h_bf16, li):
            # bf16 x bf16 matmul on the MXU with f32 accumulation.
            y = jnp.dot(h_bf16, w_ref[li], preferred_element_type=jnp.float32)
            return y + b_ref[li]                       # (1,128) bias broadcast

        li = 0
        xin = x_ref[...]                               # (tile,128) bf16
        # lanes 0:input_dim hold x, lanes lv_off:lv_off+latent hold eps.

        # ------------------------- encoder -------------------------
        h = xin
        for _ in range(n_enc_layers):
            h = jnp.maximum(dense(h, li), 0.0).astype(jnp.bfloat16)
            li += 1

        # --------------- fused mu / logvar head (f32) ---------------
        head = dense(h, li); li += 1                   # mu @ mu lanes, logvar @ lv lanes

        # ---------------------- reparameterize ----------------------
        # std = exp(0.5*logvar) -> EUP; mul/add/select -> VPU (free under MXU).
        lane = jax.lax.broadcasted_iota(jnp.int32, head.shape, 1)
        is_mu = (lane >= mu_off) & (lane < mu_off + latent_dim)
        is_lv = (lane >= lv_off) & (lane < lv_off + latent_dim)
        eps = xin.astype(jnp.float32)                  # eps parked at lv lanes
        noise = jnp.where(is_lv, eps * jnp.exp(0.5 * head), 0.0)
        # z components: mu at mu lanes, eps*std at lv lanes; the duplicated
        # first decoder weight rows sum them into dec1(z).
        z_vec = (jnp.where(is_mu, head, 0.0) + noise).astype(jnp.bfloat16)

        # ------------------------- decoder -------------------------
        hd = z_vec
        for _ in range(n_dec_layers):
            hd = jnp.maximum(dense(hd, li), 0.0).astype(jnp.bfloat16)
            li += 1
        recon = dense(hd, li); li += 1                 # nonzero only at lanes 0:input_dim

        # Single lane-dense 128-wide store: recon | mu | logvar in disjoint lanes.
        out_ref[...] = recon + head

    return kernel


# --------------------------------------------------------------------------
# Forward wrapper
# --------------------------------------------------------------------------
def vae_mlp_forward(x, eps, w_blob, b_blob, *, n_enc_layers, n_dec_layers,
                    input_dim, latent_dim, batch_tile=None):
    """x: any shape with trailing dims flattening to input_dim.
    eps: (b_flat, latent_dim) ~ N(0,1).  w_blob/b_blob from prepare_params."""
    mu_off = input_dim
    lv_off = input_dim + latent_dim

    x2 = x.reshape(-1, input_dim)
    b_flat = x2.shape[0]

    # Grid shape matched to TensorCore count: 1 step on v5e/v6e, 2 on v7x.
    if batch_tile is None:
        ntc = _num_tensorcores_per_chip()
        batch_tile = max(8, min(1024, _round_up(pl.cdiv(b_flat, ntc), 8)))
    b_pad = _round_up(b_flat, batch_tile)

    # Pack x (lanes 0:input_dim) and eps (lanes lv_off:lv_off+latent) into one
    # bf16 lane-dense input; the zero encoder weight rows never read eps lanes.
    x_pad = jnp.zeros((b_pad, LANE_PAD), jnp.float32)
    x_pad = x_pad.at[:b_flat, :input_dim].set(x2.astype(jnp.float32))
    x_pad = x_pad.at[:b_flat, lv_off:lv_off + latent_dim].set(eps.astype(jnp.float32))
    x_pad = x_pad.astype(jnp.bfloat16)

    n_layers = w_blob.shape[0]
    kernel = make_vae_kernel(n_enc_layers, n_dec_layers, input_dim, latent_dim)

    row_spec = pl.BlockSpec((batch_tile, LANE_PAD), lambda i: (i, 0))
    in_specs = [
        row_spec,                                                        # packed x/eps
        pl.BlockSpec((n_layers, LANE_PAD, LANE_PAD), lambda i: (0, 0, 0)),  # weight blob
        pl.BlockSpec((n_layers, 1, LANE_PAD), lambda i: (0, 0, 0)),         # bias blob
    ]
    out_specs = pl.BlockSpec((batch_tile, LANE_PAD), lambda i: (i, 0))
    out_shape = jax.ShapeDtypeStruct((b_pad, LANE_PAD), jnp.float32)

    packed = pl.pallas_call(
        kernel,
        grid=(b_pad // batch_tile,),
        in_specs=in_specs,
        out_specs=out_specs,
        out_shape=out_shape,
        compiler_params=pltpu.CompilerParams(
            dimension_semantics=("parallel",),
            # Actual footprint < 1 MiB; keep the scoped-VMEM request modest so
            # it never constrains surrounding fusions (matters first on v5e).
            vmem_limit_bytes=8 * 1024 * 1024,
        ),
    )(x_pad, w_blob, b_blob)

    # Strip batch padding and split the packed lanes outside the kernel.
    recon = packed[:b_flat, :input_dim]
    mu = packed[:b_flat, mu_off:mu_off + latent_dim]
    logvar = packed[:b_flat, lv_off:lv_off + latent_dim]
    return recon, mu, logvar


# ----------------------- plain-JAX (f32) reference -----------------------
def ref_forward(x, eps, params, n_enc_layers, n_dec_layers, input_dim):
    h = x.reshape(-1, input_dim).astype(jnp.float32)
    idx = 0
    for _ in range(n_enc_layers):
        w, b = params[idx]; idx += 1
        h = jnp.maximum(h @ w + b, 0.0)
    mu = h @ params[idx][0] + params[idx][1]; idx += 1
    lv = h @ params[idx][0] + params[idx][1]; idx += 1
    z = mu + eps * jnp.exp(0.5 * lv)
    for _ in range(n_dec_layers):
        w, b = params[idx]; idx += 1
        z = jnp.maximum(z @ w + b, 0.0)
    recon = z @ params[idx][0] + params[idx][1]
    return recon, mu, lv


def init_linear(key, fan_in, fan_out):
    """Deterministic init mimicking nn.Linear's U(-1/sqrt(fan_in), +...)."""
    kw, kb = jax.random.split(key)
    bound = 1.0 / np.sqrt(fan_in)
    w = jax.random.uniform(kw, (fan_in, fan_out), jnp.float32, -bound, bound)
    b = jax.random.uniform(kb, (1, fan_out), jnp.float32, -bound, bound)
    return w, b


if __name__ == "__main__":
    # Module hyperparameters (small, consistent with the forward pass).
    input_dim, n_enc_layers, enc_dim = 16, 2, 32
    latent_dim, n_dec_layers, dec_dim = 8, 2, 32

    key = jax.random.PRNGKey(0)
    keys = jax.random.split(key, 16)
    k_iter = iter(keys)

    # Parameters in forward order: enc layers, mu, logvar, dec layers, out.
    params = []
    params.append(init_linear(next(k_iter), input_dim, enc_dim))
    for _ in range(n_enc_layers - 1):
        params.append(init_linear(next(k_iter), enc_dim, enc_dim))
    params.append(init_linear(next(k_iter), enc_dim, latent_dim))   # mu
    params.append(init_linear(next(k_iter), enc_dim, latent_dim))   # logvar
    params.append(init_linear(next(k_iter), latent_dim, dec_dim))
    for _ in range(n_dec_layers - 1):
        params.append(init_linear(next(k_iter), dec_dim, dec_dim))
    params.append(init_linear(next(k_iter), dec_dim, input_dim))    # out

    # One-time packing of the padded weight/bias blobs (hoisted out of forward).
    w_blob, b_blob = prepare_params(
        params, n_enc_layers=n_enc_layers, n_dec_layers=n_dec_layers,
        input_dim=input_dim, latent_dim=latent_dim)

    # x.view(-1, 16) gives 512 rows.
    x = jax.random.normal(next(k_iter), (16, 32, input_dim), jnp.float32)
    b_flat = x.size // input_dim
    eps = jax.random.normal(next(k_iter), (b_flat, latent_dim), jnp.float32)

    recon, mu, logvar = vae_mlp_forward(
        x, eps, w_blob, b_blob,
        n_enc_layers=n_enc_layers, n_dec_layers=n_dec_layers,
        input_dim=input_dim, latent_dim=latent_dim)
    jax.block_until_ready((recon, mu, logvar))

    # The kernel carries eps in bf16 (folded into the packed input); feed the
    # identically-rounded noise to the f32 reference so only matmul precision
    # differs.
    eps_bf = eps.astype(jnp.bfloat16).astype(jnp.float32)
    r_ref, mu_ref, lv_ref = ref_forward(
        x, eps_bf, params, n_enc_layers, n_dec_layers, input_dim)

    def _check(name, got, want):
        got = np.asarray(got)
        want = np.asarray(want)
        # bf16 matmuls (f32 accumulation): moderate elementwise tolerance plus
        # a tight aggregate relative-error check.
        assert np.allclose(got, want, rtol=3e-2, atol=3e-2), name
        rel = np.linalg.norm(got - want) / (np.linalg.norm(want) + 1e-12)
        assert rel < 2e-2, (name, float(rel))

    _check("recon", recon, r_ref)
    _check("mu", mu, mu_ref)
    _check("logvar", logvar, lv_ref)

    print("KERNEL_OK")
</pallas_src>

<mosaic_0001>
module attributes {stable_mosaic.version = 11 : i64} {
  func.func @kernel(%arg0: i32, %arg1: memref<512x128xbf16, #tpu.memory_space<vmem>>, %arg2: memref<6x128x128xbf16, #tpu.memory_space<vmem>>, %arg3: memref<6x1x128xf32, #tpu.memory_space<vmem>>, %arg4: memref<512x128xf32, #tpu.memory_space<vmem>>) attributes {dimension_semantics = [#tpu.dimension_semantics<parallel>], iteration_bounds = array<i64: 1>, scalar_prefetch = 0 : i64, scratch_operands = 0 : i64, tpu.core_type = #tpu.core_type<tc>, window_params = [{transform_indices = @transform_0, window_bounds = array<i64: 512, 128>}, {pipeline_mode = #tpu.pipeline_mode<synchronous>, transform_indices = @transform_1, window_bounds = array<i64: 6, 128, 128>}, {pipeline_mode = #tpu.pipeline_mode<synchronous>, transform_indices = @transform_2, window_bounds = array<i64: 6, 1, 128>}, {transform_indices = @transform_3, window_bounds = array<i64: 512, 128>}]} {
    %c0 = arith.constant 0 : index
    %c0_0 = arith.constant 0 : index
    %0 = vector.load %arg1[%c0, %c0_0] : memref<512x128xbf16, #tpu.memory_space<vmem>>, vector<512x128xbf16>
    %c0_1 = arith.constant 0 : index
    %c0_2 = arith.constant 0 : index
    %c0_3 = arith.constant 0 : index
    %1 = vector.load %arg2[%c0_1, %c0_2, %c0_3] : memref<6x128x128xbf16, #tpu.memory_space<vmem>>, vector<1x128x128xbf16>
    %2 = vector.shape_cast %1 : vector<1x128x128xbf16> to vector<128x128xbf16>
    %cst = arith.constant dense<0.000000e+00> : vector<512x128xf32>
    %3 = tpu.matmul %0, %2, %cst {dimension_numbers = #tpu.dot_dimension_numbers<[1], [0], [0], [1], [0, 0, 1, 1], [], []>} : vector<512x128xbf16>, vector<128x128xbf16>, vector<512x128xf32> -> vector<512x128xf32>
    %c0_4 = arith.constant 0 : index
    %c0_5 = arith.constant 0 : index
    %c0_6 = arith.constant 0 : index
    %4 = vector.load %arg3[%c0_4, %c0_5, %c0_6] : memref<6x1x128xf32, #tpu.memory_space<vmem>>, vector<1x1x128xf32>
    %5 = vector.shape_cast %4 : vector<1x1x128xf32> to vector<1x128xf32>
    %6 = vector.broadcast %5 : vector<1x128xf32> to vector<512x128xf32>
    %7 = arith.addf %3, %6 : vector<512x128xf32>
    %cst_7 = arith.constant 0.000000e+00 : f32
    %8 = vector.broadcast %cst_7 : f32 to vector<512x128xf32>
    %9 = arith.maximumf %7, %8 : vector<512x128xf32>
    %10 = arith.truncf %9 : vector<512x128xf32> to vector<512x128xbf16>
    %c1 = arith.constant 1 : index
    %c0_8 = arith.constant 0 : index
    %c0_9 = arith.constant 0 : index
    %11 = vector.load %arg2[%c1, %c0_8, %c0_9] : memref<6x128x128xbf16, #tpu.memory_space<vmem>>, vector<1x128x128xbf16>
    %12 = vector.shape_cast %11 : vector<1x128x128xbf16> to vector<128x128xbf16>
    %cst_10 = arith.constant dense<0.000000e+00> : vector<512x128xf32>
    %13 = tpu.matmul %10, %12, %cst_10 {dimension_numbers = #tpu.dot_dimension_numbers<[1], [0], [0], [1], [0, 0, 1, 1], [], []>} : vector<512x128xbf16>, vector<128x128xbf16>, vector<512x128xf32> -> vector<512x128xf32>
    %c1_11 = arith.constant 1 : index
    %c0_12 = arith.constant 0 : index
    %c0_13 = arith.constant 0 : index
    %14 = vector.load %arg3[%c1_11, %c0_12, %c0_13] : memref<6x1x128xf32, #tpu.memory_space<vmem>>, vector<1x1x128xf32>
    %15 = vector.shape_cast %14 : vector<1x1x128xf32> to vector<1x128xf32>
    %16 = vector.broadcast %15 : vector<1x128xf32> to vector<512x128xf32>
    %17 = arith.addf %13, %16 : vector<512x128xf32>
    %cst_14 = arith.constant 0.000000e+00 : f32
    %18 = vector.broadcast %cst_14 : f32 to vector<512x128xf32>
    %19 = arith.maximumf %17, %18 : vector<512x128xf32>
    %20 = arith.truncf %19 : vector<512x128xf32> to vector<512x128xbf16>
    %c2 = arith.constant 2 : index
    %c0_15 = arith.constant 0 : index
    %c0_16 = arith.constant 0 : index
    %21 = vector.load %arg2[%c2, %c0_15, %c0_16] : memref<6x128x128xbf16, #tpu.memory_space<vmem>>, vector<1x128x128xbf16>
    %22 = vector.shape_cast %21 : vector<1x128x128xbf16> to vector<128x128xbf16>
    %cst_17 = arith.constant dense<0.000000e+00> : vector<512x128xf32>
    %23 = tpu.matmul %20, %22, %cst_17 {dimension_numbers = #tpu.dot_dimension_numbers<[1], [0], [0], [1], [0, 0, 1, 1], [], []>} : vector<512x128xbf16>, vector<128x128xbf16>, vector<512x128xf32> -> vector<512x128xf32>
    %c2_18 = arith.constant 2 : index
    %c0_19 = arith.constant 0 : index
    %c0_20 = arith.constant 0 : index
    %24 = vector.load %arg3[%c2_18, %c0_19, %c0_20] : memref<6x1x128xf32, #tpu.memory_space<vmem>>, vector<1x1x128xf32>
    %25 = vector.shape_cast %24 : vector<1x1x128xf32> to vector<1x128xf32>
    %26 = vector.broadcast %25 : vector<1x128xf32> to vector<512x128xf32>
    %27 = arith.addf %23, %26 : vector<512x128xf32>
    %28 = tpu.iota {dimensions = array<i32: 1>} : vector<512x128xi32>
    %c16_i32 = arith.constant 16 : i32
    %29 = vector.broadcast %c16_i32 : i32 to vector<512x128xi32>
    %30 = arith.cmpi sge, %28, %29 : vector<512x128xi32>
    %c24_i32 = arith.constant 24 : i32
    %31 = vector.broadcast %c24_i32 : i32 to vector<512x128xi32>
    %32 = arith.cmpi slt, %28, %31 : vector<512x128xi32>
    %33 = arith.andi %30, %32 : vector<512x128xi1>
    %c24_i32_21 = arith.constant 24 : i32
    %34 = vector.broadcast %c24_i32_21 : i32 to vector<512x128xi32>
    %35 = arith.cmpi sge, %28, %34 : vector<512x128xi32>
    %c32_i32 = arith.constant 32 : i32
    %36 = vector.broadcast %c32_i32 : i32 to vector<512x128xi32>
    %37 = arith.cmpi slt, %28, %36 : vector<512x128xi32>
    %38 = arith.andi %35, %37 : vector<512x128xi1>
    %39 = arith.extf %0 : vector<512x128xbf16> to vector<512x128xf32>
    %cst_22 = arith.constant 5.000000e-01 : f32
    %40 = vector.broadcast %cst_22 : f32 to vector<512x128xf32>
    %41 = arith.mulf %40, %27 : vector<512x128xf32>
    %42 = math.exp %41 : vector<512x128xf32>
    %43 = arith.mulf %39, %42 : vector<512x128xf32>
    %cst_23 = arith.constant 0.000000e+00 : f32
    %44 = vector.broadcast %cst_23 : f32 to vector<512x128xf32>
    %45 = arith.select %38, %43, %44 : vector<512x128xi1>, vector<512x128xf32>
    %cst_24 = arith.constant 0.000000e+00 : f32
    %46 = vector.broadcast %cst_24 : f32 to vector<512x128xf32>
    %47 = arith.select %33, %27, %46 : vector<512x128xi1>, vector<512x128xf32>
    %48 = arith.addf %47, %45 : vector<512x128xf32>
    %49 = arith.truncf %48 : vector<512x128xf32> to vector<512x128xbf16>
    %c3 = arith.constant 3 : index
    %c0_25 = arith.constant 0 : index
    %c0_26 = arith.constant 0 : index
    %50 = vector.load %arg2[%c3, %c0_25, %c0_26] : memref<6x128x128xbf16, #tpu.memory_space<vmem>>, vector<1x128x128xbf16>
    %51 = vector.shape_cast %50 : vector<1x128x128xbf16> to vector<128x128xbf16>
    %cst_27 = arith.constant dense<0.000000e+00> : vector<512x128xf32>
    %52 = tpu.matmul %49, %51, %cst_27 {dimension_numbers = #tpu.dot_dimension_numbers<[1], [0], [0], [1], [0, 0, 1, 1], [], []>} : vector<512x128xbf16>, vector<128x128xbf16>, vector<512x128xf32> -> vector<512x128xf32>
    %c3_28 = arith.constant 3 : index
    %c0_29 = arith.constant 0 : index
    %c0_30 = arith.constant 0 : index
    %53 = vector.load %arg3[%c3_28, %c0_29, %c0_30] : memref<6x1x128xf32, #tpu.memory_space<vmem>>, vector<1x1x128xf32>
    %54 = vector.shape_cast %53 : vector<1x1x128xf32> to vector<1x128xf32>
    %55 = vector.broadcast %54 : vector<1x128xf32> to vector<512x128xf32>
    %56 = arith.addf %52, %55 : vector<512x128xf32>
    %cst_31 = arith.constant 0.000000e+00 : f32
    %57 = vector.broadcast %cst_31 : f32 to vector<512x128xf32>
    %58 = arith.maximumf %56, %57 : vector<512x128xf32>
    %59 = arith.truncf %58 : vector<512x128xf32> to vector<512x128xbf16>
    %c4 = arith.constant 4 : index
    %c0_32 = arith.constant 0 : index
    %c0_33 = arith.constant 0 : index
    %60 = vector.load %arg2[%c4, %c0_32, %c0_33] : memref<6x128x128xbf16, #tpu.memory_space<vmem>>, vector<1x128x128xbf16>
    %61 = vector.shape_cast %60 : vector<1x128x128xbf16> to vector<128x128xbf16>
    %cst_34 = arith.constant dense<0.000000e+00> : vector<512x128xf32>
    %62 = tpu.matmul %59, %61, %cst_34 {dimension_numbers = #tpu.dot_dimension_numbers<[1], [0], [0], [1], [0, 0, 1, 1], [], []>} : vector<512x128xbf16>, vector<128x128xbf16>, vector<512x128xf32> -> vector<512x128xf32>
    %c4_35 = arith.constant 4 : index
    %c0_36 = arith.constant 0 : index
    %c0_37 = arith.constant 0 : index
    %63 = vector.load %arg3[%c4_35, %c0_36, %c0_37] : memref<6x1x128xf32, #tpu.memory_space<vmem>>, vector<1x1x128xf32>
    %64 = vector.shape_cast %63 : vector<1x1x128xf32> to vector<1x128xf32>
    %65 = vector.broadcast %64 : vector<1x128xf32> to vector<512x128xf32>
    %66 = arith.addf %62, %65 : vector<512x128xf32>
    %cst_38 = arith.constant 0.000000e+00 : f32
    %67 = vector.broadcast %cst_38 : f32 to vector<512x128xf32>
    %68 = arith.maximumf %66, %67 : vector<512x128xf32>
    %69 = arith.truncf %68 : vector<512x128xf32> to vector<512x128xbf16>
    %c5 = arith.constant 5 : index
    %c0_39 = arith.constant 0 : index
    %c0_40 = arith.constant 0 : index
    %70 = vector.load %arg2[%c5, %c0_39, %c0_40] : memref<6x128x128xbf16, #tpu.memory_space<vmem>>, vector<1x128x128xbf16>
    %71 = vector.shape_cast %70 : vector<1x128x128xbf16> to vector<128x128xbf16>
    %cst_41 = arith.constant dense<0.000000e+00> : vector<512x128xf32>
    %72 = tpu.matmul %69, %71, %cst_41 {dimension_numbers = #tpu.dot_dimension_numbers<[1], [0], [0], [1], [0, 0, 1, 1], [], []>} : vector<512x128xbf16>, vector<128x128xbf16>, vector<512x128xf32> -> vector<512x128xf32>
    %c5_42 = arith.constant 5 : index
    %c0_43 = arith.constant 0 : index
    %c0_44 = arith.constant 0 : index
    %73 = vector.load %arg3[%c5_42, %c0_43, %c0_44] : memref<6x1x128xf32, #tpu.memory_space<vmem>>, vector<1x1x128xf32>
    %74 = vector.shape_cast %73 : vector<1x1x128xf32> to vector<1x128xf32>
    %75 = vector.broadcast %74 : vector<1x128xf32> to vector<512x128xf32>
    %76 = arith.addf %72, %75 : vector<512x128xf32>
    %77 = arith.addf %76, %27 : vector<512x128xf32>
    %c0_45 = arith.constant 0 : index
    %c0_46 = arith.constant 0 : index
    %78 = vector.load %arg4[%c0_45, %c0_46] : memref<512x128xf32, #tpu.memory_space<vmem>>, vector<512x128xf32>
    tpu.vector_store %arg4[%c0_45, %c0_46], %77 {strides = array<i32>} : memref<512x128xf32, #tpu.memory_space<vmem>>, vector<512x128xf32>,
    return
  }
  func.func @transform_0(%arg0: i32) -> (i32, i32) {
    %c0_i32 = arith.constant 0 : i32
    %c0_i32_0 = arith.constant 0 : i32
    return %arg0, %c0_i32 : i32, i32
  }
  func.func @transform_1(%arg0: i32) -> (i32, i32, i32) {
    %c0_i32 = arith.constant 0 : i32
    %c0_i32_0 = arith.constant 0 : i32
    %c0_i32_1 = arith.constant 0 : i32
    %c0_i32_2 = arith.constant 0 : i32
    return %c0_i32, %c0_i32_0, %c0_i32_1 : i32, i32, i32
  }
  func.func @transform_2(%arg0: i32) -> (i32, i32, i32) {
    %c0_i32 = arith.constant 0 : i32
    %c0_i32_0 = arith.constant 0 : i32
    %c0_i32_1 = arith.constant 0 : i32
    %c0_i32_2 = arith.constant 0 : i32
    return %c0_i32, %c0_i32_0, %c0_i32_1 : i32, i32, i32
  }
  func.func @transform_3(%arg0: i32) -> (i32, i32) {
    %c0_i32 = arith.constant 0 : i32
    %c0_i32_0 = arith.constant 0 : i32
    return %arg0, %c0_i32 : i32, i32
  }
}

</mosaic_0001>

<bundles_post_ra>
// kernel: tpu_custom_call.1
= control target key start
LH: loop header
LB: loop body
LE: loop exit
PB: predicated region body
PF: predicated region fallthrough
CT: control target
= control target key end

     0   :  { %8 = vsyncpa [#allocation3], 0  ;;  %s6125_s0 = inlined_call_operand.hbm [shape: bf16[512,128], index: 0, kind: input, shape index: {}]   ;;  %s6126_s1 = inlined_call_operand.hbm [shape: bf16[6,128,128], index: 1, kind: input, shape index: {}]   ;;  %s6127_s2 = inlined_call_operand.vmem [shape: f32[6,1,128], index: 2, kind: input, shape index: {}]   ;;  %s6128_s3 = inlined_call_operand.hbm [shape: f32[512,128], index: 3, kind: output, shape index: {}]  }
   0x1   :  { %9 = vsyncpa [#allocation6], 0 }
   0x2   :  { %10 = vsyncpa [#allocation4], 0  ;;  %s4715_s12 = smov [#allocation2]   ;;  %s4643_s16 = scalar_lea.hbm %s6125_s0, 4096 }
   0x3   :  { %s16_s13 = sshll.u32 %s4715_s12, 4  ;;  %p4644_p0 = scmp.ne.s32.totalorder %s6125_s0, %s4643_s16  ;;  %s17_s13 = int_to_ptr.vmem [resolvable:$true] %s16_s13 }
   0x4   :  { %p4647_p1 = scmp.lt.u32.totalorder %s4643_s16, %s6125_s0 }
   0x6   :  { %p4649_p2 = pnand %p4647_p1, %p4644_p0 }
   0x8   :  { %4652 = shalt.err (!%p4649_p2)
}
   0x9   :  { %s4653_s21 = scalar_lea.vmem %s17_s13, 4096  ;;  %p4658_p4 = scmp.lt.s32.totalorder %s17_s13, %s17_s13 }
   0xa   :  { %p4654_p3 = scmp.ne.s32.totalorder %s17_s13, %s4653_s21  ;;  %p4659_p5 = scmp.lt.s32.totalorder %s4653_s21, %s4653_s21 }
   0xc   :  { %p4660_p6 = por %p4659_p5, %p4658_p4 }
   0xe   :  { %p4661_p7 = pnand %p4660_p6, %p4654_p3 }
  0x10   :  { %4664 = shalt.err (!%p4661_p7)
}
  0x11   :  { %s4716_s22 = smov 64   ;;  %s4717_s23 = smov 4  }
  0x12   :  { %22 = dma.hbm_to_vmem [thread:$0]  %s6125_s0, 4096, %s17_s13, [#allocation3], %s4716_s22, %s4716_s22, %s4717_s23  }
  0x13   :  { %s4718_s26 = smov [#allocation5]   ;;  %s4665_s30 = scalar_lea.hbm %s6126_s1, 6144 }
  0x14   :  { %s28_s27 = sshll.u32 %s4718_s26, 4  ;;  %p4666_p8 = scmp.ne.s32.totalorder %s6126_s1, %s4665_s30  ;;  %s29_s27 = int_to_ptr.vmem [resolvable:$true] %s28_s27 }
  0x15   :  { %p4669_p9 = scmp.lt.u32.totalorder %s4665_s30, %s6126_s1 }
  0x17   :  { %p4671_p10 = pnand %p4669_p9, %p4666_p8 }
  0x19   :  { %4674 = shalt.err (!%p4671_p10)
}
  0x1a   :  { %s4675_s8 = scalar_lea.vmem %s29_s27, 6144  ;;  %p4680_p12 = scmp.lt.s32.totalorder %s29_s27, %s29_s27 }
  0x1b   :  { %p4676_p11 = scmp.ne.s32.totalorder %s29_s27, %s4675_s8  ;;  %p4681_p13 = scmp.lt.s32.totalorder %s4675_s8, %s4675_s8 }
  0x1d   :  { %p4682_p0 = por %p4681_p13, %p4680_p12 }
  0x1f   :  { %p4683_p1 = pnand %p4682_p0, %p4676_p11 }
  0x21   :  { %4686 = shalt.err (!%p4683_p1)
}
  0x22   :  { %34 = dma.hbm_to_vmem [thread:$0]  %s6126_s1, 6144, %s29_s27, [#allocation6], %s4716_s22, %s4716_s22, %s4717_s23  }
  0x23   :  { %4709 = dma.done.wait [#allocation3], 4096  }
  0x24   :  { %4710 = vsyncadd [#allocation3], 4294963200 }
  0x25   :  { %4711 = dma.done.wait [#allocation6], 6144  }
  0x26   :  { %4712 = vsyncadd [#allocation6], 4294961152  ;;  %v4370_v0 = vld [vmem:[#allocation5] sm:$0xff]   ;;  %v4371_v1 = vld [vmem:[#allocation5 + $0x8] sm:$0xff]  }
  0x27   :  { %3883 = vmatprep.subr.bf16.mxu0 %v4370_v0  ;;  %v4372_v2 = vld [vmem:[#allocation5 + $0x10] sm:$0xff]   ;;  %v4373_v3 = vld [vmem:[#allocation5 + $0x18] sm:$0xff]   ;;  %v44_v4 = vld [vmem:[#allocation2] sm:$0xff]  }
  0x28   :  { %3884 = vmatpush3.bf16.msra.mxu0 %v4370_v0  ;;  %3899 = vmatprep.mubr.bf16.mxu0 %v44_v4  ;;  %v4374_v5 = vld [vmem:[#allocation5 + $0x20] sm:$0xff]   ;;  %v4375_v6 = vld [vmem:[#allocation5 + $0x28] sm:$0xff]   ;;  %v4376_v7 = vld [vmem:[#allocation5 + $0x30] sm:$0xff]  }
  0x29   :  { %3885 = vmatprep.subr.bf16.mxu0 %v4371_v1  ;;  %v4377_v8 = vld [vmem:[#allocation5 + $0x38] sm:$0xff]   ;;  %v4410_v9 = vld [vmem:[#allocation5 + $0x40] sm:$0xff]   ;;  %v4411_v10 = vld [vmem:[#allocation5 + $0x48] sm:$0xff]  }
  0x2a   :  { %v46_v11 = vld [vmem:[#allocation2 + $0x8] sm:$0xff]   ;;  %v48_v12 = vld [vmem:[#allocation2 + $0x10] sm:$0xff]   ;;  %3963 = vmatprep.subr.bf16.mxu1 %v4410_v9  ;;  %v4413_v14 = vld [vmem:[#allocation5 + $0x58] sm:$0xff]  }
  0x2b   :  { %v4412_v13 = vld [vmem:[#allocation5 + $0x50] sm:$0xff]   ;;  %3964 = vmatpush3.bf16.msra.mxu1 %v4410_v9  ;;  %v50_v15 = vld [vmem:[#allocation2 + $0x18] sm:$0xff]   ;;  %v52_v16 = vld [vmem:[#allocation2 + $0x20] sm:$0xff]  }
  0x2c   :  { %3886 = vmatpush3.bf16.msra.mxu0 %v4371_v1  ;;  %3965 = vmatprep.subr.bf16.mxu1 %v4411_v10  ;;  %v4414_v17 = vld [vmem:[#allocation5 + $0x60] sm:$0xff]   ;;  %v4415_v18 = vld [vmem:[#allocation5 + $0x68] sm:$0xff]   ;;  %v56_v20 = vld [vmem:[#allocation2 + $0x30] sm:$0xff]  }
  0x2d   :  { %3887 = vmatprep.subr.bf16.mxu0 %v4372_v2  ;;  %v54_v19 = vld [vmem:[#allocation2 + $0x28] sm:$0xff]   ;;  %v58_v21 = vld [vmem:[#allocation2 + $0x38] sm:$0xff]   ;;  %v60_v22 = vld [vmem:[#allocation2 + $0x40] sm:$0xff]  }
  0x2e   :  { %v62_v23 = vld [vmem:[#allocation2 + $0x48] sm:$0xff]   ;;  %v64_v24 = vld [vmem:[#allocation2 + $0x50] sm:$0xff]   ;;  %v66_v25 = vld [vmem:[#allocation2 + $0x58] sm:$0xff]  }
  0x2f   :  { %3966 = vmatpush3.bf16.msra.mxu1 %v4411_v10  ;;  %v68_v26 = vld [vmem:[#allocation2 + $0x60] sm:$0xff]   ;;  %v70_v27 = vld [vmem:[#allocation2 + $0x68] sm:$0xff]   ;;  %v72_v28 = vld [vmem:[#allocation2 + $0x70] sm:$0xff]  }
  0x30   :  { %3888 = vmatpush3.bf16.msra.mxu0 %v4372_v2  ;;  %3967 = vmatprep.subr.bf16.mxu1 %v4412_v13  ;;  %v74_v29 = vld [vmem:[#allocation2 + $0x78] sm:$0xff]   ;;  %v76_v30 = vld [vmem:[#allocation2 + $0x80] sm:$0xff]   ;;  %v78_v31 = vld [vmem:[#allocation2 + $0x88] sm:$0xff]  }
  0x31   :  { %3889 = vmatprep.subr.bf16.mxu0 %v4373_v3  ;;  %v80_v32 = vld [vmem:[#allocation2 + $0x90] sm:$0xff]   ;;  %v82_v33 = vld [vmem:[#allocation2 + $0x98] sm:$0xff]   ;;  %v84_v34 = vld [vmem:[#allocation2 + $0xa0] sm:$0xff]  }
  0x32   :  { %v86_v35 = vld [vmem:[#allocation2 + $0xa8] sm:$0xff]   ;;  %v88_v36 = vld [vmem:[#allocation2 + $0xb0] sm:$0xff]   ;;  %v90_v37 = vld [vmem:[#allocation2 + $0xb8] sm:$0xff]  }
  0x33   :  { %3968 = vmatpush3.bf16.msra.mxu1 %v4412_v13  ;;  %v92_v38 = vld [vmem:[#allocation2 + $0xc0] sm:$0xff]   ;;  %v4416_v39 = vld [vmem:[#allocation5 + $0x70] sm:$0xff]   ;;  %v4417_v40 = vld [vmem:[#allocation5 + $0x78] sm:$0xff]  }
  0x34   :  { %3890 = vmatpush3.bf16.msra.mxu0 %v4373_v3  ;;  %3969 = vmatprep.subr.bf16.mxu1 %v4413_v14  ;;  %v94_v41 = vld [vmem:[#allocation2 + $0xc8] sm:$0xff]   ;;  %v96_v42 = vld [vmem:[#allocation2 + $0xd0] sm:$0xff]   ;;  %v98_v43 = vld [vmem:[#allocation2 + $0xd8] sm:$0xff]  }
  0x35   :  { %3891 = vmatprep.subr.bf16.mxu0 %v4374_v5  ;;  %v100_v44 = vld [vmem:[#allocation2 + $0xe0] sm:$0xff]   ;;  %v102_v45 = vld [vmem:[#allocation2 + $0xe8] sm:$0xff]   ;;  %v104_v46 = vld [vmem:[#allocation2 + $0xf0] sm:$0xff]  }
  0x36   :  { %v106_v47 = vld [vmem:[#allocation2 + $0xf8] sm:$0xff]   ;;  %v4418_v48 = vld [vmem:[#allocation5 + $0x80] sm:$0xff]   ;;  %v4419_v49 = vld [vmem:[#allocation5 + $0x88] sm:$0xff]  }
  0x37   :  { %3970 = vmatpush3.bf16.msra.mxu1 %v4413_v14  ;;  %v4769_v50 = vld [vmem:[%s6127_s2] ss:$0 sm:$0xff]  ;;  %v4420_v58 = vld [vmem:[#allocation5 + $0x90] sm:$0xff]   ;;  %v4421_v59 = vld [vmem:[#allocation5 + $0x98] sm:$0xff]  }
  0x38   :  { %3892 = vmatpush3.bf16.msra.mxu0 %v4374_v5  ;;  %3971 = vmatprep.subr.bf16.mxu1 %v4414_v17  ;;  %v4422_v2 = vld [vmem:[#allocation5 + $0xa0] sm:$0xff]  }
  0x39   :  { %3893 = vmatprep.subr.bf16.mxu0 %v4375_v6 }
  0x3b   :  { %3972 = vmatpush3.bf16.msra.mxu1 %v4414_v17 }
  0x3c   :  { %3894 = vmatpush3.bf16.msra.mxu0 %v4375_v6  ;;  %3973 = vmatprep.subr.bf16.mxu1 %v4415_v18 }
  0x3d   :  { %3895 = vmatprep.subr.bf16.mxu0 %v4376_v7 }
  0x3f   :  { %3974 = vmatpush3.bf16.msra.mxu1 %v4415_v18  ;;  %v4424_v18 = vld [vmem:[#allocation5 + $0xb0] sm:$0xff]  }
  0x40   :  { %3896 = vmatpush3.bf16.msra.mxu0 %v4376_v7  ;;  %3975 = vmatprep.subr.bf16.mxu1 %v4416_v39 }
  0x41   :  { %3897 = vmatprep.subr.bf16.mxu0 %v4377_v8 }
  0x43   :  { %3976 = vmatpush3.bf16.msra.mxu1 %v4416_v39 }
  0x44   :  { %3898 = vmatpush3.bf16.msra.mxu0 %v4377_v8  ;;  %3977 = vmatprep.subr.bf16.mxu1 %v4417_v40 }
  0x45   :  { %4043 = vmatprep.subr.bf16.mxu0 %v4418_v48 }
  0x47   :  { %3900 = vmatmul.mubr.bf16.vlgmr.msra.gmra.mrb[0].mxu0 %v46_v11  ;;  %3978 = vmatpush3.bf16.msra.mxu1 %v4417_v40  ;;  %v4423_v11 = vld [vmem:[#allocation5 + $0xa8] sm:$0xff]  }
  0x48   :  { %3903 = vmatprep.mubr.bf16.mxu0 %v48_v12  ;;  %4044 = vmatpush3.bf16.msra.mxu0 %v4418_v48 }
  0x49   :  { %4045 = vmatprep.subr.bf16.mxu0 %v4419_v49 }
  0x4c   :  { %4046 = vmatpush3.bf16.msra.mxu0 %v4419_v49 }
  0x4d   :  { %4047 = vmatprep.subr.bf16.mxu0 %v4420_v58 }
  0x4f   :  { %3904 = vmatmul.mubr.bf16.gmra.mrb[4].mxu0 %v50_v15 }
  0x50   :  { %3907 = vmatprep.mubr.bf16.mxu0 %v52_v16  ;;  %4048 = vmatpush3.bf16.msra.mxu0 %v4420_v58 }
  0x51   :  { %4049 = vmatprep.subr.bf16.mxu0 %v4421_v59 }
  0x54   :  { %4050 = vmatpush3.bf16.msra.mxu0 %v4421_v59 }
  0x55   :  { %4051 = vmatprep.subr.bf16.mxu0 %v4422_v2 }
  0x57   :  { %3908 = vmatmul.mubr.bf16.gmra.mrb[8].mxu0 %v54_v19 }
  0x58   :  { %3911 = vmatprep.mubr.bf16.mxu0 %v56_v20  ;;  %4052 = vmatpush3.bf16.msra.mxu0 %v4422_v2 }
  0x59   :  { %4053 = vmatprep.subr.bf16.mxu0 %v4423_v11 }
  0x5c   :  { %4054 = vmatpush3.bf16.msra.mxu0 %v4423_v11 }
  0x5d   :  { %4055 = vmatprep.subr.bf16.mxu0 %v4424_v18 }
  0x5f   :  { %3912 = vmatmul.mubr.bf16.gmra.mrb[12].mxu0 %v58_v21 }
  0x60   :  { %3915 = vmatprep.mubr.bf16.mxu0 %v60_v22  ;;  %4056 = vmatpush3.bf16.msra.mxu0 %v4424_v18 }
  0x67   :  { %3916 = vmatmul.mubr.bf16.gmra.mrb[16].mxu0 %v62_v23 }
  0x68   :  { %3919 = vmatprep.mubr.bf16.mxu0 %v64_v24 }
  0x6f   :  { %3920 = vmatmul.mubr.bf16.gmra.mrb[20].mxu0 %v66_v25 }
  0x70   :  { %3923 = vmatprep.mubr.bf16.mxu0 %v68_v26 }
  0x77   :  { %3924 = vmatmul.mubr.bf16.gmra.mrb[24].mxu0 %v70_v27  ;;  %v4425_v27 = vld [vmem:[#allocation5 + $0xb8] sm:$0xff]  }
  0x78   :  { %3927 = vmatprep.mubr.bf16.mxu0 %v72_v28  ;;  %4057 = vmatprep.subr.bf16.mxu0 %v4425_v27 }
  0x79   :  { %4058 = vmatpush3.bf16.msra.mxu0 %v4425_v27 }
  0x7f   :  { %3928 = vmatmul.mubr.bf16.gmra.mrb[28].mxu0 %v74_v29 }
  0x80   :  { %3931 = vmatprep.mubr.bf16.mxu0 %v76_v30 }
  0x87   :  { %3932 = vmatmul.mubr.bf16.gmra.mrb[32].mxu0 %v78_v31 }
  0x88   :  { %3935 = vmatprep.mubr.bf16.mxu0 %v80_v32 }
  0x8f   :  { %3936 = vmatmul.mubr.bf16.gmra.mrb[36].mxu0 %v82_v33 }
  0x90   :  { %3939 = vmatprep.mubr.bf16.mxu0 %v84_v34 }
  0x97   :  { %3940 = vmatmul.mubr.bf16.gmra.mrb[40].mxu0 %v86_v35 }
  0x98   :  { %3943 = vmatprep.mubr.bf16.mxu0 %v88_v36 }
  0x9f   :  { %3944 = vmatmul.mubr.bf16.gmra.mrb[44].mxu0 %v90_v37 }
  0xa0   :  { %3947 = vmatprep.mubr.bf16.mxu0 %v92_v38 }
  0xa7   :  { %3948 = vmatmul.mubr.bf16.gmra.mrb[48].mxu0 %v94_v41 }
  0xa8   :  { %3951 = vmatprep.mubr.bf16.mxu0 %v96_v42 }
  0xaf   :  { %3952 = vmatmul.mubr.bf16.gmra.mrb[52].mxu0 %v98_v43 }
  0xb0   :  { %3955 = vmatprep.mubr.bf16.mxu0 %v100_v44 }
  0xb7   :  { %3956 = vmatmul.mubr.bf16.gmra.mrb[56].mxu0 %v102_v45 }
  0xb8   :  { %3959 = vmatprep.mubr.bf16.mxu0 %v104_v46 }
  0xbf   :  { %3960 = vmatmul.mubr.bf16.gmra.mrb[60].mxu0 %v106_v47 }
 0x11a   :  { %v3901_v51 = vpop.f32.mrb[0].mxu0 }
 0x11b   :  { %v414_v52 = vadd.f32 %v3901_v51, %v4769_v50  ;;  %v405_v53 = vpop.f32.mrb[1].mxu0 }
 0x11c   :  { %v406_v54 = vadd.f32 %v4769_v50, %v405_v53  ;;  %v3902_v55 = vpop.f32.mrb[2].mxu0 }
 0x11d   :  { %v417_v56 = vadd.f32 %v3902_v55, %v4769_v50  ;;  %v408_v57 = vpop.f32.mrb[3].mxu0  ;;  %v662_v61 = vmax.f32 %v414_v52, 0.0 }
 0x11e   :  { %v409_v60 = vadd.f32 %v4769_v50, %v408_v57  ;;  %v660_v63 = vmax.f32 %v406_v54, 0.0 }
 0x11f   :  { %v663_v62 = vmax.f32 %v417_v56, 0.0 }
 0x120   :  { %v661_v0 = vmax.f32 %v409_v60, 0.0 }
 0x121   :  { %v725_v1 = vpack.c.bf16 %v663_v62, %v662_v61 }
 0x122   :  { %v3905_v3 = vpop.f32.mrb[4].mxu0  ;;  %v724_v4 = vpack.c.bf16 %v661_v0, %v660_v63 }
 0x123   :  { %v430_v5 = vadd.f32 %v3905_v3, %v4769_v50  ;;  %v421_v6 = vpop.f32.mrb[5].mxu0 }
 0x124   :  { %v422_v7 = vadd.f32 %v4769_v50, %v421_v6  ;;  %v3906_v8 = vpop.f32.mrb[6].mxu0  ;;  %3979 = vmatprep.mubr.bf16.mxu1 %v724_v4 }
 0x125   :  { %v433_v9 = vadd.f32 %v3906_v8, %v4769_v50  ;;  %v424_v10 = vpop.f32.mrb[7].mxu0  ;;  %3980 = vmatmul.mubr.bf16.vlgmr.msra.gmra.mrb[0].mxu1 %v725_v1  ;;  %v666_v13 = vmax.f32 %v430_v5, 0.0 }
 0x126   :  { %v425_v12 = vadd.f32 %v4769_v50, %v424_v10  ;;  %v664_v15 = vmax.f32 %v422_v7, 0.0 }
 0x127   :  { %v667_v14 = vmax.f32 %v433_v9, 0.0 }
 0x128   :  { %v665_v16 = vmax.f32 %v425_v12, 0.0 }
 0x129   :  { %v727_v17 = vpack.c.bf16 %v667_v14, %v666_v13 }
 0x12a   :  { %v726_v19 = vpack.c.bf16 %v665_v16, %v664_v15  ;;  %v3909_v20 = vpop.f32.mrb[8].mxu0 }
 0x12b   :  { %v446_v21 = vadd.f32 %v3909_v20, %v4769_v50  ;;  %v437_v22 = vpop.f32.mrb[9].mxu0 }
 0x12c   :  { %v438_v23 = vadd.f32 %v4769_v50, %v437_v22  ;;  %v3910_v24 = vpop.f32.mrb[10].mxu0  ;;  %3983 = vmatprep.mubr.bf16.mxu1 %v726_v19 }
 0x12d   :  { %v449_v25 = vadd.f32 %v3910_v24, %v4769_v50  ;;  %v440_v26 = vpop.f32.mrb[11].mxu0  ;;  %3984 = vmatmul.mubr.bf16.gmra.mrb[4].mxu1 %v727_v17  ;;  %v670_v29 = vmax.f32 %v446_v21, 0.0 }
 0x12e   :  { %v441_v28 = vadd.f32 %v4769_v50, %v440_v26  ;;  %v668_v31 = vmax.f32 %v438_v23, 0.0 }
 0x12f   :  { %v671_v30 = vmax.f32 %v449_v25, 0.0 }
 0x130   :  { %v669_v32 = vmax.f32 %v441_v28, 0.0 }
 0x131   :  { %v729_v33 = vpack.c.bf16 %v671_v30, %v670_v29 }
 0x132   :  { %v728_v34 = vpack.c.bf16 %v669_v32, %v668_v31  ;;  %v3913_v35 = vpop.f32.mrb[12].mxu0 }
 0x133   :  { %v462_v36 = vadd.f32 %v3913_v35, %v4769_v50  ;;  %v453_v37 = vpop.f32.mrb[13].mxu0 }
 0x134   :  { %v454_v38 = vadd.f32 %v4769_v50, %v453_v37  ;;  %v3914_v39 = vpop.f32.mrb[14].mxu0  ;;  %3987 = vmatprep.mubr.bf16.mxu1 %v728_v34 }
 0x135   :  { %v465_v40 = vadd.f32 %v3914_v39, %v4769_v50  ;;  %v456_v41 = vpop.f32.mrb[15].mxu0  ;;  %3988 = vmatmul.mubr.bf16.gmra.mrb[8].mxu1 %v729_v33  ;;  %v674_v43 = vmax.f32 %v462_v36, 0.0 }
 0x136   :  { %v457_v42 = vadd.f32 %v4769_v50, %v456_v41  ;;  %v672_v45 = vmax.f32 %v454_v38, 0.0 }
 0x137   :  { %v675_v44 = vmax.f32 %v465_v40, 0.0 }
 0x138   :  { %v673_v46 = vmax.f32 %v457_v42, 0.0 }
 0x139   :  { %v731_v47 = vpack.c.bf16 %v675_v44, %v674_v43 }
 0x13a   :  { %v730_v48 = vpack.c.bf16 %v673_v46, %v672_v45  ;;  %v3917_v49 = vpop.f32.mrb[16].mxu0 }
 0x13b   :  { %v478_v51 = vadd.f32 %v3917_v49, %v4769_v50  ;;  %v469_v52 = vpop.f32.mrb[17].mxu0 }
 0x13c   :  { %v470_v53 = vadd.f32 %v4769_v50, %v469_v52  ;;  %v3918_v54 = vpop.f32.mrb[18].mxu0  ;;  %3991 = vmatprep.mubr.bf16.mxu1 %v730_v48 }
 0x13d   :  { %v481_v55 = vadd.f32 %v3918_v54, %v4769_v50  ;;  %v472_v56 = vpop.f32.mrb[19].mxu0  ;;  %3992 = vmatmul.mubr.bf16.gmra.mrb[12].mxu1 %v731_v47  ;;  %v678_v58 = vmax.f32 %v478_v51, 0.0 }
 0x13e   :  { %v473_v57 = vadd.f32 %v4769_v50, %v472_v56  ;;  %v676_v60 = vmax.f32 %v470_v53, 0.0 }
 0x13f   :  { %v679_v59 = vmax.f32 %v481_v55, 0.0 }
 0x140   :  { %v677_v61 = vmax.f32 %v473_v57, 0.0 }
 0x141   :  { %v733_v62 = vpack.c.bf16 %v679_v59, %v678_v58 }
 0x142   :  { %v732_v63 = vpack.c.bf16 %v677_v61, %v676_v60  ;;  %v3921_v0 = vpop.f32.mrb[20].mxu0 }
 0x143   :  { %v494_v1 = vadd.f32 %v3921_v0, %v4769_v50  ;;  %v485_v2 = vpop.f32.mrb[21].mxu0 }
 0x144   :  { %v486_v3 = vadd.f32 %v4769_v50, %v485_v2  ;;  %v3922_v4 = vpop.f32.mrb[22].mxu0  ;;  %3995 = vmatprep.mubr.bf16.mxu1 %v732_v63 }
 0x145   :  { %v497_v5 = vadd.f32 %v3922_v4, %v4769_v50  ;;  %v488_v6 = vpop.f32.mrb[23].mxu0  ;;  %3996 = vmatmul.mubr.bf16.gmra.mrb[16].mxu1 %v733_v62  ;;  %v682_v8 = vmax.f32 %v494_v1, 0.0 }
 0x146   :  { %v489_v7 = vadd.f32 %v4769_v50, %v488_v6  ;;  %v680_v10 = vmax.f32 %v486_v3, 0.0 }
 0x147   :  { %v683_v9 = vmax.f32 %v497_v5, 0.0 }
 0x148   :  { %v681_v11 = vmax.f32 %v489_v7, 0.0 }
 0x149   :  { %v735_v12 = vpack.c.bf16 %v683_v9, %v682_v8 }
 0x14a   :  { %v734_v13 = vpack.c.bf16 %v681_v11, %v680_v10  ;;  %v3925_v14 = vpop.f32.mrb[24].mxu0 }
 0x14b   :  { %v510_v15 = vadd.f32 %v3925_v14, %v4769_v50  ;;  %v501_v16 = vpop.f32.mrb[25].mxu0 }
 0x14c   :  { %v502_v17 = vadd.f32 %v4769_v50, %v501_v16  ;;  %v3926_v18 = vpop.f32.mrb[26].mxu0  ;;  %3999 = vmatprep.mubr.bf16.mxu1 %v734_v13 }
 0x14d   :  { %v513_v19 = vadd.f32 %v3926_v18, %v4769_v50  ;;  %v504_v20 = vpop.f32.mrb[27].mxu0  ;;  %4000 = vmatmul.mubr.bf16.gmra.mrb[20].mxu1 %v735_v12  ;;  %v686_v22 = vmax.f32 %v510_v15, 0.0 }
 0x14e   :  { %v505_v21 = vadd.f32 %v4769_v50, %v504_v20  ;;  %v684_v24 = vmax.f32 %v502_v17, 0.0 }
 0x14f   :  { %v687_v23 = vmax.f32 %v513_v19, 0.0 }
 0x150   :  { %v685_v25 = vmax.f32 %v505_v21, 0.0 }
 0x151   :  { %v737_v26 = vpack.c.bf16 %v687_v23, %v686_v22 }
 0x152   :  { %v736_v27 = vpack.c.bf16 %v685_v25, %v684_v24  ;;  %v3929_v28 = vpop.f32.mrb[28].mxu0 }
 0x153   :  { %v526_v29 = vadd.f32 %v3929_v28, %v4769_v50  ;;  %v517_v30 = vpop.f32.mrb[29].mxu0 }
 0x154   :  { %v518_v31 = vadd.f32 %v4769_v50, %v517_v30  ;;  %v3930_v32 = vpop.f32.mrb[30].mxu0  ;;  %4003 = vmatprep.mubr.bf16.mxu1 %v736_v27 }
 0x155   :  { %v529_v33 = vadd.f32 %v3930_v32, %v4769_v50  ;;  %v520_v34 = vpop.f32.mrb[31].mxu0  ;;  %4004 = vmatmul.mubr.bf16.gmra.mrb[24].mxu1 %v737_v26  ;;  %v690_v36 = vmax.f32 %v526_v29, 0.0 }
 0x156   :  { %v521_v35 = vadd.f32 %v4769_v50, %v520_v34  ;;  %v688_v38 = vmax.f32 %v518_v31, 0.0 }
 0x157   :  { %v691_v37 = vmax.f32 %v529_v33, 0.0 }
 0x158   :  { %v689_v39 = vmax.f32 %v521_v35, 0.0 }
 0x159   :  { %v739_v40 = vpack.c.bf16 %v691_v37, %v690_v36 }
 0x15a   :  { %v738_v41 = vpack.c.bf16 %v689_v39, %v688_v38  ;;  %v3933_v42 = vpop.f32.mrb[32].mxu0 }
 0x15b   :  { %v542_v43 = vadd.f32 %v3933_v42, %v4769_v50  ;;  %v533_v44 = vpop.f32.mrb[33].mxu0 }
 0x15c   :  { %v534_v45 = vadd.f32 %v4769_v50, %v533_v44  ;;  %v3934_v46 = vpop.f32.mrb[34].mxu0  ;;  %4007 = vmatprep.mubr.bf16.mxu1 %v738_v41 }
 0x15d   :  { %v545_v47 = vadd.f32 %v3934_v46, %v4769_v50  ;;  %v536_v48 = vpop.f32.mrb[35].mxu0  ;;  %4008 = vmatmul.mubr.bf16.gmra.mrb[28].mxu1 %v739_v40  ;;  %v694_v51 = vmax.f32 %v542_v43, 0.0 }
 0x15e   :  { %v537_v49 = vadd.f32 %v4769_v50, %v536_v48  ;;  %v692_v53 = vmax.f32 %v534_v45, 0.0 }
 0x15f   :  { %v695_v52 = vmax.f32 %v545_v47, 0.0 }
 0x160   :  { %v693_v54 = vmax.f32 %v537_v49, 0.0 }
 0x161   :  { %v741_v55 = vpack.c.bf16 %v695_v52, %v694_v51 }
 0x162   :  { %v740_v56 = vpack.c.bf16 %v693_v54, %v692_v53  ;;  %v3937_v57 = vpop.f32.mrb[36].mxu0 }
 0x163   :  { %v558_v58 = vadd.f32 %v3937_v57, %v4769_v50  ;;  %v549_v59 = vpop.f32.mrb[37].mxu0 }
 0x164   :  { %v550_v60 = vadd.f32 %v4769_v50, %v549_v59  ;;  %v3938_v61 = vpop.f32.mrb[38].mxu0  ;;  %4011 = vmatprep.mubr.bf16.mxu1 %v740_v56 }
 0x165   :  { %v561_v62 = vadd.f32 %v3938_v61, %v4769_v50  ;;  %v552_v63 = vpop.f32.mrb[39].mxu0  ;;  %4012 = vmatmul.mubr.bf16.gmra.mrb[32].mxu1 %v741_v55  ;;  %v698_v1 = vmax.f32 %v558_v58, 0.0 }
 0x166   :  { %v553_v0 = vadd.f32 %v4769_v50, %v552_v63  ;;  %v696_v3 = vmax.f32 %v550_v60, 0.0 }
 0x167   :  { %v699_v2 = vmax.f32 %v561_v62, 0.0 }
 0x168   :  { %v697_v4 = vmax.f32 %v553_v0, 0.0 }
 0x169   :  { %v743_v5 = vpack.c.bf16 %v699_v2, %v698_v1 }
 0x16a   :  { %v742_v6 = vpack.c.bf16 %v697_v4, %v696_v3  ;;  %v3941_v7 = vpop.f32.mrb[40].mxu0 }
 0x16b   :  { %v574_v8 = vadd.f32 %v3941_v7, %v4769_v50  ;;  %v565_v9 = vpop.f32.mrb[41].mxu0 }
 0x16c   :  { %v566_v10 = vadd.f32 %v4769_v50, %v565_v9  ;;  %v3942_v11 = vpop.f32.mrb[42].mxu0  ;;  %4015 = vmatprep.mubr.bf16.mxu1 %v742_v6 }
 0x16d   :  { %v577_v12 = vadd.f32 %v3942_v11, %v4769_v50  ;;  %v568_v13 = vpop.f32.mrb[43].mxu0  ;;  %4016 = vmatmul.mubr.bf16.gmra.mrb[36].mxu1 %v743_v5  ;;  %v702_v15 = vmax.f32 %v574_v8, 0.0 }
 0x16e   :  { %v569_v14 = vadd.f32 %v4769_v50, %v568_v13  ;;  %v700_v17 = vmax.f32 %v566_v10, 0.0 }
 0x16f   :  { %v703_v16 = vmax.f32 %v577_v12, 0.0 }
 0x170   :  { %v701_v18 = vmax.f32 %v569_v14, 0.0 }
 0x171   :  { %v745_v19 = vpack.c.bf16 %v703_v16, %v702_v15 }
 0x172   :  { %v744_v20 = vpack.c.bf16 %v701_v18, %v700_v17  ;;  %v3945_v21 = vpop.f32.mrb[44].mxu0 }
 0x173   :  { %v590_v22 = vadd.f32 %v3945_v21, %v4769_v50  ;;  %v581_v23 = vpop.f32.mrb[45].mxu0 }
 0x174   :  { %v582_v24 = vadd.f32 %v4769_v50, %v581_v23  ;;  %v3946_v25 = vpop.f32.mrb[46].mxu0  ;;  %4019 = vmatprep.mubr.bf16.mxu1 %v744_v20 }
 0x175   :  { %v593_v26 = vadd.f32 %v3946_v25, %v4769_v50  ;;  %v584_v27 = vpop.f32.mrb[47].mxu0  ;;  %4020 = vmatmul.mubr.bf16.gmra.mrb[40].mxu1 %v745_v19  ;;  %v706_v29 = vmax.f32 %v590_v22, 0.0 }
 0x176   :  { %v585_v28 = vadd.f32 %v4769_v50, %v584_v27  ;;  %v704_v31 = vmax.f32 %v582_v24, 0.0 }
 0x177   :  { %v707_v30 = vmax.f32 %v593_v26, 0.0 }
 0x178   :  { %v705_v32 = vmax.f32 %v585_v28, 0.0  ;;  %v4838_v28 = vld [vmem:[%s6127_s2 + $0x1] ss:$0 sm:$0xff] }
 0x179   :  { %v747_v33 = vpack.c.bf16 %v707_v30, %v706_v29  ;;  %v4426_v29 = vld [vmem:[#allocation5 + $0xc0] sm:$0xff]  }
 0x17a   :  { %v746_v34 = vpack.c.bf16 %v705_v32, %v704_v31  ;;  %v3949_v35 = vpop.f32.mrb[48].mxu0  ;;  %4123 = vmatprep.subr.bf16.mxu1 %v4426_v29 }
 0x17b   :  { %v606_v36 = vadd.f32 %v3949_v35, %v4769_v50  ;;  %v597_v37 = vpop.f32.mrb[49].mxu0  ;;  %4124 = vmatpush3.bf16.msra.mxu1 %v4426_v29 }
 0x17c   :  { %v598_v38 = vadd.f32 %v4769_v50, %v597_v37  ;;  %v3950_v39 = vpop.f32.mrb[50].mxu0  ;;  %4023 = vmatprep.mubr.bf16.mxu1 %v746_v34  ;;  %v4428_v37 = vld [vmem:[#allocation5 + $0xd0] sm:$0xff]  }
 0x17d   :  { %v609_v40 = vadd.f32 %v3950_v39, %v4769_v50  ;;  %v600_v41 = vpop.f32.mrb[51].mxu0  ;;  %4024 = vmatmul.mubr.bf16.gmra.mrb[44].mxu1 %v747_v33  ;;  %v710_v43 = vmax.f32 %v606_v36, 0.0  ;;  %v4427_v36 = vld [vmem:[#allocation5 + $0xc8] sm:$0xff]  }
 0x17e   :  { %v601_v42 = vadd.f32 %v4769_v50, %v600_v41  ;;  %v708_v45 = vmax.f32 %v598_v38, 0.0  ;;  %4125 = vmatprep.subr.bf16.mxu1 %v4427_v36 }
 0x17f   :  { %v711_v44 = vmax.f32 %v609_v40, 0.0  ;;  %4126 = vmatpush3.bf16.msra.mxu1 %v4427_v36 }
 0x180   :  { %v709_v46 = vmax.f32 %v601_v42, 0.0  ;;  %4127 = vmatprep.subr.bf16.mxu1 %v4428_v37 }
 0x181   :  { %v749_v47 = vpack.c.bf16 %v711_v44, %v710_v43  ;;  %v4429_v44 = vld [vmem:[#allocation5 + $0xd8] sm:$0xff]  }
 0x182   :  { %v748_v48 = vpack.c.bf16 %v709_v46, %v708_v45  ;;  %v3953_v49 = vpop.f32.mrb[52].mxu0 }
 0x183   :  { %v622_v51 = vadd.f32 %v3953_v49, %v4769_v50  ;;  %v613_v52 = vpop.f32.mrb[53].mxu0  ;;  %4128 = vmatpush3.bf16.msra.mxu1 %v4428_v37 }
 0x184   :  { %v614_v53 = vadd.f32 %v4769_v50, %v613_v52  ;;  %v3954_v54 = vpop.f32.mrb[54].mxu0  ;;  %4027 = vmatprep.mubr.bf16.mxu1 %v748_v48  ;;  %4129 = vmatprep.subr.bf16.mxu1 %v4429_v44 }
 0x185   :  { %v625_v55 = vadd.f32 %v3954_v54, %v4769_v50  ;;  %v616_v56 = vpop.f32.mrb[55].mxu0  ;;  %4028 = vmatmul.mubr.bf16.gmra.mrb[48].mxu1 %v749_v47  ;;  %v714_v58 = vmax.f32 %v622_v51, 0.0  ;;  %v4430_v54 = vld [vmem:[#allocation5 + $0xe0] sm:$0xff]  }
 0x186   :  { %v617_v57 = vadd.f32 %v4769_v50, %v616_v56  ;;  %v712_v60 = vmax.f32 %v614_v53, 0.0 }
 0x187   :  { %v715_v59 = vmax.f32 %v625_v55, 0.0  ;;  %4130 = vmatpush3.bf16.msra.mxu1 %v4429_v44 }
 0x188   :  { %v713_v61 = vmax.f32 %v617_v57, 0.0  ;;  %4131 = vmatprep.subr.bf16.mxu1 %v4430_v54 }
 0x189   :  { %v751_v62 = vpack.c.bf16 %v715_v59, %v714_v58 }
 0x18a   :  { %v750_v63 = vpack.c.bf16 %v713_v61, %v712_v60  ;;  %v3957_v0 = vpop.f32.mrb[56].mxu0  ;;  %v4431_v61 = vld [vmem:[#allocation5 + $0xe8] sm:$0xff]  }
 0x18b   :  { %v638_v1 = vadd.f32 %v3957_v0, %v4769_v50  ;;  %v629_v2 = vpop.f32.mrb[57].mxu0  ;;  %4132 = vmatpush3.bf16.msra.mxu1 %v4430_v54 }
 0x18c   :  { %v630_v3 = vadd.f32 %v4769_v50, %v629_v2  ;;  %v3958_v4 = vpop.f32.mrb[58].mxu0  ;;  %4031 = vmatprep.mubr.bf16.mxu1 %v750_v63  ;;  %4133 = vmatprep.subr.bf16.mxu1 %v4431_v61 }
 0x18d   :  { %v641_v5 = vadd.f32 %v3958_v4, %v4769_v50  ;;  %v632_v6 = vpop.f32.mrb[59].mxu0  ;;  %4032 = vmatmul.mubr.bf16.gmra.mrb[52].mxu1 %v751_v62  ;;  %v718_v8 = vmax.f32 %v638_v1, 0.0 }
 0x18e   :  { %v633_v7 = vadd.f32 %v4769_v50, %v632_v6  ;;  %v716_v10 = vmax.f32 %v630_v3, 0.0  ;;  %v4432_v6 = vld [vmem:[#allocation5 + $0xf0] sm:$0xff]  }
 0x18f   :  { %v719_v9 = vmax.f32 %v641_v5, 0.0  ;;  %4134 = vmatpush3.bf16.msra.mxu1 %v4431_v61 }
 0x190   :  { %v717_v11 = vmax.f32 %v633_v7, 0.0  ;;  %4135 = vmatprep.subr.bf16.mxu1 %v4432_v6 }
 0x191   :  { %v753_v12 = vpack.c.bf16 %v719_v9, %v718_v8 }
 0x192   :  { %v752_v13 = vpack.c.bf16 %v717_v11, %v716_v10  ;;  %v3961_v14 = vpop.f32.mrb[60].mxu0 }
 0x193   :  { %v654_v15 = vadd.f32 %v3961_v14, %v4769_v50  ;;  %v645_v16 = vpop.f32.mrb[61].mxu0  ;;  %4136 = vmatpush3.bf16.msra.mxu1 %v4432_v6 }
 0x194   :  { %v646_v17 = vadd.f32 %v4769_v50, %v645_v16  ;;  %v3962_v18 = vpop.f32.mrb[62].mxu0  ;;  %4035 = vmatprep.mubr.bf16.mxu1 %v752_v13 }
 0x195   :  { %v657_v19 = vadd.f32 %v3962_v18, %v4769_v50  ;;  %v648_v20 = vpop.f32.mrb[63].mxu0  ;;  %4036 = vmatmul.mubr.bf16.gmra.mrb[56].mxu1 %v753_v12  ;;  %v722_v22 = vmax.f32 %v654_v15, 0.0 }
 0x196   :  { %v649_v21 = vadd.f32 %v4769_v50, %v648_v20  ;;  %v720_v24 = vmax.f32 %v646_v17, 0.0 }
 0x197   :  { %v723_v23 = vmax.f32 %v657_v19, 0.0 }
 0x198   :  { %v721_v25 = vmax.f32 %v649_v21, 0.0 }
 0x199   :  { %v755_v26 = vpack.c.bf16 %v723_v23, %v722_v22 }
 0x19a   :  { %v754_v27 = vpack.c.bf16 %v721_v25, %v720_v24 }
 0x19c   :  { %4039 = vmatprep.mubr.bf16.mxu1 %v754_v27 }
 0x19d   :  { %4040 = vmatmul.mubr.bf16.gmra.mrb[60].mxu1 %v755_v26 }
 0x1f8   :  { %v3981_v30 = vpop.f32.mrb[0].mxu1 }
 0x1f9   :  { %v872_v31 = vadd.f32 %v3981_v30, %v4838_v28  ;;  %v863_v32 = vpop.f32.mrb[1].mxu1 }
 0x1fa   :  { %v864_v50 = vadd.f32 %v4838_v28, %v863_v32  ;;  %v3982_v33 = vpop.f32.mrb[2].mxu1 }
 0x1fb   :  { %v875_v34 = vadd.f32 %v3982_v33, %v4838_v28  ;;  %v866_v35 = vpop.f32.mrb[3].mxu1  ;;  %v1120_v39 = vmax.f32 %v872_v31, 0.0 }
 0x1fc   :  { %v867_v38 = vadd.f32 %v4838_v28, %v866_v35  ;;  %v1118_v41 = vmax.f32 %v864_v50, 0.0 }
 0x1fd   :  { %v1121_v40 = vmax.f32 %v875_v34, 0.0 }
 0x1fe   :  { %v1119_v42 = vmax.f32 %v867_v38, 0.0 }
 0x1ff   :  { %v1183_v43 = vpack.c.bf16 %v1121_v40, %v1120_v39 }
 0x200   :  { %v1182_v45 = vpack.c.bf16 %v1119_v42, %v1118_v41  ;;  %v3985_v46 = vpop.f32.mrb[4].mxu1 }
 0x201   :  { %v888_v47 = vadd.f32 %v3985_v46, %v4838_v28  ;;  %v879_v48 = vpop.f32.mrb[5].mxu1 }
 0x202   :  { %v880_v49 = vadd.f32 %v4838_v28, %v879_v48  ;;  %v3986_v51 = vpop.f32.mrb[6].mxu1  ;;  %4059 = vmatprep.mubr.bf16.mxu0 %v1182_v45 }
 0x203   :  { %v891_v52 = vadd.f32 %v3986_v51, %v4838_v28  ;;  %v882_v53 = vpop.f32.mrb[7].mxu1  ;;  %4060 = vmatmul.mubr.bf16.vlgmr.msra.gmra.mrb[64].mxu0 %v1183_v43  ;;  %v1124_v56 = vmax.f32 %v888_v47, 0.0 }
 0x204   :  { %v883_v55 = vadd.f32 %v4838_v28, %v882_v53  ;;  %v1122_v58 = vmax.f32 %v880_v49, 0.0 }
 0x205   :  { %v1125_v57 = vmax.f32 %v891_v52, 0.0 }
 0x206   :  { %v1123_v59 = vmax.f32 %v883_v55, 0.0 }
 0x207   :  { %v1185_v60 = vpack.c.bf16 %v1125_v57, %v1124_v56 }
 0x208   :  { %v1184_v62 = vpack.c.bf16 %v1123_v59, %v1122_v58  ;;  %v3989_v63 = vpop.f32.mrb[8].mxu1 }
 0x209   :  { %v904_v0 = vadd.f32 %v3989_v63, %v4838_v28  ;;  %v895_v1 = vpop.f32.mrb[9].mxu1 }
 0x20a   :  { %v896_v2 = vadd.f32 %v4838_v28, %v895_v1  ;;  %v3990_v3 = vpop.f32.mrb[10].mxu1  ;;  %4063 = vmatprep.mubr.bf16.mxu0 %v1184_v62 }
 0x20b   :  { %v907_v4 = vadd.f32 %v3990_v3, %v4838_v28  ;;  %v898_v5 = vpop.f32.mrb[11].mxu1  ;;  %4064 = vmatmul.mubr.bf16.gmra.mrb[68].mxu0 %v1185_v60  ;;  %v1128_v8 = vmax.f32 %v904_v0, 0.0 }
 0x20c   :  { %v899_v7 = vadd.f32 %v4838_v28, %v898_v5  ;;  %v1126_v10 = vmax.f32 %v896_v2, 0.0 }
 0x20d   :  { %v1129_v9 = vmax.f32 %v907_v4, 0.0 }
 0x20e   :  { %v1127_v11 = vmax.f32 %v899_v7, 0.0 }
 0x20f   :  { %v1187_v12 = vpack.c.bf16 %v1129_v9, %v1128_v8 }
 0x210   :  { %v1186_v13 = vpack.c.bf16 %v1127_v11, %v1126_v10  ;;  %v3993_v14 = vpop.f32.mrb[12].mxu1 }
 0x211   :  { %v920_v15 = vadd.f32 %v3993_v14, %v4838_v28  ;;  %v911_v16 = vpop.f32.mrb[13].mxu1 }
 0x212   :  { %v912_v17 = vadd.f32 %v4838_v28, %v911_v16  ;;  %v3994_v18 = vpop.f32.mrb[14].mxu1  ;;  %4067 = vmatprep.mubr.bf16.mxu0 %v1186_v13 }
 0x213   :  { %v923_v19 = vadd.f32 %v3994_v18, %v4838_v28  ;;  %v914_v20 = vpop.f32.mrb[15].mxu1  ;;  %4068 = vmatmul.mubr.bf16.gmra.mrb[72].mxu0 %v1187_v12  ;;  %v1132_v22 = vmax.f32 %v920_v15, 0.0 }
 0x214   :  { %v915_v21 = vadd.f32 %v4838_v28, %v914_v20  ;;  %v1130_v24 = vmax.f32 %v912_v17, 0.0 }
 0x215   :  { %v1133_v23 = vmax.f32 %v923_v19, 0.0 }
 0x216   :  { %v1131_v25 = vmax.f32 %v915_v21, 0.0 }
 0x217   :  { %v1189_v26 = vpack.c.bf16 %v1133_v23, %v1132_v22 }
 0x218   :  { %v1188_v27 = vpack.c.bf16 %v1131_v25, %v1130_v24  ;;  %v3997_v29 = vpop.f32.mrb[16].mxu1 }
 0x219   :  { %v936_v30 = vadd.f32 %v3997_v29, %v4838_v28  ;;  %v927_v31 = vpop.f32.mrb[17].mxu1 }
 0x21a   :  { %v928_v32 = vadd.f32 %v4838_v28, %v927_v31  ;;  %v3998_v50 = vpop.f32.mrb[18].mxu1  ;;  %4071 = vmatprep.mubr.bf16.mxu0 %v1188_v27 }
 0x21b   :  { %v939_v33 = vadd.f32 %v3998_v50, %v4838_v28  ;;  %v930_v34 = vpop.f32.mrb[19].mxu1  ;;  %4072 = vmatmul.mubr.bf16.gmra.mrb[76].mxu0 %v1189_v26  ;;  %v1136_v36 = vmax.f32 %v936_v30, 0.0 }
 0x21c   :  { %v931_v35 = vadd.f32 %v4838_v28, %v930_v34  ;;  %v1134_v38 = vmax.f32 %v928_v32, 0.0 }
 0x21d   :  { %v1137_v37 = vmax.f32 %v939_v33, 0.0 }
 0x21e   :  { %v1135_v39 = vmax.f32 %v931_v35, 0.0 }
 0x21f   :  { %v1191_v40 = vpack.c.bf16 %v1137_v37, %v1136_v36 }
 0x220   :  { %v1190_v41 = vpack.c.bf16 %v1135_v39, %v1134_v38  ;;  %v4001_v42 = vpop.f32.mrb[20].mxu1 }
 0x221   :  { %v952_v43 = vadd.f32 %v4001_v42, %v4838_v28  ;;  %v943_v44 = vpop.f32.mrb[21].mxu1 }
 0x222   :  { %v944_v45 = vadd.f32 %v4838_v28, %v943_v44  ;;  %v4002_v46 = vpop.f32.mrb[22].mxu1  ;;  %4075 = vmatprep.mubr.bf16.mxu0 %v1190_v41 }
 0x223   :  { %v955_v47 = vadd.f32 %v4002_v46, %v4838_v28  ;;  %v946_v48 = vpop.f32.mrb[23].mxu1  ;;  %4076 = vmatmul.mubr.bf16.gmra.mrb[80].mxu0 %v1191_v40  ;;  %v1140_v51 = vmax.f32 %v952_v43, 0.0 }
 0x224   :  { %v947_v49 = vadd.f32 %v4838_v28, %v946_v48  ;;  %v1138_v53 = vmax.f32 %v944_v45, 0.0 }
 0x225   :  { %v1141_v52 = vmax.f32 %v955_v47, 0.0 }
 0x226   :  { %v1139_v54 = vmax.f32 %v947_v49, 0.0 }
 0x227   :  { %v1193_v55 = vpack.c.bf16 %v1141_v52, %v1140_v51 }
 0x228   :  { %v1192_v56 = vpack.c.bf16 %v1139_v54, %v1138_v53  ;;  %v4005_v57 = vpop.f32.mrb[24].mxu1 }
 0x229   :  { %v968_v58 = vadd.f32 %v4005_v57, %v4838_v28  ;;  %v959_v59 = vpop.f32.mrb[25].mxu1 }
 0x22a   :  { %v960_v60 = vadd.f32 %v4838_v28, %v959_v59  ;;  %v4006_v61 = vpop.f32.mrb[26].mxu1  ;;  %4079 = vmatprep.mubr.bf16.mxu0 %v1192_v56 }
 0x22b   :  { %v971_v62 = vadd.f32 %v4006_v61, %v4838_v28  ;;  %v962_v63 = vpop.f32.mrb[27].mxu1  ;;  %4080 = vmatmul.mubr.bf16.gmra.mrb[84].mxu0 %v1193_v55  ;;  %v1144_v1 = vmax.f32 %v968_v58, 0.0 }
 0x22c   :  { %v963_v0 = vadd.f32 %v4838_v28, %v962_v63  ;;  %v1142_v3 = vmax.f32 %v960_v60, 0.0 }
 0x22d   :  { %v1145_v2 = vmax.f32 %v971_v62, 0.0 }
 0x22e   :  { %v1143_v4 = vmax.f32 %v963_v0, 0.0 }
 0x22f   :  { %v1195_v5 = vpack.c.bf16 %v1145_v2, %v1144_v1 }
 0x230   :  { %v1194_v6 = vpack.c.bf16 %v1143_v4, %v1142_v3  ;;  %v4009_v7 = vpop.f32.mrb[28].mxu1 }
 0x231   :  { %v984_v8 = vadd.f32 %v4009_v7, %v4838_v28  ;;  %v975_v9 = vpop.f32.mrb[29].mxu1 }
 0x232   :  { %v976_v10 = vadd.f32 %v4838_v28, %v975_v9  ;;  %v4010_v11 = vpop.f32.mrb[30].mxu1  ;;  %4083 = vmatprep.mubr.bf16.mxu0 %v1194_v6 }
 0x233   :  { %v987_v12 = vadd.f32 %v4010_v11, %v4838_v28  ;;  %v978_v13 = vpop.f32.mrb[31].mxu1  ;;  %4084 = vmatmul.mubr.bf16.gmra.mrb[88].mxu0 %v1195_v5  ;;  %v1148_v15 = vmax.f32 %v984_v8, 0.0 }
 0x234   :  { %v979_v14 = vadd.f32 %v4838_v28, %v978_v13  ;;  %v1146_v17 = vmax.f32 %v976_v10, 0.0 }
 0x235   :  { %v1149_v16 = vmax.f32 %v987_v12, 0.0 }
 0x236   :  { %v1147_v18 = vmax.f32 %v979_v14, 0.0 }
 0x237   :  { %v1197_v19 = vpack.c.bf16 %v1149_v16, %v1148_v15 }
 0x238   :  { %v1196_v20 = vpack.c.bf16 %v1147_v18, %v1146_v17  ;;  %v4013_v21 = vpop.f32.mrb[32].mxu1 }
 0x239   :  { %v1000_v22 = vadd.f32 %v4013_v21, %v4838_v28  ;;  %v991_v23 = vpop.f32.mrb[33].mxu1 }
 0x23a   :  { %v992_v24 = vadd.f32 %v4838_v28, %v991_v23  ;;  %v4014_v25 = vpop.f32.mrb[34].mxu1  ;;  %4087 = vmatprep.mubr.bf16.mxu0 %v1196_v20 }
 0x23b   :  { %v1003_v26 = vadd.f32 %v4014_v25, %v4838_v28  ;;  %v994_v27 = vpop.f32.mrb[35].mxu1  ;;  %4088 = vmatmul.mubr.bf16.gmra.mrb[92].mxu0 %v1197_v19  ;;  %v1152_v30 = vmax.f32 %v1000_v22, 0.0 }
 0x23c   :  { %v995_v29 = vadd.f32 %v4838_v28, %v994_v27  ;;  %v1150_v32 = vmax.f32 %v992_v24, 0.0 }
 0x23d   :  { %v1153_v31 = vmax.f32 %v1003_v26, 0.0 }
 0x23e   :  { %v1151_v50 = vmax.f32 %v995_v29, 0.0 }
 0x23f   :  { %v1199_v33 = vpack.c.bf16 %v1153_v31, %v1152_v30 }
 0x240   :  { %v1198_v34 = vpack.c.bf16 %v1151_v50, %v1150_v32  ;;  %v4017_v35 = vpop.f32.mrb[36].mxu1 }
 0x241   :  { %v1016_v36 = vadd.f32 %v4017_v35, %v4838_v28  ;;  %v1007_v37 = vpop.f32.mrb[37].mxu1 }
 0x242   :  { %v1008_v38 = vadd.f32 %v4838_v28, %v1007_v37  ;;  %v4018_v39 = vpop.f32.mrb[38].mxu1  ;;  %4091 = vmatprep.mubr.bf16.mxu0 %v1198_v34 }
 0x243   :  { %v1019_v40 = vadd.f32 %v4018_v39, %v4838_v28  ;;  %v1010_v41 = vpop.f32.mrb[39].mxu1  ;;  %4092 = vmatmul.mubr.bf16.gmra.mrb[96].mxu0 %v1199_v33  ;;  %v1156_v43 = vmax.f32 %v1016_v36, 0.0 }
 0x244   :  { %v1011_v42 = vadd.f32 %v4838_v28, %v1010_v41  ;;  %v1154_v45 = vmax.f32 %v1008_v38, 0.0 }
 0x245   :  { %v1157_v44 = vmax.f32 %v1019_v40, 0.0 }
 0x246   :  { %v1155_v46 = vmax.f32 %v1011_v42, 0.0 }
 0x247   :  { %v1201_v47 = vpack.c.bf16 %v1157_v44, %v1156_v43 }
 0x248   :  { %v1200_v48 = vpack.c.bf16 %v1155_v46, %v1154_v45  ;;  %v4021_v49 = vpop.f32.mrb[40].mxu1 }
 0x249   :  { %v1032_v51 = vadd.f32 %v4021_v49, %v4838_v28  ;;  %v1023_v52 = vpop.f32.mrb[41].mxu1 }
 0x24a   :  { %v1024_v53 = vadd.f32 %v4838_v28, %v1023_v52  ;;  %v4022_v54 = vpop.f32.mrb[42].mxu1  ;;  %4095 = vmatprep.mubr.bf16.mxu0 %v1200_v48 }
 0x24b   :  { %v1035_v55 = vadd.f32 %v4022_v54, %v4838_v28  ;;  %v1026_v56 = vpop.f32.mrb[43].mxu1  ;;  %4096 = vmatmul.mubr.bf16.gmra.mrb[100].mxu0 %v1201_v47  ;;  %v1160_v58 = vmax.f32 %v1032_v51, 0.0 }
 0x24c   :  { %v1027_v57 = vadd.f32 %v4838_v28, %v1026_v56  ;;  %v1158_v60 = vmax.f32 %v1024_v53, 0.0  ;;  %v4433_v53 = vld [vmem:[#allocation5 + $0xf8] sm:$0xff]  }
 0x24d   :  { %v1161_v59 = vmax.f32 %v1035_v55, 0.0  ;;  %4137 = vmatprep.subr.bf16.mxu1 %v4433_v53 }
 0x24e   :  { %v1159_v61 = vmax.f32 %v1027_v57, 0.0  ;;  %4138 = vmatpush3.bf16.msra.mxu1 %v4433_v53  ;;  %v5001_v53 = vld [vmem:[#allocation2 + $0x98] sm:$0xff]  }
 0x24f   :  { %v1203_v62 = vpack.c.bf16 %v1161_v59, %v1160_v58 }
 0x250   :  { %v1202_v63 = vpack.c.bf16 %v1159_v61, %v1158_v60  ;;  %v4025_v0 = vpop.f32.mrb[44].mxu1 }
 0x251   :  { %v1048_v1 = vadd.f32 %v4025_v0, %v4838_v28  ;;  %v1039_v2 = vpop.f32.mrb[45].mxu1 }
 0x252   :  { %v1040_v3 = vadd.f32 %v4838_v28, %v1039_v2  ;;  %v4026_v4 = vpop.f32.mrb[46].mxu1  ;;  %4099 = vmatprep.mubr.bf16.mxu0 %v1202_v63 }
 0x253   :  { %v1051_v5 = vadd.f32 %v4026_v4, %v4838_v28  ;;  %v1042_v6 = vpop.f32.mrb[47].mxu1  ;;  %4100 = vmatmul.mubr.bf16.gmra.mrb[104].mxu0 %v1203_v62  ;;  %v1164_v8 = vmax.f32 %v1048_v1, 0.0 }
 0x254   :  { %v1043_v7 = vadd.f32 %v4838_v28, %v1042_v6  ;;  %v1162_v10 = vmax.f32 %v1040_v3, 0.0 }
 0x255   :  { %v1165_v9 = vmax.f32 %v1051_v5, 0.0 }
 0x256   :  { %v1163_v11 = vmax.f32 %v1043_v7, 0.0 }
 0x257   :  { %v1205_v12 = vpack.c.bf16 %v1165_v9, %v1164_v8  ;;  %v4904_v8 = vld [vmem:[#allocation2] sm:$0xff]  }
 0x258   :  { %v1204_v13 = vpack.c.bf16 %v1163_v11, %v1162_v10  ;;  %v4029_v14 = vpop.f32.mrb[48].mxu1  ;;  %v1584_v9 = vunpack.c.l.bf16 %v4904_v8  ;;  %v1585_v10 = vunpack.c.h.bf16 %v4904_v8  ;;  %v4908_v11 = vld [vmem:[#allocation2 + $0x8] sm:$0xff]  }
 0x259   :  { %v1064_v15 = vadd.f32 %v4029_v14, %v4838_v28  ;;  %v1055_v16 = vpop.f32.mrb[49].mxu1 }
 0x25a   :  { %v1056_v17 = vadd.f32 %v4838_v28, %v1055_v16  ;;  %v4030_v18 = vpop.f32.mrb[50].mxu1  ;;  %4103 = vmatprep.mubr.bf16.mxu0 %v1204_v13  ;;  %v4912_v13 = vld [vmem:[#allocation2 + $0x10] sm:$0xff]   ;;  %v4916_v16 = vld [vmem:[#allocation2 + $0x18] sm:$0xff]  }
 0x25b   :  { %v1067_v19 = vadd.f32 %v4030_v18, %v4838_v28  ;;  %v1058_v20 = vpop.f32.mrb[51].mxu1  ;;  %4104 = vmatmul.mubr.bf16.gmra.mrb[108].mxu0 %v1205_v12  ;;  %v1168_v22 = vmax.f32 %v1064_v15, 0.0  ;;  %v1586_v12 = vunpack.c.l.bf16 %v4908_v11 }
 0x25c   :  { %v1059_v21 = vadd.f32 %v4838_v28, %v1058_v20  ;;  %v1166_v24 = vmax.f32 %v1056_v17, 0.0 }
 0x25d   :  { %v1169_v23 = vmax.f32 %v1067_v19, 0.0  ;;  %v4920_v19 = vld [vmem:[#allocation2 + $0x20] sm:$0xff]  }
 0x25e   :  { %v1167_v25 = vmax.f32 %v1059_v21, 0.0 }
 0x25f   :  { %v1207_v26 = vpack.c.bf16 %v1169_v23, %v1168_v22  ;;  %v4924_v22 = vld [vmem:[#allocation2 + $0x28] sm:$0xff]  }
 0x260   :  { %v1206_v27 = vpack.c.bf16 %v1167_v25, %v1166_v24  ;;  %v4033_v29 = vpop.f32.mrb[52].mxu1  ;;  %v4928_v25 = vld [vmem:[#allocation2 + $0x30] sm:$0xff]  }
 0x261   :  { %v1080_v30 = vadd.f32 %v4033_v29, %v4838_v28  ;;  %v1071_v31 = vpop.f32.mrb[53].mxu1  ;;  %v4935_v29 = vld [vmem:[%s6127_s2 + $0x2] ss:$0 sm:$0xff] }
 0x262   :  { %v1072_v32 = vadd.f32 %v4838_v28, %v1071_v31  ;;  %v4034_v50 = vpop.f32.mrb[54].mxu1  ;;  %4107 = vmatprep.mubr.bf16.mxu0 %v1206_v27 }
 0x263   :  { %v1083_v33 = vadd.f32 %v4034_v50, %v4838_v28  ;;  %v1074_v34 = vpop.f32.mrb[55].mxu1  ;;  %4108 = vmatmul.mubr.bf16.gmra.mrb[112].mxu0 %v1207_v26  ;;  %v1172_v36 = vmax.f32 %v1080_v30, 0.0  ;;  %v4937_v30 = vld [vmem:[#allocation2 + $0x38] sm:$0xff]   ;;  %v4941_v50 = vld [vmem:[#allocation2 + $0x40] sm:$0xff]  }
 0x264   :  { %v1075_v35 = vadd.f32 %v4838_v28, %v1074_v34  ;;  %v1170_v38 = vmax.f32 %v1072_v32, 0.0  ;;  %v5041_v34 = vld [vmem:[#allocation2 + $0xc8] sm:$0xff]   ;;  %v5069_v26 = vld [vmem:[#allocation2 + $0xd8] sm:$0xff]  }
 0x265   :  { %v1173_v37 = vmax.f32 %v1083_v33, 0.0  ;;  %v4435_v32 = vld [vmem:[#allocation5 + $0x108] sm:$0xff]  }
 0x266   :  { %v1171_v39 = vmax.f32 %v1075_v35, 0.0  ;;  %v4945_v35 = vld [vmem:[#allocation2 + $0x48] sm:$0xff]  }
 0x267   :  { %v1209_v40 = vpack.c.bf16 %v1173_v37, %v1172_v36 }
 0x268   :  { %v1208_v41 = vpack.c.bf16 %v1171_v39, %v1170_v38  ;;  %v4037_v42 = vpop.f32.mrb[56].mxu1  ;;  %v4949_v38 = vld [vmem:[#allocation2 + $0x50] sm:$0xff]  }
 0x269   :  { %v1096_v43 = vadd.f32 %v4037_v42, %v4838_v28  ;;  %v1087_v44 = vpop.f32.mrb[57].mxu1  ;;  %v4953_v42 = vld [vmem:[#allocation2 + $0x58] sm:$0xff]  }
 0x26a   :  { %v1088_v45 = vadd.f32 %v4838_v28, %v1087_v44  ;;  %v4038_v46 = vpop.f32.mrb[58].mxu1  ;;  %4111 = vmatprep.mubr.bf16.mxu0 %v1208_v41  ;;  %v5023_v44 = vld [vmem:[#allocation2 + $0xb0] sm:$0xff]  }
 0x26b   :  { %v1099_v47 = vadd.f32 %v4038_v46, %v4838_v28  ;;  %v1090_v48 = vpop.f32.mrb[59].mxu1  ;;  %4112 = vmatmul.mubr.bf16.gmra.mrb[116].mxu0 %v1209_v40  ;;  %v1176_v51 = vmax.f32 %v1096_v43, 0.0  ;;  %v5005_v46 = vld [vmem:[#allocation2 + $0xa0] sm:$0xff]  }
 0x26c   :  { %v1091_v49 = vadd.f32 %v4838_v28, %v1090_v48  ;;  %v1174_v54 = vmax.f32 %v1088_v45, 0.0  ;;  %v4957_v45 = vld [vmem:[#allocation2 + $0x60] sm:$0xff]  }
 0x26d   :  { %v1177_v52 = vmax.f32 %v1099_v47, 0.0 }
 0x26e   :  { %v1175_v55 = vmax.f32 %v1091_v49, 0.0  ;;  %v5031_v49 = vld [vmem:[#allocation2 + $0xb8] sm:$0xff]  }
 0x26f   :  { %v1211_v56 = vpack.c.bf16 %v1177_v52, %v1176_v51  ;;  %v4964_v51 = vld [vmem:[#allocation2 + $0x68] sm:$0xff]  }
 0x270   :  { %v1210_v57 = vpack.c.bf16 %v1175_v55, %v1174_v54  ;;  %v4041_v58 = vpop.f32.mrb[60].mxu1 }
 0x271   :  { %v1112_v59 = vadd.f32 %v4041_v58, %v4838_v28  ;;  %v1103_v60 = vpop.f32.mrb[61].mxu1 }
 0x272   :  { %v1104_v61 = vadd.f32 %v4838_v28, %v1103_v60  ;;  %v4042_v62 = vpop.f32.mrb[62].mxu1  ;;  %4115 = vmatprep.mubr.bf16.mxu0 %v1210_v57  ;;  %v4997_v57 = vld [vmem:[#allocation2 + $0x90] sm:$0xff]  }
 0x273   :  { %v1115_v63 = vadd.f32 %v4042_v62, %v4838_v28  ;;  %v1106_v0 = vpop.f32.mrb[63].mxu1  ;;  %4116 = vmatmul.mubr.bf16.gmra.mrb[120].mxu0 %v1211_v56  ;;  %v1180_v2 = vmax.f32 %v1112_v59, 0.0  ;;  %v4971_v56 = vld [vmem:[#allocation2 + $0x70] sm:$0xff]   ;;  %v4979_v62 = vld [vmem:[#allocation2 + $0x78] sm:$0xff]  }
 0x274   :  { %v1107_v1 = vadd.f32 %v4838_v28, %v1106_v0  ;;  %v1178_v4 = vmax.f32 %v1104_v61, 0.0  ;;  %v1587_v28 = vunpack.c.h.bf16 %v4908_v11  ;;  %v1576_v0 = vlaneseq }
 0x275   :  { %v1181_v3 = vmax.f32 %v1115_v63, 0.0 }
 0x276   :  { %v1179_v5 = vmax.f32 %v1107_v1, 0.0 }
 0x277   :  { %v1213_v6 = vpack.c.bf16 %v1181_v3, %v1180_v2  ;;  %v4434_v3 = vld [vmem:[#allocation5 + $0x100] sm:$0xff]  }
 0x278   :  { %v1212_v7 = vpack.c.bf16 %v1179_v5, %v1178_v4  ;;  %v4987_v4 = vld [vmem:[#allocation2 + $0x80] sm:$0xff]   ;;  %4203 = vmatprep.subr.bf16.mxu0 %v4434_v3  ;;  %v5054_v5 = vld [vmem:[#allocation2 + $0xd0] sm:$0xff]  }
 0x279   :  { %4204 = vmatpush3.bf16.msra.mxu0 %v4434_v3 }
 0x27a   :  { %4119 = vmatprep.mubr.bf16.mxu0 %v1212_v7  ;;  %4205 = vmatprep.subr.bf16.mxu0 %v4435_v32 }
 0x27b   :  { %4120 = vmatmul.mubr.bf16.gmra.mrb[124].mxu0 %v1213_v6 }
 0x27d   :  { %4206 = vmatpush3.bf16.msra.mxu0 %v4435_v32 }
 0x2d6   :  { %v4061_v41 = vpop.f32.mrb[64].mxu0 }
 0x2d7   :  { %v4961_v47 = vadd.f32 %v4061_v41, %v4935_v29  ;;  %v1321_v48 = vpop.f32.mrb[65].mxu0 }
 0x2d8   :  { %v4969_v54 = vadd.f32 %v4935_v29, %v1321_v48  ;;  %v4062_v55 = vpop.f32.mrb[66].mxu0  ;;  %v4992_v48 = vld [vmem:[#allocation2 + $0x88] sm:$0xff]  }
 0x2d9   :  { %v1650_v59 = vmul.f32 0.5, %v4961_v47  ;;  %v4977_v60 = vadd.f32 %v4062_v55, %v4935_v29  ;;  %v1324_v61 = vpop.f32.mrb[67].mxu0 }
 0x2da   :  { %6165 = vst [vmem:[#allocation11_spill] sm:$0xff] %v4969_v54  ;;  %v1648_v1 = vmul.f32 0.5, %v4969_v54  ;;  %v4985_v2 = vadd.f32 %v4935_v29, %v1324_v61 }
 0x2db   :  { %6166 = vst [vmem:[#allocation12_spill] sm:$0xff] %v4977_v60  ;;  %v1716_v7 = vmul.f32 1.442695, %v1650_v59  ;;  %v1651_v41 = vmul.f32 0.5, %v4977_v60  ;;  %v1577_v59 = vand.u32 127, %v1576_v0 }
 0x2dc   :  { %6167 = vst [vmem:[#allocation13_spill] sm:$0xff] %v4985_v2  ;;  %v1712_v63 = vmul.f32 1.442695, %v1648_v1  ;;  %v1649_v58 = vmul.f32 0.5, %v4985_v2 }
 0x2dd   :  { %4482 = vpow2.f32 %v1716_v7  ;;  %v1718_v6 = vmul.f32 1.442695, %v1651_v41  ;;  %vm1578_vm0 = vcmp.ge.s32.totalorder %v1577_v59, 16  ;;  %vm1579_vm1 = vcmp.lt.s32.totalorder %v1577_v59, 24 }
 0x2de   :  { %4484 = vpow2.f32 %v1712_v63  ;;  %v1714_v1 = vmul.f32 1.442695, %v1649_v58  ;;  %v4065_v52 = vpop.f32.mrb[68].mxu0  ;;  %v5015_v63 = vld [vmem:[#allocation2 + $0xa8] sm:$0xff]   ;;  %vm1581_vm2 = vcmp.ge.s32.totalorder %v1577_v59, 24  ;;  %vm1582_vm3 = vcmp.lt.s32.totalorder %v1577_v59, 32  ;;  %vm5047_vm4 = vmand %vm1578_vm0, %vm1579_vm1 }
 0x2df   :  { %4486 = vpow2.f32 %v1718_v6  ;;  %v5009_v7 = vadd.f32 %v4065_v52, %v4935_v29  ;;  %v1337_v3 = vpop.f32.mrb[69].mxu0  ;;  %vm5059_vm5 = vmand %vm1581_vm2, %vm1582_vm3  ;;  %v1969_v32 = vsel %vm5047_vm4, %v4985_v2, 0.0 }
 0x2e0   :  { %4488 = vpow2.f32 %v1714_v1  ;;  %v5013_v55 = vadd.f32 %v4935_v29, %v1337_v3  ;;  %v4066_v58 = vpop.f32.mrb[70].mxu0 }
 0x2e1   :  { %6168 = vst [vmem:[#allocation14_spill] sm:$0xff] %v5009_v7  ;;  %v1654_v6 = vmul.f32 0.5, %v5009_v7  ;;  %v5021_v52 = vadd.f32 %v4066_v58, %v4935_v29  ;;  %v1340_v61 = vpop.f32.mrb[71].mxu0 }
 0x2e2   :  { %6169 = vst [vmem:[#allocation15_spill] sm:$0xff] %v5013_v55  ;;  %v1652_v3 = vmul.f32 0.5, %v5013_v55  ;;  %v5029_v41 = vadd.f32 %v4935_v29, %v1340_v61  ;;  %v5037_v61 = vld [vmem:[#allocation2 + $0xc0] sm:$0xff]  }
 0x2e3   :  { %6170 = vst [vmem:[#allocation16_spill] sm:$0xff] %v5021_v52  ;;  %v1724_v58 = vmul.f32 1.442695, %v1654_v6  ;;  %v1655_v40 = vmul.f32 0.5, %v5021_v52 }
 0x2e4   :  { %6171 = vst [vmem:[#allocation17_spill] sm:$0xff] %v5029_v41  ;;  %v1720_v39 = vmul.f32 1.442695, %v1652_v3  ;;  %v1653_v0 = vmul.f32 0.5, %v5029_v41 }
 0x2e5   :  { %4490 = vpow2.f32 %v1724_v58  ;;  %v1726_v1 = vmul.f32 1.442695, %v1655_v40 }
 0x2e6   :  { %4492 = vpow2.f32 %v1720_v39  ;;  %v1722_v43 = vmul.f32 1.442695, %v1653_v0  ;;  %v4069_v6 = vpop.f32.mrb[72].mxu0 }
 0x2e7   :  { %v4483_v36 = vpop.eup %4482  ;;  %4494 = vpow2.f32 %v1726_v1  ;;  %v5052_v58 = vadd.f32 %v4069_v6, %v4935_v29  ;;  %v1353_v39 = vpop.f32.mrb[73].mxu0 }
 0x2e8   :  { %v4485_v0 = vpop.eup %4484  ;;  %v1842_v3 = vmul.f32 %v4483_v36, %v1586_v12  ;;  %4496 = vpow2.f32 %v1722_v43  ;;  %v5066_v1 = vadd.f32 %v4935_v29, %v1353_v39  ;;  %v4070_v6 = vpop.f32.mrb[74].mxu0 }
 0x2e9   :  { %6174 = vst [vmem:[#allocation18_spill] sm:$0xff] %v5052_v58  ;;  %v4487_v31 = vpop.eup %4486  ;;  %v1658_v37 = vmul.f32 0.5, %v5052_v58  ;;  %v5074_v24 = vadd.f32 %v4070_v6, %v4935_v29  ;;  %v1356_v23 = vpop.f32.mrb[75].mxu0  ;;  %v1840_v27 = vmul.f32 %v4485_v0, %v1584_v9  ;;  %v1970_v6 = vsel %vm5047_vm4, %v4961_v47, 0.0 }
 0x2ea   :  { %6177 = vst [vmem:[#allocation19_spill] sm:$0xff] %v5066_v1  ;;  %v4489_v12 = vpop.eup %4488  ;;  %v1843_v43 = vmul.f32 %v4487_v31, %v1587_v28  ;;  %v1656_v39 = vmul.f32 0.5, %v5066_v1  ;;  %v1906_v59 = vsel %vm5059_vm5, %v1842_v3, 0.0  ;;  %v5091_v31 = vadd.f32 %v4935_v29, %v1356_v23 }
 0x2eb   :  { %6178 = vst [vmem:[#allocation20_spill] sm:$0xff] %v5074_v24  ;;  %v1732_v21 = vmul.f32 1.442695, %v1658_v37  ;;  %v1659_v20 = vmul.f32 0.5, %v5074_v24  ;;  %v1841_v9 = vmul.f32 %v4489_v12, %v1585_v10  ;;  %v1968_v3 = vsel %vm5047_vm4, %v4969_v54, 0.0 }
 0x2ec   :  { %v1907_v11 = vsel %vm5059_vm5, %v1843_v43, 0.0  ;;  %v1728_v28 = vmul.f32 1.442695, %v1656_v39  ;;  %6179 = vst [vmem:[#allocation21_spill] sm:$0xff] %v5091_v31  ;;  %v1971_v37 = vsel %vm5047_vm4, %v4977_v60, 0.0  ;;  %v1657_v23 = vmul.f32 0.5, %v5091_v31 }
 0x2ed   :  { %v1734_v0 = vmul.f32 1.442695, %v1659_v20  ;;  %v1904_v8 = vsel %vm5059_vm5, %v1840_v27, 0.0  ;;  %v1905_v10 = vsel %vm5059_vm5, %v1841_v9, 0.0  ;;  %v2034_v39 = vadd.f32 %v1970_v6, %v1906_v59 }
 0x2ee   :  { %4498 = vpow2.f32 %v1728_v28  ;;  %v4073_v43 = vpop.f32.mrb[76].mxu0  ;;  %v2035_v36 = vadd.f32 %v1971_v37, %v1907_v11  ;;  %v1730_v20 = vmul.f32 1.442695, %v1657_v23  ;;  %v2033_v2 = vadd.f32 %v1969_v32, %v1905_v10 }
 0x2ef   :  { %v4491_v12 = vpop.eup %4490  ;;  %4500 = vpow2.f32 %v1732_v21  ;;  %v5110_v18 = vadd.f32 %v4073_v43, %v4935_v29  ;;  %v1369_v15 = vpop.f32.mrb[77].mxu0  ;;  %v2032_v21 = vadd.f32 %v1968_v3, %v1904_v8  ;;  %v6183_v6 = vunpack.c.l.bf16 %v4912_v13  ;;  %v5121_v43 = vld [vmem:[#allocation2 + $0xe0] sm:$0xff]  }
 0x2f0   :  { %v4493_v17 = vpop.eup %4492  ;;  %4502 = vpow2.f32 %v1734_v0  ;;  %v5113_v28 = vadd.f32 %v4935_v29, %v1369_v15  ;;  %v4074_v14 = vpop.f32.mrb[78].mxu0  ;;  %v2097_v23 = vpack.c.bf16 %v2035_v36, %v2034_v39  ;;  %v6184_v8 = vunpack.c.l.bf16 %v4916_v16 }
 0x2f1   :  { %6180 = vst [vmem:[#allocation22_spill] sm:$0xff] %v5110_v18  ;;  %v4495_v27 = vpop.eup %4494  ;;  %v1662_v60 = vmul.f32 0.5, %v5110_v18  ;;  %v5117_v9 = vadd.f32 %v4074_v14, %v4935_v29  ;;  %v1372_v59 = vpop.f32.mrb[79].mxu0  ;;  %v1844_v11 = vmul.f32 %v4493_v17, %v6183_v6  ;;  %4504 = vpow2.f32 %v1730_v20 }
 0x2f2   :  { %6181 = vst [vmem:[#allocation23_spill] sm:$0xff] %v5113_v28  ;;  %v4497_v37 = vpop.eup %4496  ;;  %v1660_v15 = vmul.f32 0.5, %v5113_v28  ;;  %v5126_v32 = vadd.f32 %v4935_v29, %v1372_v59  ;;  %v1974_v14 = vsel %vm5047_vm4, %v5009_v7, 0.0  ;;  %v2096_v3 = vpack.c.bf16 %v2033_v2, %v2032_v21 }
 0x2f3   :  { %6182 = vst [vmem:[#allocation24_spill] sm:$0xff] %v5117_v9  ;;  %v1846_v17 = vmul.f32 %v4491_v12, %v6184_v8  ;;  %v1663_v6 = vmul.f32 0.5, %v5117_v9  ;;  %v6185_v20 = vunpack.c.h.bf16 %v4912_v13  ;;  %v1972_v36 = vsel %vm5047_vm4, %v5013_v55, 0.0 }
 0x2f4   :  { %v1736_v10 = vmul.f32 1.442695, %v1660_v15  ;;  %v1661_v0 = vmul.f32 0.5, %v5126_v32  ;;  %v1740_v39 = vmul.f32 1.442695, %v1662_v60  ;;  %4139 = vmatprep.mubr.bf16.mxu1 %v2096_v3  ;;  %v1908_v2 = vsel %vm5059_vm5, %v1844_v11, 0.0 }
 0x2f5   :  { %v1845_v54 = vmul.f32 %v4497_v37, %v6185_v20  ;;  %v6186_v59 = vunpack.c.h.bf16 %v4916_v16  ;;  %v1973_v21 = vsel %vm5047_vm4, %v5029_v41, 0.0  ;;  %4140 = vmatmul.mubr.bf16.vlgmr.msra.gmra.mrb[64].mxu1 %v2097_v23  ;;  %v2036_v8 = vadd.f32 %v1972_v36, %v1908_v2 }
 0x2f6   :  { %4506 = vpow2.f32 %v1736_v10  ;;  %v1738_v15 = vmul.f32 1.442695, %v1661_v0  ;;  %v4077_v13 = vpop.f32.mrb[80].mxu0  ;;  %v1910_v16 = vsel %vm5059_vm5, %v1846_v17, 0.0  ;;  %v1742_v20 = vmul.f32 1.442695, %v1663_v6 }
 0x2f7   :  { %v1847_v12 = vmul.f32 %v4495_v27, %v6186_v59  ;;  %v1909_v37 = vsel %vm5059_vm5, %v1845_v54, 0.0  ;;  %v5150_v60 = vadd.f32 %v4077_v13, %v4935_v29  ;;  %v1385_v3 = vpop.f32.mrb[81].mxu0  ;;  %v4436_v54 = vld [vmem:[#allocation5 + $0x110] sm:$0xff]   ;;  %v4437_v59 = vld [vmem:[#allocation5 + $0x118] sm:$0xff]   ;;  %v1975_v36 = vsel %vm5047_vm4, %v5021_v52, 0.0 }
 0x2f8   :  { %v2037_v11 = vadd.f32 %v1973_v21, %v1909_v37  ;;  %v4499_v27 = vpop.eup %4498  ;;  %4508 = vpow2.f32 %v1738_v15  ;;  %v5155_v10 = vadd.f32 %v4935_v29, %v1385_v3  ;;  %v4078_v0 = vpop.f32.mrb[82].mxu0  ;;  %4207 = vmatprep.subr.bf16.mxu0 %v4436_v54 }
 0x2f9   :  { %v1911_v23 = vsel %vm5059_vm5, %v1847_v12, 0.0  ;;  %v4501_v13 = vpop.eup %4500  ;;  %4510 = vpow2.f32 %v1740_v39  ;;  %v5163_v17 = vadd.f32 %v4078_v0, %v4935_v29  ;;  %v1388_v6 = vpop.f32.mrb[83].mxu0  ;;  %v2038_v12 = vadd.f32 %v1974_v14, %v1910_v16  ;;  %4208 = vmatpush3.bf16.msra.mxu0 %v4436_v54 }
 0x2fa   :  { %v2098_v2 = vpack.c.bf16 %v2037_v11, %v2036_v8  ;;  %v4503_v21 = vpop.eup %4502  ;;  %v1664_v15 = vmul.f32 0.5, %v5155_v10  ;;  %v5167_v37 = vadd.f32 %v4935_v29, %v1388_v6  ;;  %v2039_v3 = vadd.f32 %v1975_v36, %v1911_v23  ;;  %4209 = vmatprep.subr.bf16.mxu0 %v4437_v59  ;;  %v4438_v23 = vld [vmem:[#allocation5 + $0x120] sm:$0xff]  }
 0x2fb   :  { %v1978_v39 = vsel %vm5047_vm4, %v5052_v58, 0.0  ;;  %v1666_v0 = vmul.f32 0.5, %v5150_v60  ;;  %v6188_v8 = vunpack.c.l.bf16 %v4920_v19  ;;  %v4505_v52 = vpop.eup %4504  ;;  %4512 = vpow2.f32 %v1742_v20 }
 0x2fc   :  { %6187 = vst [vmem:[#allocation25_spill] sm:$0xff] %v5167_v37  ;;  %4143 = vmatprep.mubr.bf16.mxu1 %v2098_v2  ;;  %v1744_v6 = vmul.f32 1.442695, %v1664_v15  ;;  %v1665_v14 = vmul.f32 0.5, %v5167_v37  ;;  %v2099_v16 = vpack.c.bf16 %v2039_v3, %v2038_v12  ;;  %v1976_v36 = vsel %vm5047_vm4, %v5066_v1, 0.0 }
 0x2fd   :  { %v1848_v11 = vmul.f32 %v4499_v27, %v6188_v8  ;;  %v1667_v41 = vmul.f32 0.5, %v5163_v17  ;;  %v6189_v2 = vunpack.c.h.bf16 %v4920_v19  ;;  %v1979_v20 = vsel %vm5047_vm4, %v5074_v24, 0.0  ;;  %4210 = vmatpush3.bf16.msra.mxu0 %v4437_v59 }
 0x2fe   :  { %v1977_v54 = vsel %vm5047_vm4, %v5091_v31, 0.0  ;;  %v1746_v15 = vmul.f32 1.442695, %v1665_v14  ;;  %4144 = vmatmul.mubr.bf16.gmra.mrb[68].mxu1 %v2099_v16  ;;  %v4081_v12 = vpop.f32.mrb[84].mxu0  ;;  %v6190_v3 = vunpack.c.l.bf16 %v4924_v22  ;;  %v1748_v1 = vmul.f32 1.442695, %v1666_v0  ;;  %4211 = vmatprep.subr.bf16.mxu0 %v4438_v23 }
 0x2ff   :  { %v1849_v58 = vmul.f32 %v4505_v52, %v6189_v2  ;;  %v1912_v27 = vsel %vm5059_vm5, %v1848_v11, 0.0  ;;  %v5194_v19 = vadd.f32 %v4081_v12, %v4935_v29  ;;  %v1401_v52 = vpop.f32.mrb[85].mxu0  ;;  %v6191_v2 = vunpack.c.h.bf16 %v4924_v22  ;;  %v4439_v0 = vld [vmem:[#allocation5 + $0x128] sm:$0xff]  }
 0x300   :  { %v1850_v8 = vmul.f32 %v4501_v13, %v6190_v3  ;;  %v4507_v55 = vpop.eup %4506  ;;  %4514 = vpow2.f32 %v1744_v6  ;;  %v5201_v14 = vadd.f32 %v4935_v29, %v1401_v52  ;;  %v4082_v16 = vpop.f32.mrb[86].mxu0  ;;  %v2040_v31 = vadd.f32 %v1976_v36, %v1912_v27 }
 0x301   :  { %v1913_v11 = vsel %vm5059_vm5, %v1849_v58, 0.0  ;;  %v1851_v24 = vmul.f32 %v4503_v21, %v6191_v2  ;;  %v1750_v12 = vmul.f32 1.442695, %v1667_v41  ;;  %4516 = vpow2.f32 %v1746_v15  ;;  %v1404_v3 = vpop.f32.mrb[87].mxu0  ;;  %4212 = vmatpush3.bf16.msra.mxu0 %v4438_v23  ;;  %v4440_v2 = vld [vmem:[#allocation5 + $0x130] sm:$0xff]  }
 0x302   :  { %v2041_v13 = vadd.f32 %v1977_v54, %v1913_v11  ;;  %v1914_v58 = vsel %vm5059_vm5, %v1850_v8, 0.0  ;;  %v4509_v59 = vpop.eup %4508  ;;  %v1670_v21 = vmul.f32 0.5, %v5194_v19  ;;  %v1668_v6 = vmul.f32 0.5, %v5201_v14  ;;  %4213 = vmatprep.subr.bf16.mxu0 %v4439_v0 }
 0x303   :  { %v1915_v22 = vsel %vm5059_vm5, %v1851_v24, 0.0  ;;  %v5210_v52 = vadd.f32 %v4935_v29, %v1404_v3  ;;  %v4511_v27 = vpop.eup %4510  ;;  %v1982_v41 = vsel %vm5047_vm4, %v5110_v18, 0.0  ;;  %v1980_v54 = vsel %vm5047_vm4, %v5113_v28, 0.0 }
 0x304   :  { %v2100_v36 = vpack.c.bf16 %v2041_v13, %v2040_v31  ;;  %v1983_v24 = vsel %vm5047_vm4, %v5117_v9, 0.0  ;;  %4518 = vpow2.f32 %v1748_v1  ;;  %v5222_v15 = vadd.f32 %v4082_v16, %v4935_v29 }
 0x305   :  { %6192 = vst [vmem:[#allocation26_spill] sm:$0xff] %v5210_v52  ;;  %v1669_v31 = vmul.f32 0.5, %v5210_v52  ;;  %v2042_v8 = vadd.f32 %v1978_v39, %v1914_v58  ;;  %v2043_v11 = vadd.f32 %v1979_v20, %v1915_v22  ;;  %v1981_v13 = vsel %vm5047_vm4, %v5126_v32, 0.0  ;;  %v4513_v16 = vpop.eup %4512  ;;  %4214 = vmatpush3.bf16.msra.mxu0 %v4439_v0 }
 0x306   :  { %6193 = vst [vmem:[#allocation27_spill] sm:$0xff] %v5222_v15  ;;  %4147 = vmatprep.mubr.bf16.mxu1 %v2100_v36  ;;  %v1752_v3 = vmul.f32 1.442695, %v1668_v6  ;;  %v6194_v28 = vunpack.c.l.bf16 %v4928_v25  ;;  %v6195_v1 = vunpack.c.h.bf16 %v4928_v25  ;;  %4520 = vpow2.f32 %v1750_v12  ;;  %v4085_v39 = vpop.f32.mrb[88].mxu0  ;;  %4215 = vmatprep.subr.bf16.mxu0 %v4440_v2 }
 0x307   :  { %v1756_v18 = vmul.f32 1.442695, %v1670_v21  ;;  %v1754_v7 = vmul.f32 1.442695, %v1669_v31  ;;  %v2101_v36 = vpack.c.bf16 %v2043_v11, %v2042_v8  ;;  %v5233_v20 = vadd.f32 %v4085_v39, %v4935_v29  ;;  %v1417_v58 = vpop.f32.mrb[89].mxu0  ;;  %v4441_v8 = vld [vmem:[#allocation5 + $0x138] sm:$0xff]  }
 0x308   :  { %v1852_v9 = vmul.f32 %v4507_v55, %v6194_v28  ;;  %v1853_v23 = vmul.f32 %v4509_v59, %v6195_v1  ;;  %v6196_v55 = vunpack.c.l.bf16 %v4937_v30  ;;  %v1671_v28 = vmul.f32 0.5, %v5222_v15  ;;  %v4086_v59 = vpop.f32.mrb[90].mxu0 }
 0x309   :  { %4148 = vmatmul.mubr.bf16.gmra.mrb[72].mxu1 %v2101_v36  ;;  %v5243_v12 = vadd.f32 %v4935_v29, %v1417_v58  ;;  %4522 = vpow2.f32 %v1752_v3  ;;  %v1420_v0 = vpop.f32.mrb[91].mxu0  ;;  %v6198_v11 = vunpack.c.h.bf16 %v4937_v30  ;;  %v1987_v58 = vsel %vm5047_vm4, %v5163_v17, 0.0  ;;  %4216 = vmatpush3.bf16.msra.mxu0 %v4440_v2 }
 0x30a   :  { %v1916_v22 = vsel %vm5059_vm5, %v1852_v9, 0.0  ;;  %v1917_v6 = vsel %vm5059_vm5, %v1853_v23, 0.0  ;;  %v1854_v25 = vmul.f32 %v4511_v27, %v6196_v55  ;;  %v1986_v9 = vsel %vm5047_vm4, %v5150_v60, 0.0  ;;  %v4515_v23 = vpop.eup %4514  ;;  %4217 = vmatprep.subr.bf16.mxu0 %v4441_v8 }
 0x30b   :  { %6197 = vst [vmem:[#allocation28_spill] sm:$0xff] %v5243_v12  ;;  %v2044_v21 = vadd.f32 %v1980_v54, %v1916_v22  ;;  %v2045_v31 = vadd.f32 %v1981_v13, %v1917_v6  ;;  %v1984_v27 = vsel %vm5047_vm4, %v5155_v10, 0.0  ;;  %v1855_v1 = vmul.f32 %v4513_v16, %v6198_v11  ;;  %v4517_v39 = vpop.eup %4516 }
 0x30c   :  { %4524 = vpow2.f32 %v1754_v7  ;;  %v1672_v54 = vmul.f32 0.5, %v5243_v12  ;;  %v5255_v13 = vadd.f32 %v4935_v29, %v1420_v0  ;;  %v1985_v3 = vsel %vm5047_vm4, %v5167_v37, 0.0 }
 0x30d   :  { %v2102_v36 = vpack.c.bf16 %v2045_v31, %v2044_v21  ;;  %4526 = vpow2.f32 %v1756_v18  ;;  %v1918_v30 = vsel %vm5059_vm5, %v1854_v25, 0.0  ;;  %v1758_v7 = vmul.f32 1.442695, %v1671_v28  ;;  %4218 = vmatpush3.bf16.msra.mxu0 %v4441_v8 }
 0x30e   :  { %6199 = vst [vmem:[#allocation29_spill] sm:$0xff] %v5255_v13  ;;  %v1674_v16 = vmul.f32 0.5, %v5233_v20  ;;  %v1673_v22 = vmul.f32 0.5, %v5255_v13  ;;  %v1919_v6 = vsel %vm5059_vm5, %v1855_v1, 0.0  ;;  %v4519_v55 = vpop.eup %4518  ;;  %v1760_v21 = vmul.f32 1.442695, %v1672_v54 }
 0x30f   :  { %4151 = vmatprep.mubr.bf16.mxu1 %v2102_v36  ;;  %v5270_v31 = vadd.f32 %v4086_v59, %v4935_v29  ;;  %v2046_v18 = vadd.f32 %v1982_v41, %v1918_v30  ;;  %v2047_v0 = vadd.f32 %v1983_v24, %v1919_v6  ;;  %v4089_v28 = vpop.f32.mrb[92].mxu0  ;;  %v6200_v11 = vunpack.c.l.bf16 %v4941_v50 }
 0x310   :  { %v6201_v36 = vunpack.c.h.bf16 %v4941_v50  ;;  %v1762_v59 = vmul.f32 1.442695, %v1673_v22  ;;  %v1433_v6 = vpop.f32.mrb[93].mxu0  ;;  %v4521_v2 = vpop.eup %4520  ;;  %4528 = vpow2.f32 %v1758_v7  ;;  %v6203_v8 = vunpack.c.l.bf16 %v4945_v35 }
 0x311   :  { %v1856_v1 = vmul.f32 %v4515_v23, %v6200_v11  ;;  %v2103_v30 = vpack.c.bf16 %v2047_v0, %v2046_v18  ;;  %v5289_v25 = vadd.f32 %v4935_v29, %v1433_v6  ;;  %v4090_v23 = vpop.f32.mrb[94].mxu0  ;;  %v1764_v11 = vmul.f32 1.442695, %v1674_v16 }
 0x312   :  { %v1857_v54 = vmul.f32 %v4517_v39, %v6201_v36  ;;  %4530 = vpow2.f32 %v1760_v21  ;;  %v1675_v36 = vmul.f32 0.5, %v5270_v31  ;;  %v1436_v22 = vpop.f32.mrb[95].mxu0  ;;  %v1858_v18 = vmul.f32 %v4519_v55, %v6203_v8 }
 0x313   :  { %6202 = vst [vmem:[#allocation30_spill] sm:$0xff] %v5289_v25  ;;  %v1920_v50 = vsel %vm5059_vm5, %v1856_v1, 0.0  ;;  %4152 = vmatmul.mubr.bf16.gmra.mrb[76].mxu1 %v2103_v30  ;;  %v5299_v7 = vadd.f32 %v4089_v28, %v4935_v29  ;;  %v5302_v0 = vadd.f32 %v4935_v29, %v1436_v22  ;;  %v4523_v41 = vpop.eup %4522  ;;  %4532 = vpow2.f32 %v1762_v59 }
 0x314   :  { %v1921_v39 = vsel %vm5059_vm5, %v1857_v54, 0.0  ;;  %v2048_v6 = vadd.f32 %v1984_v27, %v1920_v50  ;;  %v1676_v16 = vmul.f32 0.5, %v5289_v25  ;;  %v5306_v21 = vadd.f32 %v4090_v23, %v4935_v29 }
 0x315   :  { %6204 = vst [vmem:[#allocation31_spill] sm:$0xff] %v5299_v7  ;;  %6205 = vst [vmem:[#allocation32_spill] sm:$0xff] %v5302_v0  ;;  %v2049_v1 = vadd.f32 %v1985_v3, %v1921_v39  ;;  %v6207_v54 = vunpack.c.h.bf16 %v4945_v35  ;;  %v1677_v3 = vmul.f32 0.5, %v5302_v0  ;;  %v1766_v50 = vmul.f32 1.442695, %v1675_v36 }
 0x316   :  { %6206 = vst [vmem:[#allocation33_spill] sm:$0xff] %v5306_v21  ;;  %v4525_v24 = vpop.eup %4524  ;;  %v1922_v35 = vsel %vm5059_vm5, %v1858_v18, 0.0  ;;  %4534 = vpow2.f32 %v1764_v11  ;;  %v1678_v39 = vmul.f32 0.5, %v5299_v7  ;;  %v4093_v8 = vpop.f32.mrb[96].mxu0  ;;  %v6208_v18 = vunpack.c.l.bf16 %v4949_v38 }
 0x317   :  { %v1859_v30 = vmul.f32 %v4521_v2, %v6207_v54  ;;  %v2104_v28 = vpack.c.bf16 %v2049_v1, %v2048_v6  ;;  %v4527_v59 = vpop.eup %4526  ;;  %v2050_v22 = vadd.f32 %v1986_v9, %v1922_v35  ;;  %v1768_v6 = vmul.f32 1.442695, %v1676_v16  ;;  %v1449_v54 = vpop.f32.mrb[97].mxu0 }
 0x318   :  { %v1679_v1 = vmul.f32 0.5, %v5306_v21  ;;  %v1860_v23 = vmul.f32 %v4523_v41, %v6208_v18  ;;  %v1770_v55 = vmul.f32 1.442695, %v1677_v3  ;;  %v5338_v37 = vadd.f32 %v4935_v29, %v1449_v54  ;;  %v4094_v9 = vpop.f32.mrb[98].mxu0 }
 0x319   :  { %v1923_v2 = vsel %vm5059_vm5, %v1859_v30, 0.0  ;;  %4155 = vmatprep.mubr.bf16.mxu1 %v2104_v28  ;;  %v6209_v30 = vunpack.c.h.bf16 %v4949_v38  ;;  %v5335_v28 = vadd.f32 %v4093_v8, %v4935_v29  ;;  %4536 = vpow2.f32 %v1766_v50  ;;  %v1452_v16 = vpop.f32.mrb[99].mxu0 }
 0x31a   :  { %v2051_v36 = vadd.f32 %v1987_v58, %v1923_v2  ;;  %6210 = vst [vmem:[#allocation34_spill] sm:$0xff] %v5338_v37  ;;  %v1993_v58 = vsel %vm5047_vm4, %v5255_v13, 0.0  ;;  %v1924_v41 = vsel %vm5059_vm5, %v1860_v23, 0.0  ;;  %v6211_v38 = vunpack.c.l.bf16 %v4953_v42  ;;  %v4529_v3 = vpop.eup %4528 }
 0x31b   :  { %v1861_v11 = vmul.f32 %v4525_v24, %v6209_v30  ;;  %v1772_v35 = vmul.f32 1.442695, %v1678_v39  ;;  %v1680_v2 = vmul.f32 0.5, %v5338_v37  ;;  %4538 = vpow2.f32 %v1768_v6 }
 0x31c   :  { %v2105_v27 = vpack.c.bf16 %v2051_v36, %v2050_v22  ;;  %v1862_v24 = vmul.f32 %v4527_v59, %v6211_v38  ;;  %v5349_v22 = vadd.f32 %v4935_v29, %v1452_v16  ;;  %v4531_v36 = vpop.eup %4530  ;;  %v1774_v23 = vmul.f32 1.442695, %v1679_v1 }
 0x31d   :  { %v1925_v50 = vsel %vm5059_vm5, %v1861_v11, 0.0  ;;  %4540 = vpow2.f32 %v1770_v55  ;;  %v6213_v39 = vsel %vm5047_vm4, %v5201_v14, 0.0  ;;  %v6214_v18 = vsel %vm5047_vm4, %v5210_v52, 0.0  ;;  %v4533_v11 = vpop.eup %4532 }
 0x31e   :  { %4156 = vmatmul.mubr.bf16.gmra.mrb[80].mxu1 %v2105_v27  ;;  %6212 = vst [vmem:[#allocation35_spill] sm:$0xff] %v5349_v22  ;;  %v1682_v27 = vmul.f32 0.5, %v5335_v28  ;;  %v2052_v54 = vadd.f32 %v6213_v39, %v1924_v41  ;;  %v2053_v30 = vadd.f32 %v6214_v18, %v1925_v50  ;;  %v1776_v6 = vmul.f32 1.442695, %v1680_v2  ;;  %v4097_v50 = vpop.f32.mrb[100].mxu0 }
 0x31f   :  { %v5369_v16 = vadd.f32 %v4094_v9, %v4935_v29  ;;  %v6216_v1 = vunpack.c.h.bf16 %v4953_v42  ;;  %v1926_v38 = vsel %vm5059_vm5, %v1862_v24, 0.0  ;;  %4542 = vpow2.f32 %v1772_v35  ;;  %v1465_v42 = vpop.f32.mrb[101].mxu0 }
 0x320   :  { %v1681_v39 = vmul.f32 0.5, %v5349_v22  ;;  %v2106_v8 = vpack.c.bf16 %v2053_v30, %v2052_v54  ;;  %4544 = vpow2.f32 %v1774_v23  ;;  %v5382_v2 = vadd.f32 %v4097_v50, %v4935_v29  ;;  %v4535_v35 = vpop.eup %4534 }
 0x321   :  { %6215 = vst [vmem:[#allocation36_spill] sm:$0xff] %v5369_v16  ;;  %v1863_v55 = vmul.f32 %v4529_v3, %v6216_v1  ;;  %v6217_v3 = vunpack.c.l.bf16 %v4957_v45  ;;  %v6218_v18 = vsel %vm5047_vm4, %v5194_v19, 0.0  ;;  %v6219_v23 = vsel %vm5047_vm4, %v5222_v15, 0.0 }
 0x322   :  { %4159 = vmatprep.mubr.bf16.mxu1 %v2106_v8  ;;  %v2054_v1 = vadd.f32 %v6218_v18, %v1926_v38  ;;  %v5395_v30 = vadd.f32 %v4935_v29, %v1465_v42  ;;  %v6221_v50 = vunpack.c.h.bf16 %v4957_v45  ;;  %v1780_v8 = vmul.f32 1.442695, %v1682_v27 }
 0x323   :  { %v1927_v9 = vsel %vm5059_vm5, %v1863_v55, 0.0  ;;  %v1864_v24 = vmul.f32 %v4531_v36, %v6217_v3  ;;  %v4098_v55 = vpop.f32.mrb[102].mxu0  ;;  %4546 = vpow2.f32 %v1776_v6  ;;  %v1683_v38 = vmul.f32 0.5, %v5369_v16 }
 0x324   :  { %v2055_v54 = vadd.f32 %v6219_v23, %v1927_v9  ;;  %6220 = vst [vmem:[#allocation37_spill] sm:$0xff] %v5395_v30  ;;  %v1865_v41 = vmul.f32 %v4533_v11, %v6221_v50  ;;  %v1468_v3 = vpop.f32.mrb[103].mxu0  ;;  %v1778_v18 = vmul.f32 1.442695, %v1681_v39  ;;  %v4537_v23 = vpop.eup %4536  ;;  %v1686_v11 = vmul.f32 0.5, %v5382_v2 }
 0x325   :  { %v5404_v9 = vadd.f32 %v4935_v29, %v1468_v3  ;;  %v1928_v42 = vsel %vm5059_vm5, %v1864_v24, 0.0  ;;  %v1684_v27 = vmul.f32 0.5, %v5395_v30  ;;  %v4539_v50 = vpop.eup %4538  ;;  %4548 = vpow2.f32 %v1780_v8 }
 0x326   :  { %v2107_v59 = vpack.c.bf16 %v2055_v54, %v2054_v1  ;;  %v1929_v6 = vsel %vm5059_vm5, %v1865_v41, 0.0  ;;  %v5425_v54 = vadd.f32 %v4098_v55, %v4935_v29  ;;  %v6224_v41 = vsel %vm5047_vm4, %v5243_v12, 0.0  ;;  %v4101_v52 = vpop.f32.mrb[104].mxu0 }
 0x327   :  { %6222 = vst [vmem:[#allocation38_spill] sm:$0xff] %v5404_v9  ;;  %v2056_v3 = vadd.f32 %v6224_v41, %v1928_v42  ;;  %v2057_v24 = vadd.f32 %v1993_v58, %v1929_v6  ;;  %v6225_v45 = vunpack.c.l.bf16 %v4964_v51  ;;  %v4541_v1 = vpop.eup %4540  ;;  %4550 = vpow2.f32 %v1778_v18  ;;  %v1481_v13 = vpop.f32.mrb[105].mxu0 }
 0x328   :  { %4160 = vmatmul.mubr.bf16.gmra.mrb[84].mxu1 %v2107_v59  ;;  %6223 = vst [vmem:[#allocation39_spill] sm:$0xff] %v5425_v54  ;;  %v1782_v59 = vmul.f32 1.442695, %v1683_v38  ;;  %v1685_v55 = vmul.f32 0.5, %v5404_v9  ;;  %v6226_v8 = vunpack.c.h.bf16 %v4964_v51  ;;  %v1788_v15 = vmul.f32 1.442695, %v1686_v11 }
 0x329   :  { %v1866_v39 = vmul.f32 %v4535_v35, %v6225_v45  ;;  %v1784_v12 = vmul.f32 1.442695, %v1684_v27  ;;  %v2108_v42 = vpack.c.bf16 %v2057_v24, %v2056_v3  ;;  %v4543_v58 = vpop.eup %4542  ;;  %v1687_v6 = vmul.f32 0.5, %v5425_v54  ;;  %v4102_v18 = vpop.f32.mrb[106].mxu0 }
 0x32a   :  { %v1867_v36 = vmul.f32 %v4537_v23, %v6226_v8  ;;  %v5446_v38 = vadd.f32 %v4935_v29, %v1481_v13  ;;  %v6228_v51 = vunpack.c.l.bf16 %v4971_v56  ;;  %v4545_v45 = vpop.eup %4544  ;;  %v6229_v11 = vsel %vm5047_vm4, %v5233_v20, 0.0  ;;  %v1484_v3 = vpop.f32.mrb[107].mxu0 }
 0x32b   :  { %v1930_v41 = vsel %vm5059_vm5, %v1866_v39, 0.0  ;;  %4163 = vmatprep.mubr.bf16.mxu1 %v2108_v42  ;;  %v6230_v39 = vsel %vm5047_vm4, %v5270_v31, 0.0  ;;  %v5462_v13 = vadd.f32 %v4102_v18, %v4935_v29  ;;  %4552 = vpow2.f32 %v1782_v59 }
 0x32c   :  { %v1931_v35 = vsel %vm5059_vm5, %v1867_v36, 0.0  ;;  %6227 = vst [vmem:[#allocation40_spill] sm:$0xff] %v5446_v38  ;;  %v1868_v23 = vmul.f32 %v4539_v50, %v6228_v51  ;;  %v2058_v27 = vadd.f32 %v6229_v11, %v1930_v41  ;;  %v5459_v36 = vadd.f32 %v4101_v52, %v4935_v29 }
 0x32d   :  { %v2059_v24 = vadd.f32 %v6230_v39, %v1931_v35  ;;  %v1786_v8 = vmul.f32 1.442695, %v1685_v55  ;;  %v6231_v42 = vunpack.c.h.bf16 %v4971_v56  ;;  %v4547_v51 = vpop.eup %4546  ;;  %4554 = vpow2.f32 %v1784_v12 }
 0x32e   :  { %v1688_v18 = vmul.f32 0.5, %v5446_v38  ;;  %4556 = vpow2.f32 %v1788_v15  ;;  %v5477_v11 = vadd.f32 %v4935_v29, %v1484_v3  ;;  %v1932_v56 = vsel %vm5059_vm5, %v1868_v23, 0.0 }
 0x32f   :  { %v1869_v41 = vmul.f32 %v4541_v1, %v6231_v42  ;;  %v2109_v35 = vpack.c.bf16 %v2059_v24, %v2058_v27  ;;  %v1790_v1 = vmul.f32 1.442695, %v1687_v6  ;;  %v1690_v12 = vmul.f32 0.5, %v5459_v36  ;;  %v4105_v42 = vpop.f32.mrb[108].mxu0 }
 0x330   :  { %6232 = vst [vmem:[#allocation41_spill] sm:$0xff] %v5477_v11  ;;  %v1691_v55 = vmul.f32 0.5, %v5462_v13  ;;  %4558 = vpow2.f32 %v1786_v8  ;;  %v6233_v15 = vsel %vm5047_vm4, %v5289_v25, 0.0  ;;  %v6234_v24 = vsel %vm5047_vm4, %v5302_v0, 0.0  ;;  %v1497_v52 = vpop.f32.mrb[109].mxu0 }
 0x331   :  { %4164 = vmatmul.mubr.bf16.gmra.mrb[88].mxu1 %v2109_v35  ;;  %v1933_v27 = vsel %vm5059_vm5, %v1869_v41, 0.0  ;;  %v2060_v39 = vadd.f32 %v6233_v15, %v1932_v56  ;;  %v6235_v6 = vunpack.c.l.bf16 %v4979_v62  ;;  %v4549_v35 = vpop.eup %4548  ;;  %v1792_v59 = vmul.f32 1.442695, %v1688_v18  ;;  %v4106_v18 = vpop.f32.mrb[110].mxu0 }
 0x332   :  { %v2061_v23 = vadd.f32 %v6234_v24, %v1933_v27  ;;  %v6236_v50 = vunpack.c.h.bf16 %v4979_v62  ;;  %v5498_v8 = vadd.f32 %v4105_v42, %v4935_v29  ;;  %v6237_v56 = vunpack.c.l.bf16 %v4987_v4  ;;  %v4551_v25 = vpop.eup %4550 }
 0x333   :  { %v1870_v3 = vmul.f32 %v4543_v58, %v6235_v6  ;;  %v1689_v0 = vmul.f32 0.5, %v5477_v11  ;;  %v5506_v24 = vadd.f32 %v4935_v29, %v1497_v52  ;;  %4560 = vpow2.f32 %v1790_v1  ;;  %v1500_v6 = vpop.f32.mrb[111].mxu0 }
 0x334   :  { %v1871_v41 = vmul.f32 %v4545_v45, %v6236_v50  ;;  %v1872_v15 = vmul.f32 %v4547_v51, %v6237_v56  ;;  %v2110_v27 = vpack.c.bf16 %v2061_v23, %v2060_v39  ;;  %v1796_v62 = vmul.f32 1.442695, %v1690_v12 }
 0x335   :  { %v1934_v58 = vsel %vm5059_vm5, %v1870_v3, 0.0  ;;  %v1798_v45 = vmul.f32 1.442695, %v1691_v55  ;;  %v6238_v51 = vsel %vm5047_vm4, %v5299_v7, 0.0  ;;  %v6239_v23 = vsel %vm5047_vm4, %v5306_v21, 0.0 }
 0x336   :  { %v1935_v50 = vsel %vm5059_vm5, %v1871_v41, 0.0  ;;  %4167 = vmatprep.mubr.bf16.mxu1 %v2110_v27  ;;  %v2062_v39 = vadd.f32 %v6238_v51, %v1934_v58  ;;  %v1694_v3 = vmul.f32 0.5, %v5498_v8  ;;  %v5520_v1 = vadd.f32 %v4106_v18, %v4935_v29  ;;  %v4553_v27 = vpop.eup %4552 }
 0x337   :  { %v2063_v52 = vadd.f32 %v6239_v23, %v1935_v50  ;;  %v1692_v12 = vmul.f32 0.5, %v5506_v24  ;;  %v5524_v55 = vadd.f32 %v4935_v29, %v1500_v6  ;;  %v6241_v42 = vunpack.c.h.bf16 %v4987_v4  ;;  %v4555_v51 = vpop.eup %4554 }
 0x338   :  { %v1936_v56 = vsel %vm5059_vm5, %v1872_v15, 0.0  ;;  %v2005_v58 = vsel %vm5047_vm4, %v5404_v9, 0.0  ;;  %4562 = vpow2.f32 %v1792_v59  ;;  %v1794_v50 = vmul.f32 1.442695, %v1689_v0  ;;  %v4557_v15 = vpop.eup %4556 }
 0x339   :  { %6240 = vst [vmem:[#allocation42_spill] sm:$0xff] %v5524_v55  ;;  %v1873_v41 = vmul.f32 %v4551_v25, %v6241_v42  ;;  %v2111_v18 = vpack.c.bf16 %v2063_v52, %v2062_v39  ;;  %4564 = vpow2.f32 %v1796_v62  ;;  %v1695_v4 = vmul.f32 0.5, %v5520_v1  ;;  %v4109_v52 = vpop.f32.mrb[112].mxu0 }
 0x33a   :  { %v1804_v6 = vmul.f32 1.442695, %v1694_v3  ;;  %v1693_v23 = vmul.f32 0.5, %v5524_v55  ;;  %v6242_v0 = vsel %vm5047_vm4, %v5338_v37, 0.0  ;;  %v6243_v62 = vsel %vm5047_vm4, %v5349_v22, 0.0  ;;  %v1513_v9 = vpop.f32.mrb[113].mxu0  ;;  %v4559_v21 = vpop.eup %4558 }
 0x33b   :  { %v1937_v25 = vsel %vm5059_vm5, %v1873_v41, 0.0  ;;  %4168 = vmatmul.mubr.bf16.gmra.mrb[92].mxu1 %v2111_v18  ;;  %v2064_v59 = vadd.f32 %v6242_v0, %v1936_v56  ;;  %4566 = vpow2.f32 %v1798_v45  ;;  %v1800_v42 = vmul.f32 1.442695, %v1692_v12  ;;  %v5555_v56 = vld [vmem:[%s6127_s2 + $0x2] ss:$0 sm:$0xff]  ;;  %v4110_v45 = vpop.f32.mrb[114].mxu0 }
 0x33c   :  { %v2065_v39 = vadd.f32 %v6243_v62, %v1937_v25  ;;  %v6244_v41 = vunpack.c.l.bf16 %v4992_v48  ;;  %v6245_v3 = vunpack.c.h.bf16 %v4992_v48  ;;  %4568 = vpow2.f32 %v1794_v50 }
 0x33d   :  { %v5558_v25 = vadd.f32 %v5555_v56, %v4109_v52  ;;  %v6246_v12 = vunpack.c.l.bf16 %v4997_v57  ;;  %v5567_v50 = vadd.f32 %v5555_v56, %v1513_v9  ;;  %4570 = vpow2.f32 %v1804_v6 }
 0x33e   :  { %v1874_v29 = vmul.f32 %v4549_v35, %v6244_v41  ;;  %v1875_v18 = vmul.f32 %v4553_v27, %v6245_v3  ;;  %v2112_v7 = vpack.c.bf16 %v2065_v39, %v2064_v59  ;;  %v1806_v35 = vmul.f32 1.442695, %v1695_v4  ;;  %v1516_v59 = vpop.f32.mrb[115].mxu0  ;;  %v4561_v4 = vpop.eup %4560 }
 0x33f   :  { %v1876_v0 = vmul.f32 %v4555_v51, %v6246_v12  ;;  %v1802_v62 = vmul.f32 1.442695, %v1693_v23  ;;  %v6247_v39 = vsel %vm5047_vm4, %v5335_v28, 0.0  ;;  %v6248_v51 = vsel %vm5047_vm4, %v5369_v16, 0.0 }
 0x340   :  { %v1938_v48 = vsel %vm5059_vm5, %v1874_v29, 0.0  ;;  %v1939_v27 = vsel %vm5059_vm5, %v1875_v18, 0.0  ;;  %4171 = vmatprep.mubr.bf16.mxu1 %v2112_v7  ;;  %4572 = vpow2.f32 %v1800_v42  ;;  %v5581_v6 = vadd.f32 %v5555_v56, %v4110_v45 }
 0x341   :  { %v2066_v52 = vadd.f32 %v6247_v39, %v1938_v48  ;;  %v2067_v29 = vadd.f32 %v6248_v51, %v1939_v27  ;;  %v5584_v7 = vadd.f32 %v5555_v56, %v1516_v59  ;;  %v1698_v41 = vmul.f32 0.5, %v5558_v25  ;;  %v4113_v59 = vpop.f32.mrb[116].mxu0 }
 0x342   :  { %6249 = vst [vmem:[#allocation43_spill] sm:$0xff] %v5581_v6  ;;  %v6251_v3 = vunpack.c.h.bf16 %v4997_v57  ;;  %v1940_v12 = vsel %vm5059_vm5, %v1876_v0, 0.0  ;;  %v2009_v42 = vsel %vm5047_vm4, %v5477_v11, 0.0  ;;  %4574 = vpow2.f32 %v1806_v35  ;;  %v4563_v27 = vpop.eup %4562 }
 0x343   :  { %6250 = vst [vmem:[#allocation44_spill] sm:$0xff] %v5584_v7  ;;  %v2113_v23 = vpack.c.bf16 %v2067_v29, %v2066_v52  ;;  %v1696_v45 = vmul.f32 0.5, %v5567_v50  ;;  %4576 = vpow2.f32 %v1802_v62  ;;  %v4565_v39 = vpop.eup %4564  ;;  %v1697_v52 = vmul.f32 0.5, %v5584_v7  ;;  %v1529_v62 = vpop.f32.mrb[117].mxu0 }
 0x344   :  { %v1877_v18 = vmul.f32 %v4559_v21, %v6251_v3  ;;  %v1699_v21 = vmul.f32 0.5, %v5581_v6  ;;  %v6252_v35 = vsel %vm5047_vm4, %v5395_v30, 0.0  ;;  %v6253_v3 = vunpack.c.l.bf16 %v5001_v53  ;;  %v4114_v22 = vpop.f32.mrb[118].mxu0 }
 0x345   :  { %4172 = vmatmul.mubr.bf16.gmra.mrb[96].mxu1 %v2113_v23  ;;  %v2068_v51 = vadd.f32 %v6252_v35, %v1940_v12  ;;  %v1812_v23 = vmul.f32 1.442695, %v1698_v41  ;;  %v6254_v48 = vunpack.c.h.bf16 %v5001_v53  ;;  %v5617_v11 = vadd.f32 %v5555_v56, %v1529_v62  ;;  %v4567_v16 = vpop.eup %4566  ;;  %v1532_v12 = vpop.f32.mrb[119].mxu0 }
 0x346   :  { %v1941_v0 = vsel %vm5059_vm5, %v1877_v18, 0.0  ;;  %v1878_v57 = vmul.f32 %v4557_v15, %v6253_v3  ;;  %v5614_v18 = vadd.f32 %v5555_v56, %v4113_v59  ;;  %v1808_v37 = vmul.f32 1.442695, %v1696_v45 }
 0x347   :  { %v2069_v29 = vadd.f32 %v2005_v58, %v1941_v0  ;;  %v1879_v9 = vmul.f32 %v4561_v4, %v6254_v48  ;;  %6255 = vst [vmem:[#allocation45_spill] sm:$0xff] %v5617_v11  ;;  %v6256_v15 = vunpack.c.l.bf16 %v5005_v46  ;;  %v4569_v0 = vpop.eup %4568  ;;  %v1814_v53 = vmul.f32 1.442695, %v1699_v21 }
 0x348   :  { %v1942_v58 = vsel %vm5059_vm5, %v1878_v57, 0.0  ;;  %v1702_v48 = vmul.f32 0.5, %v5614_v18  ;;  %v5627_v59 = vadd.f32 %v5555_v56, %v4114_v22  ;;  %v1810_v35 = vmul.f32 1.442695, %v1697_v52 }
 0x349   :  { %v2114_v30 = vpack.c.bf16 %v2069_v29, %v2068_v51  ;;  %v1880_v41 = vmul.f32 %v4563_v27, %v6256_v15  ;;  %v1943_v4 = vsel %vm5059_vm5, %v1879_v9, 0.0  ;;  %v6257_v27 = vsel %vm5047_vm4, %v5382_v2, 0.0  ;;  %v4571_v51 = vpop.eup %4570 }
 0x34a   :  { %v2070_v57 = vadd.f32 %v6257_v27, %v1942_v58  ;;  %v6258_v9 = vsel %vm5047_vm4, %v5425_v54, 0.0  ;;  %4578 = vpow2.f32 %v1812_v23  ;;  %v1700_v29 = vmul.f32 0.5, %v5617_v11  ;;  %v4573_v52 = vpop.eup %4572 }
 0x34b   :  { %4175 = vmatprep.mubr.bf16.mxu1 %v2114_v30  ;;  %v2071_v21 = vadd.f32 %v6258_v9, %v1943_v4  ;;  %v5645_v30 = vadd.f32 %v5555_v56, %v1532_v12  ;;  %4580 = vpow2.f32 %v1808_v37  ;;  %v6260_v62 = vunpack.c.h.bf16 %v5005_v46  ;;  %v4117_v9 = vpop.f32.mrb[120].mxu0 }
 0x34c   :  { %v1944_v15 = vsel %vm5059_vm5, %v1880_v41, 0.0  ;;  %4582 = vpow2.f32 %v1814_v53  ;;  %v1820_v4 = vmul.f32 1.442695, %v1702_v48  ;;  %v1703_v27 = vmul.f32 0.5, %v5627_v59  ;;  %v4575_v22 = vpop.eup %4574 }
 0x34d   :  { %6259 = vst [vmem:[#allocation46_spill] sm:$0xff] %v5645_v30  ;;  %v2115_v3 = vpack.c.bf16 %v2071_v21, %v2070_v57  ;;  %v1881_v58 = vmul.f32 %v4569_v0, %v6260_v62  ;;  %v1701_v23 = vmul.f32 0.5, %v5645_v30  ;;  %v2013_v12 = vsel %vm5047_vm4, %v5524_v55, 0.0  ;;  %v1545_v0 = vpop.f32.mrb[121].mxu0  ;;  %v4577_v53 = vpop.eup %4576 }
 0x34e   :  { %4584 = vpow2.f32 %v1810_v35  ;;  %v6261_v37 = vunpack.c.l.bf16 %v5015_v63  ;;  %v1816_v48 = vmul.f32 1.442695, %v1700_v29  ;;  %v6262_v57 = vsel %vm5047_vm4, %v5446_v38, 0.0  ;;  %v4118_v35 = vpop.f32.mrb[122].mxu0 }
 0x34f   :  { %4176 = vmatmul.mubr.bf16.gmra.mrb[100].mxu1 %v2115_v3  ;;  %v1945_v46 = vsel %vm5059_vm5, %v1881_v58, 0.0  ;;  %v2072_v21 = vadd.f32 %v6262_v57, %v1944_v15  ;;  %v6263_v45 = vunpack.c.h.bf16 %v5015_v63  ;;  %v1818_v3 = vmul.f32 1.442695, %v1701_v23  ;;  %v1548_v29 = vpop.f32.mrb[123].mxu0 }
 0x350   :  { %v1882_v41 = vmul.f32 %v4565_v39, %v6261_v37  ;;  %v2073_v62 = vadd.f32 %v2009_v42, %v1945_v46  ;;  %v5669_v54 = vadd.f32 %v5555_v56, %v1545_v0  ;;  %v5672_v39 = vadd.f32 %v5555_v56, %v4118_v35 }
 0x351   :  { %v1883_v55 = vmul.f32 %v4567_v16, %v6263_v45  ;;  %4586 = vpow2.f32 %v1820_v4  ;;  %v1822_v37 = vmul.f32 1.442695, %v1703_v27  ;;  %v6264_v63 = vsel %vm5047_vm4, %v5459_v36, 0.0 }
 0x352   :  { %v1946_v58 = vsel %vm5059_vm5, %v1882_v41, 0.0  ;;  %v2116_v38 = vpack.c.bf16 %v2073_v62, %v2072_v21  ;;  %v6265_v45 = vsel %vm5047_vm4, %v5462_v13, 0.0  ;;  %v5685_v23 = vadd.f32 %v5555_v56, %v4117_v9 }
 0x353   :  { %v1947_v42 = vsel %vm5059_vm5, %v1883_v55, 0.0  ;;  %v2074_v16 = vadd.f32 %v6264_v63, %v1946_v58  ;;  %v1704_v4 = vmul.f32 0.5, %v5669_v54  ;;  %4588 = vpow2.f32 %v1816_v48  ;;  %v4121_v58 = vpop.f32.mrb[124].mxu0 }
 0x354   :  { %v2075_v15 = vadd.f32 %v6265_v45, %v1947_v42  ;;  %4179 = vmatprep.mubr.bf16.mxu1 %v2116_v38  ;;  %v1707_v55 = vmul.f32 0.5, %v5672_v39  ;;  %v5693_v46 = vadd.f32 %v5555_v56, %v1548_v29  ;;  %4590 = vpow2.f32 %v1818_v3  ;;  %v4579_v21 = vpop.eup %4578 }
 0x355   :  { %v1824_v0 = vmul.f32 1.442695, %v1704_v4  ;;  %v6266_v57 = vunpack.c.l.bf16 %v5023_v44  ;;  %v2016_v62 = vsel %vm5047_vm4, %v5567_v50, 0.0  ;;  %4592 = vpow2.f32 %v1822_v37  ;;  %v4581_v29 = vpop.eup %4580  ;;  %v1561_v37 = vpop.f32.mrb[125].mxu0 }
 0x356   :  { %v2117_v41 = vpack.c.bf16 %v2075_v15, %v2074_v16  ;;  %v1705_v48 = vmul.f32 0.5, %v5693_v46  ;;  %v6267_v38 = vunpack.c.h.bf16 %v5023_v44  ;;  %v1706_v3 = vmul.f32 0.5, %v5685_v23  ;;  %v4583_v15 = vpop.eup %4582 }
 0x357   :  { %v1884_v9 = vmul.f32 %v4573_v52, %v6266_v57  ;;  %v6268_v52 = vunpack.c.l.bf16 %v5031_v49  ;;  %v6269_v16 = vunpack.c.h.bf16 %v5031_v49  ;;  %4594 = vpow2.f32 %v1824_v0 }
 0x358   :  { %v1885_v35 = vmul.f32 %v4577_v53, %v6267_v38  ;;  %4180 = vmatmul.mubr.bf16.gmra.mrb[104].mxu1 %v2117_v41  ;;  %v1830_v4 = vmul.f32 1.442695, %v1707_v55  ;;  %v1826_v44 = vmul.f32 1.442695, %v1705_v48  ;;  %v4122_v41 = vpop.f32.mrb[126].mxu0  ;;  %v4585_v57 = vpop.eup %4584  ;;  %v6271_v55 = vsel %vm5047_vm4, %v5498_v8, 0.0 }
 0x359   :  { %v1948_v42 = vsel %vm5059_vm5, %v1884_v9, 0.0  ;;  %v1886_v63 = vmul.f32 %v4571_v51, %v6268_v52  ;;  %v1887_v45 = vmul.f32 %v4575_v22, %v6269_v16  ;;  %v6270_v9 = vsel %vm5047_vm4, %v5506_v24, 0.0  ;;  %v1564_v22 = vpop.f32.mrb[127].mxu0 }
 0x35a   :  { %v1949_v53 = vsel %vm5059_vm5, %v1885_v35, 0.0  ;;  %v2076_v38 = vadd.f32 %v6270_v9, %v1948_v42  ;;  %4596 = vpow2.f32 %v1826_v44  ;;  %v6272_v48 = vsel %vm5047_vm4, %v5520_v1, 0.0 }
 0x35b   :  { %v2077_v27 = vadd.f32 %v2013_v12, %v1949_v53  ;;  %v1950_v49 = vsel %vm5059_vm5, %v1886_v63, 0.0  ;;  %v1951_v51 = vsel %vm5059_vm5, %v1887_v45, 0.0  ;;  %v5729_v12 = vadd.f32 %v5555_v56, %v4121_v58  ;;  %v4587_v45 = vpop.eup %4586 }
 0x35c   :  { %v2078_v0 = vadd.f32 %v6271_v55, %v1950_v49  ;;  %v2079_v35 = vadd.f32 %v6272_v48, %v1951_v51  ;;  %v5732_v52 = vadd.f32 %v5555_v56, %v1561_v37  ;;  %v5735_v63 = vadd.f32 %v5555_v56, %v4122_v41 }
 0x35d   :  { %v2118_v42 = vpack.c.bf16 %v2077_v27, %v2076_v38  ;;  %v5738_v16 = vadd.f32 %v5555_v56, %v1564_v22  ;;  %v2019_v44 = vsel %vm5047_vm4, %v5581_v6, 0.0  ;;  %v2017_v58 = vsel %vm5047_vm4, %v5584_v7, 0.0  ;;  %v4589_v38 = vpop.eup %4588 }
 0x35e   :  { %v1828_v53 = vmul.f32 1.442695, %v1706_v3  ;;  %v6273_v27 = vunpack.c.l.bf16 %v5037_v61  ;;  %v2020_v41 = vsel %vm5047_vm4, %v5617_v11, 0.0  ;;  %4598 = vpow2.f32 %v1830_v4 }
 0x35f   :  { %4183 = vmatprep.mubr.bf16.mxu1 %v2118_v42  ;;  %v2119_v56 = vpack.c.bf16 %v2079_v35, %v2078_v0  ;;  %v1708_v9 = vmul.f32 0.5, %v5732_v52  ;;  %v1710_v49 = vmul.f32 0.5, %v5729_v12  ;;  %v1711_v51 = vmul.f32 0.5, %v5735_v63 }
 0x360   :  { %v1888_v37 = vmul.f32 %v4581_v29, %v6273_v27  ;;  %v1709_v22 = vmul.f32 0.5, %v5738_v16  ;;  %v6274_v3 = vunpack.c.h.bf16 %v5037_v61  ;;  %v4591_v29 = vpop.eup %4590  ;;  %v2021_v48 = vsel %vm5047_vm4, %v5645_v30, 0.0 }
 0x361   :  { %4184 = vmatmul.mubr.bf16.gmra.mrb[108].mxu1 %v2119_v56  ;;  %v1832_v4 = vmul.f32 1.442695, %v1708_v9  ;;  %v6275_v35 = vunpack.c.l.bf16 %v5041_v34  ;;  %v4593_v27 = vpop.eup %4592  ;;  %4600 = vpow2.f32 %v1828_v53  ;;  %v6276_v7 = vunpack.c.h.bf16 %v5041_v34 }
 0x362   :  { %v1889_v55 = vmul.f32 %v4585_v57, %v6274_v3  ;;  %v1952_v0 = vsel %vm5059_vm5, %v1888_v37, 0.0  ;;  %v1834_v11 = vmul.f32 1.442695, %v1709_v22  ;;  %v4595_v9 = vpop.eup %4594  ;;  %v1836_v37 = vmul.f32 1.442695, %v1710_v49 }
 0x363   :  { %v1890_v42 = vmul.f32 %v4579_v21, %v6275_v35  ;;  %v2080_v57 = vadd.f32 %v2016_v62, %v1952_v0  ;;  %4602 = vpow2.f32 %v1832_v4  ;;  %v1891_v30 = vmul.f32 %v4583_v15, %v6276_v7 }
 0x364   :  { %v1953_v61 = vsel %vm5059_vm5, %v1889_v55, 0.0  ;;  %v1838_v6 = vmul.f32 1.442695, %v1711_v51  ;;  %v6277_v21 = vunpack.c.l.bf16 %v5054_v5  ;;  %v6278_v53 = vunpack.c.h.bf16 %v5054_v5  ;;  %v4597_v15 = vpop.eup %4596 }
 0x365   :  { %v2081_v3 = vadd.f32 %v2017_v58, %v1953_v61  ;;  %v1954_v56 = vsel %vm5059_vm5, %v1890_v42, 0.0  ;;  %4604 = vpow2.f32 %v1834_v11  ;;  %v1955_v62 = vsel %vm5059_vm5, %v1891_v30, 0.0 }
 0x366   :  { %v1892_v35 = vmul.f32 %v4589_v38, %v6277_v21  ;;  %v1893_v22 = vmul.f32 %v4591_v29, %v6278_v53  ;;  %v6279_v34 = vsel %vm5047_vm4, %v5558_v25, 0.0  ;;  %v2083_v58 = vadd.f32 %v2019_v44, %v1955_v62 }
 0x367   :  { %v2120_v55 = vpack.c.bf16 %v2081_v3, %v2080_v57  ;;  %v2082_v7 = vadd.f32 %v6279_v34, %v1954_v56  ;;  %v6280_v5 = vunpack.c.h.bf16 %v5069_v26  ;;  %v6281_v30 = vunpack.c.l.bf16 %v5069_v26  ;;  %v4640_v56 = vld [vmem:[#allocation2 + $0xe8] sm:$0xff]  }
 0x368   :  { %v1956_v49 = vsel %vm5059_vm5, %v1892_v35, 0.0  ;;  %v1957_v38 = vsel %vm5059_vm5, %v1893_v22, 0.0  ;;  %v6282_v0 = vunpack.c.l.bf16 %v5121_v43  ;;  %4606 = vpow2.f32 %v1838_v6  ;;  %v4599_v3 = vpop.eup %4598  ;;  %v4641_v35 = vld [vmem:[#allocation2 + $0xf0] sm:$0xff]  }
 0x369   :  { %v1895_v11 = vmul.f32 %v4593_v27, %v6280_v5  ;;  %4187 = vmatprep.mubr.bf16.mxu1 %v2120_v55  ;;  %v2084_v51 = vadd.f32 %v2020_v41, %v1956_v49  ;;  %v2085_v29 = vadd.f32 %v2021_v48, %v1957_v38  ;;  %v1894_v4 = vmul.f32 %v4587_v45, %v6281_v30 }
 0x36a   :  { %v1896_v42 = vmul.f32 %v4595_v9, %v6282_v0  ;;  %v2121_v44 = vpack.c.bf16 %v2083_v58, %v2082_v7  ;;  %v6283_v61 = vunpack.c.h.bf16 %v5121_v43  ;;  %v1643_v21 = vunpack.c.h.bf16 %v4640_v56  ;;  %v4642_v0 = vld [vmem:[#allocation2 + $0xf8] sm:$0xff]  }
 0x36b   :  { %v1644_v53 = vunpack.c.l.bf16 %v4641_v35  ;;  %v2122_v27 = vpack.c.bf16 %v2085_v29, %v2084_v51  ;;  %v1959_v41 = vsel %vm5059_vm5, %v1895_v11, 0.0  ;;  %v2025_v26 = vsel %vm5047_vm4, %v5693_v46, 0.0  ;;  %v4601_v55 = vpop.eup %4600 }
 0x36c   :  { %v1897_v57 = vmul.f32 %v4597_v15, %v6283_v61  ;;  %4608 = vpow2.f32 %v1836_v37  ;;  %4188 = vmatmul.mubr.bf16.gmra.mrb[112].mxu1 %v2121_v44  ;;  %v1960_v6 = vsel %vm5059_vm5, %v1896_v42, 0.0  ;;  %v1642_v45 = vunpack.c.l.bf16 %v4640_v56 }
 0x36d   :  { %v2023_v48 = vsel %vm5047_vm4, %v5627_v59, 0.0  ;;  %4191 = vmatprep.mubr.bf16.mxu1 %v2122_v27  ;;  %v1958_v9 = vsel %vm5059_vm5, %v1894_v4, 0.0  ;;  %v1645_v62 = vunpack.c.h.bf16 %v4641_v35  ;;  %v2024_v37 = vsel %vm5047_vm4, %v5669_v54, 0.0  ;;  %v4603_v7 = vpop.eup %4602 }
 0x36e   :  { %v1961_v43 = vsel %vm5059_vm5, %v1897_v57, 0.0  ;;  %v2087_v34 = vadd.f32 %v2023_v48, %v1959_v41  ;;  %v2022_v15 = vsel %vm5047_vm4, %v5614_v18, 0.0  ;;  %v2088_v58 = vadd.f32 %v2024_v37, %v1960_v6 }
 0x36f   :  { %v2089_v22 = vadd.f32 %v2025_v26, %v1961_v43  ;;  %v1899_v49 = vmul.f32 %v4599_v3, %v1643_v21  ;;  %v2086_v38 = vadd.f32 %v2022_v15, %v1958_v9  ;;  %v1900_v5 = vmul.f32 %v4603_v7, %v1644_v53  ;;  %v4605_v11 = vpop.eup %4604 }
 0x370   :  { %v1898_v29 = vmul.f32 %v4601_v55, %v1642_v45  ;;  %v1901_v4 = vmul.f32 %v4605_v11, %v1645_v62  ;;  %v1647_v42 = vunpack.c.h.bf16 %v4642_v0  ;;  %v2029_v57 = vsel %vm5047_vm4, %v5738_v16, 0.0  ;;  %v5845_v11 = vld [vmem:[%s6127_s2 + $0x3] ss:$0 sm:$0xff] }
 0x371   :  { %v2124_v51 = vpack.c.bf16 %v2089_v22, %v2088_v58  ;;  %v2123_v30 = vpack.c.bf16 %v2087_v34, %v2086_v38  ;;  %v1963_v44 = vsel %vm5059_vm5, %v1899_v49, 0.0  ;;  %v1964_v3 = vsel %vm5059_vm5, %v1900_v5, 0.0  ;;  %v4442_v5 = vld [vmem:[#allocation5 + $0x140] sm:$0xff]  }
 0x372   :  { %v4607_v61 = vpop.eup %4606  ;;  %v1965_v56 = vsel %vm5059_vm5, %v1901_v4, 0.0  ;;  %v1646_v21 = vunpack.c.l.bf16 %v4642_v0  ;;  %v2027_v35 = vsel %vm5047_vm4, %v5672_v39, 0.0  ;;  %v1962_v53 = vsel %vm5059_vm5, %v1898_v29, 0.0  ;;  %4283 = vmatprep.subr.bf16.mxu1 %v4442_v5 }
 0x373   :  { %v2093_v27 = vadd.f32 %v2029_v57, %v1965_v56  ;;  %v2028_v26 = vsel %vm5047_vm4, %v5732_v52, 0.0  ;;  %v2091_v6 = vadd.f32 %v2027_v35, %v1963_v44  ;;  %v2026_v43 = vsel %vm5047_vm4, %v5685_v23, 0.0  ;;  %4284 = vmatpush3.bf16.msra.mxu1 %v4442_v5  ;;  %v4443_v57 = vld [vmem:[#allocation5 + $0x148] sm:$0xff]  }
 0x374   :  { %4192 = vmatmul.mubr.bf16.gmra.mrb[116].mxu1 %v2123_v30  ;;  %v2092_v45 = vadd.f32 %v2028_v26, %v1964_v3  ;;  %v1903_v48 = vmul.f32 %v4607_v61, %v1647_v42  ;;  %v2090_v9 = vadd.f32 %v2026_v43, %v1962_v53  ;;  %v2031_v34 = vsel %vm5047_vm4, %v5735_v63, 0.0  ;;  %4285 = vmatprep.subr.bf16.mxu1 %v4443_v57 }
 0x375   :  { %4195 = vmatprep.mubr.bf16.mxu1 %v2124_v51  ;;  %v2030_v58 = vsel %vm5047_vm4, %v5729_v12, 0.0 }
 0x376   :  { %v4609_v41 = vpop.eup %4608  ;;  %v2126_v22 = vpack.c.bf16 %v2093_v27, %v2092_v45  ;;  %v2125_v62 = vpack.c.bf16 %v2091_v6, %v2090_v9  ;;  %v1967_v37 = vsel %vm5059_vm5, %v1903_v48, 0.0 }
 0x377   :  { %v1902_v55 = vmul.f32 %v4609_v41, %v1646_v21  ;;  %v2095_v15 = vadd.f32 %v2031_v34, %v1967_v37  ;;  %4286 = vmatpush3.bf16.msra.mxu1 %v4443_v57 }
 0x379   :  { %v1966_v7 = vsel %vm5059_vm5, %v1902_v55, 0.0  ;;  %v4444_v55 = vld [vmem:[#allocation5 + $0x150] sm:$0xff]  }
 0x37a   :  { %v2094_v49 = vadd.f32 %v2030_v58, %v1966_v7  ;;  %4287 = vmatprep.subr.bf16.mxu1 %v4444_v55  ;;  %v4446_v58 = vld [vmem:[#allocation5 + $0x160] sm:$0xff]  }
 0x37b   :  { %4288 = vmatpush3.bf16.msra.mxu1 %v4444_v55 }
 0x37c   :  { %4196 = vmatmul.mubr.bf16.gmra.mrb[120].mxu1 %v2125_v62  ;;  %v2127_v38 = vpack.c.bf16 %v2095_v15, %v2094_v49  ;;  %v4445_v62 = vld [vmem:[#allocation5 + $0x158] sm:$0xff]  }
 0x37d   :  { %4199 = vmatprep.mubr.bf16.mxu1 %v2126_v22  ;;  %4289 = vmatprep.subr.bf16.mxu1 %v4445_v62 }
 0x37f   :  { %4290 = vmatpush3.bf16.msra.mxu1 %v4445_v62 }
 0x380   :  { %4291 = vmatprep.subr.bf16.mxu1 %v4446_v58 }
 0x383   :  { %4292 = vmatpush3.bf16.msra.mxu1 %v4446_v58 }
 0x384   :  { %4200 = vmatmul.mubr.bf16.gmra.mrb[124].mxu1 %v2127_v38 }
 0x3c8   :  { %v4141_v51 = vpop.f32.mrb[64].mxu1 }
 0x3c9   :  { %v2244_v33 = vadd.f32 %v4141_v51, %v5845_v11  ;;  %v2235_v29 = vpop.f32.mrb[65].mxu1 }
 0x3ca   :  { %v2236_v30 = vadd.f32 %v5845_v11, %v2235_v29  ;;  %v4142_v4 = vpop.f32.mrb[66].mxu1 }
 0x3cb   :  { %v2247_v40 = vadd.f32 %v4142_v4, %v5845_v11  ;;  %v2238_v0 = vpop.f32.mrb[67].mxu1  ;;  %v2492_v44 = vmax.f32 %v2244_v33, 0.0  ;;  %v4447_v4 = vld [vmem:[#allocation5 + $0x168] sm:$0xff]  }
 0x3cc   :  { %v2239_v42 = vadd.f32 %v5845_v11, %v2238_v0  ;;  %v2490_v3 = vmax.f32 %v2236_v30, 0.0  ;;  %4293 = vmatprep.subr.bf16.mxu1 %v4447_v4 }
 0x3cd   :  { %v2493_v61 = vmax.f32 %v2247_v40, 0.0  ;;  %4294 = vmatpush3.bf16.msra.mxu1 %v4447_v4 }
 0x3ce   :  { %v2491_v56 = vmax.f32 %v2239_v42, 0.0 }
 0x3cf   :  { %v2555_v21 = vpack.c.bf16 %v2493_v61, %v2492_v44 }
 0x3d0   :  { %v2554_v35 = vpack.c.bf16 %v2491_v56, %v2490_v3  ;;  %v4448_v3 = vld [vmem:[#allocation5 + $0x170] sm:$0xff]  }
 0x3d1   :  { %v4145_v53 = vpop.f32.mrb[68].mxu1  ;;  %4295 = vmatprep.subr.bf16.mxu1 %v4448_v3 }
 0x3d2   :  { %v2260_v27 = vadd.f32 %v4145_v53, %v5845_v11  ;;  %v2251_v41 = vpop.f32.mrb[69].mxu1  ;;  %4219 = vmatprep.mubr.bf16.mxu0 %v2554_v35  ;;  %4296 = vmatpush3.bf16.msra.mxu1 %v4448_v3 }
 0x3d3   :  { %v2252_v26 = vadd.f32 %v5845_v11, %v2251_v41  ;;  %v4146_v6 = vpop.f32.mrb[70].mxu1  ;;  %4220 = vmatmul.mubr.bf16.vlgmr.msra.gmra.mrb[128].mxu0 %v2555_v21 }
 0x3d4   :  { %v2263_v43 = vadd.f32 %v4146_v6, %v5845_v11  ;;  %v2254_v45 = vpop.f32.mrb[71].mxu1  ;;  %v2496_v9 = vmax.f32 %v2260_v27, 0.0 }
 0x3d5   :  { %v2255_v48 = vadd.f32 %v5845_v11, %v2254_v45  ;;  %v2494_v37 = vmax.f32 %v2252_v26, 0.0  ;;  %v4449_v26 = vld [vmem:[#allocation5 + $0x178] sm:$0xff]  }
 0x3d6   :  { %v2497_v22 = vmax.f32 %v2263_v43, 0.0  ;;  %4297 = vmatprep.subr.bf16.mxu1 %v4449_v26 }
 0x3d7   :  { %v2495_v34 = vmax.f32 %v2255_v48, 0.0  ;;  %4298 = vmatpush3.bf16.msra.mxu1 %v4449_v26 }
 0x3d8   :  { %v2557_v7 = vpack.c.bf16 %v2497_v22, %v2496_v9 }
 0x3d9   :  { %v2556_v15 = vpack.c.bf16 %v2495_v34, %v2494_v37 }
 0x3db   :  { %4223 = vmatprep.mubr.bf16.mxu0 %v2556_v15 }
 0x3dc   :  { %v4149_v49 = vpop.f32.mrb[72].mxu1  ;;  %4224 = vmatmul.mubr.bf16.gmra.mrb[132].mxu0 %v2557_v7 }
 0x3dd   :  { %v2276_v38 = vadd.f32 %v4149_v49, %v5845_v11  ;;  %v2267_v5 = vpop.f32.mrb[73].mxu1 }
 0x3de   :  { %v2268_v51 = vadd.f32 %v5845_v11, %v2267_v5  ;;  %v4150_v33 = vpop.f32.mrb[74].mxu1 }
 0x3df   :  { %v2279_v29 = vadd.f32 %v4150_v33, %v5845_v11  ;;  %v2270_v30 = vpop.f32.mrb[75].mxu1  ;;  %v2500_v0 = vmax.f32 %v2276_v38, 0.0 }
 0x3e0   :  { %v2271_v40 = vadd.f32 %v5845_v11, %v2270_v30  ;;  %v2498_v44 = vmax.f32 %v2268_v51, 0.0 }
 0x3e1   :  { %v2501_v42 = vmax.f32 %v2279_v29, 0.0 }
 0x3e2   :  { %v2499_v61 = vmax.f32 %v2271_v40, 0.0 }
 0x3e3   :  { %v2559_v57 = vpack.c.bf16 %v2501_v42, %v2500_v0 }
 0x3e4   :  { %v2558_v56 = vpack.c.bf16 %v2499_v61, %v2498_v44 }
 0x3e6   :  { %v4153_v21 = vpop.f32.mrb[76].mxu1  ;;  %4227 = vmatprep.mubr.bf16.mxu0 %v2558_v56 }
 0x3e7   :  { %v2292_v35 = vadd.f32 %v4153_v21, %v5845_v11  ;;  %v2283_v53 = vpop.f32.mrb[77].mxu1  ;;  %4228 = vmatmul.mubr.bf16.gmra.mrb[136].mxu0 %v2559_v57 }
 0x3e8   :  { %v2284_v27 = vadd.f32 %v5845_v11, %v2283_v53  ;;  %v4154_v41 = vpop.f32.mrb[78].mxu1 }
 0x3e9   :  { %v2295_v6 = vadd.f32 %v4154_v41, %v5845_v11  ;;  %v2286_v43 = vpop.f32.mrb[79].mxu1  ;;  %v2504_v48 = vmax.f32 %v2292_v35, 0.0 }
 0x3ea   :  { %v2287_v45 = vadd.f32 %v5845_v11, %v2286_v43  ;;  %v2502_v22 = vmax.f32 %v2284_v27, 0.0 }
 0x3eb   :  { %v2505_v9 = vmax.f32 %v2295_v6, 0.0 }
 0x3ec   :  { %v2503_v55 = vmax.f32 %v2287_v45, 0.0 }
 0x3ed   :  { %v2561_v62 = vpack.c.bf16 %v2505_v9, %v2504_v48 }
 0x3ee   :  { %v2560_v37 = vpack.c.bf16 %v2503_v55, %v2502_v22 }
 0x3f0   :  { %4231 = vmatprep.mubr.bf16.mxu0 %v2560_v37 }
 0x3f1   :  { %v4157_v34 = vpop.f32.mrb[80].mxu1  ;;  %4232 = vmatmul.mubr.bf16.gmra.mrb[140].mxu0 %v2561_v62 }
 0x3f2   :  { %v2308_v7 = vadd.f32 %v4157_v34, %v5845_v11  ;;  %v2299_v15 = vpop.f32.mrb[81].mxu1 }
 0x3f3   :  { %v2300_v58 = vadd.f32 %v5845_v11, %v2299_v15  ;;  %v4158_v49 = vpop.f32.mrb[82].mxu1 }
 0x3f4   :  { %v2311_v38 = vadd.f32 %v4158_v49, %v5845_v11  ;;  %v2302_v5 = vpop.f32.mrb[83].mxu1  ;;  %v2508_v33 = vmax.f32 %v2308_v7, 0.0 }
 0x3f5   :  { %v2303_v51 = vadd.f32 %v5845_v11, %v2302_v5  ;;  %v2506_v30 = vmax.f32 %v2300_v58, 0.0 }
 0x3f6   :  { %v2509_v29 = vmax.f32 %v2311_v38, 0.0 }
 0x3f7   :  { %v2507_v4 = vmax.f32 %v2303_v51, 0.0 }
 0x3f8   :  { %v2563_v40 = vpack.c.bf16 %v2509_v29, %v2508_v33 }
 0x3f9   :  { %v2562_v0 = vpack.c.bf16 %v2507_v4, %v2506_v30 }
 0x3fb   :  { %v4161_v42 = vpop.f32.mrb[84].mxu1  ;;  %4235 = vmatprep.mubr.bf16.mxu0 %v2562_v0 }
 0x3fc   :  { %v2324_v44 = vadd.f32 %v4161_v42, %v5845_v11  ;;  %v2315_v61 = vpop.f32.mrb[85].mxu1  ;;  %4236 = vmatmul.mubr.bf16.gmra.mrb[144].mxu0 %v2563_v40 }
 0x3fd   :  { %v2316_v57 = vadd.f32 %v5845_v11, %v2315_v61  ;;  %v4162_v3 = vpop.f32.mrb[86].mxu1 }
 0x3fe   :  { %v2327_v56 = vadd.f32 %v4162_v3, %v5845_v11  ;;  %v2318_v21 = vpop.f32.mrb[87].mxu1  ;;  %v2512_v53 = vmax.f32 %v2324_v44, 0.0 }
 0x3ff   :  { %v2319_v35 = vadd.f32 %v5845_v11, %v2318_v21  ;;  %v2510_v41 = vmax.f32 %v2316_v57, 0.0 }
 0x400   :  { %v2513_v27 = vmax.f32 %v2327_v56, 0.0 }
 0x401   :  { %v2511_v26 = vmax.f32 %v2319_v35, 0.0 }
 0x402   :  { %v2565_v6 = vpack.c.bf16 %v2513_v27, %v2512_v53 }
 0x403   :  { %v2564_v43 = vpack.c.bf16 %v2511_v26, %v2510_v41 }
 0x404   :  { %v4165_v45 = vpop.f32.mrb[88].mxu1 }
 0x405   :  { %v2340_v48 = vadd.f32 %v4165_v45, %v5845_v11  ;;  %v2331_v9 = vpop.f32.mrb[89].mxu1  ;;  %4239 = vmatprep.mubr.bf16.mxu0 %v2564_v43 }
 0x406   :  { %v2332_v22 = vadd.f32 %v5845_v11, %v2331_v9  ;;  %v4166_v55 = vpop.f32.mrb[90].mxu1  ;;  %4240 = vmatmul.mubr.bf16.gmra.mrb[148].mxu0 %v2565_v6 }
 0x407   :  { %v2343_v62 = vadd.f32 %v4166_v55, %v5845_v11  ;;  %v2334_v37 = vpop.f32.mrb[91].mxu1  ;;  %v2516_v7 = vmax.f32 %v2340_v48, 0.0 }
 0x408   :  { %v2335_v34 = vadd.f32 %v5845_v11, %v2334_v37  ;;  %v2514_v58 = vmax.f32 %v2332_v22, 0.0 }
 0x409   :  { %v2517_v15 = vmax.f32 %v2343_v62, 0.0 }
 0x40a   :  { %v2515_v49 = vmax.f32 %v2335_v34, 0.0 }
 0x40b   :  { %v2567_v38 = vpack.c.bf16 %v2517_v15, %v2516_v7 }
 0x40c   :  { %v2566_v5 = vpack.c.bf16 %v2515_v49, %v2514_v58 }
 0x40e   :  { %v4169_v51 = vpop.f32.mrb[92].mxu1  ;;  %4243 = vmatprep.mubr.bf16.mxu0 %v2566_v5 }
 0x40f   :  { %v2356_v33 = vadd.f32 %v4169_v51, %v5845_v11  ;;  %v2347_v29 = vpop.f32.mrb[93].mxu1  ;;  %4244 = vmatmul.mubr.bf16.gmra.mrb[152].mxu0 %v2567_v38 }
 0x410   :  { %v2348_v30 = vadd.f32 %v5845_v11, %v2347_v29  ;;  %v4170_v4 = vpop.f32.mrb[94].mxu1 }
 0x411   :  { %v2359_v40 = vadd.f32 %v4170_v4, %v5845_v11  ;;  %v2350_v0 = vpop.f32.mrb[95].mxu1  ;;  %v2520_v44 = vmax.f32 %v2356_v33, 0.0 }
 0x412   :  { %v2351_v42 = vadd.f32 %v5845_v11, %v2350_v0  ;;  %v2518_v57 = vmax.f32 %v2348_v30, 0.0 }
 0x413   :  { %v2521_v61 = vmax.f32 %v2359_v40, 0.0 }
 0x414   :  { %v2519_v3 = vmax.f32 %v2351_v42, 0.0 }
 0x415   :  { %v2569_v56 = vpack.c.bf16 %v2521_v61, %v2520_v44 }
 0x416   :  { %v2568_v21 = vpack.c.bf16 %v2519_v3, %v2518_v57 }
 0x418   :  { %v4173_v35 = vpop.f32.mrb[96].mxu1  ;;  %4247 = vmatprep.mubr.bf16.mxu0 %v2568_v21 }
 0x419   :  { %v2372_v53 = vadd.f32 %v4173_v35, %v5845_v11  ;;  %v2363_v27 = vpop.f32.mrb[97].mxu1  ;;  %4248 = vmatmul.mubr.bf16.gmra.mrb[156].mxu0 %v2569_v56 }
 0x41a   :  { %v2364_v41 = vadd.f32 %v5845_v11, %v2363_v27  ;;  %v4174_v26 = vpop.f32.mrb[98].mxu1 }
 0x41b   :  { %v2375_v6 = vadd.f32 %v4174_v26, %v5845_v11  ;;  %v2366_v43 = vpop.f32.mrb[99].mxu1  ;;  %v2524_v48 = vmax.f32 %v2372_v53, 0.0 }
 0x41c   :  { %v2367_v45 = vadd.f32 %v5845_v11, %v2366_v43  ;;  %v2522_v22 = vmax.f32 %v2364_v41, 0.0 }
 0x41d   :  { %v2525_v9 = vmax.f32 %v2375_v6, 0.0 }
 0x41e   :  { %v2523_v55 = vmax.f32 %v2367_v45, 0.0 }
 0x41f   :  { %v2571_v62 = vpack.c.bf16 %v2525_v9, %v2524_v48 }
 0x420   :  { %v2570_v37 = vpack.c.bf16 %v2523_v55, %v2522_v22 }
 0x422   :  { %v4177_v34 = vpop.f32.mrb[100].mxu1  ;;  %4251 = vmatprep.mubr.bf16.mxu0 %v2570_v37 }
 0x423   :  { %v2388_v7 = vadd.f32 %v4177_v34, %v5845_v11  ;;  %v2379_v15 = vpop.f32.mrb[101].mxu1  ;;  %4252 = vmatmul.mubr.bf16.gmra.mrb[160].mxu0 %v2571_v62 }
 0x424   :  { %v2380_v58 = vadd.f32 %v5845_v11, %v2379_v15  ;;  %v4178_v49 = vpop.f32.mrb[102].mxu1 }
 0x425   :  { %v2391_v38 = vadd.f32 %v4178_v49, %v5845_v11  ;;  %v2382_v5 = vpop.f32.mrb[103].mxu1  ;;  %v2528_v33 = vmax.f32 %v2388_v7, 0.0 }
 0x426   :  { %v2383_v51 = vadd.f32 %v5845_v11, %v2382_v5  ;;  %v2526_v30 = vmax.f32 %v2380_v58, 0.0 }
 0x427   :  { %v2529_v29 = vmax.f32 %v2391_v38, 0.0 }
 0x428   :  { %v2527_v4 = vmax.f32 %v2383_v51, 0.0 }
 0x429   :  { %v2573_v40 = vpack.c.bf16 %v2529_v29, %v2528_v33 }
 0x42a   :  { %v2572_v0 = vpack.c.bf16 %v2527_v4, %v2526_v30 }
 0x42b   :  { %v4181_v42 = vpop.f32.mrb[104].mxu1 }
 0x42c   :  { %v2404_v44 = vadd.f32 %v4181_v42, %v5845_v11  ;;  %v2395_v61 = vpop.f32.mrb[105].mxu1  ;;  %4255 = vmatprep.mubr.bf16.mxu0 %v2572_v0 }
 0x42d   :  { %v2396_v57 = vadd.f32 %v5845_v11, %v2395_v61  ;;  %v4182_v3 = vpop.f32.mrb[106].mxu1  ;;  %4256 = vmatmul.mubr.bf16.gmra.mrb[164].mxu0 %v2573_v40 }
 0x42e   :  { %v2407_v56 = vadd.f32 %v4182_v3, %v5845_v11  ;;  %v2398_v21 = vpop.f32.mrb[107].mxu1  ;;  %v2532_v53 = vmax.f32 %v2404_v44, 0.0 }
 0x42f   :  { %v2399_v35 = vadd.f32 %v5845_v11, %v2398_v21  ;;  %v2530_v41 = vmax.f32 %v2396_v57, 0.0 }
 0x430   :  { %v2533_v27 = vmax.f32 %v2407_v56, 0.0 }
 0x431   :  { %v2531_v26 = vmax.f32 %v2399_v35, 0.0 }
 0x432   :  { %v2575_v6 = vpack.c.bf16 %v2533_v27, %v2532_v53 }
 0x433   :  { %v2574_v43 = vpack.c.bf16 %v2531_v26, %v2530_v41 }
 0x434   :  { %v4185_v45 = vpop.f32.mrb[108].mxu1 }
 0x435   :  { %v2420_v48 = vadd.f32 %v4185_v45, %v5845_v11  ;;  %v2411_v9 = vpop.f32.mrb[109].mxu1  ;;  %4259 = vmatprep.mubr.bf16.mxu0 %v2574_v43 }
 0x436   :  { %v2412_v22 = vadd.f32 %v5845_v11, %v2411_v9  ;;  %v4186_v55 = vpop.f32.mrb[110].mxu1  ;;  %4260 = vmatmul.mubr.bf16.gmra.mrb[168].mxu0 %v2575_v6 }
 0x437   :  { %v2423_v62 = vadd.f32 %v4186_v55, %v5845_v11  ;;  %v2414_v37 = vpop.f32.mrb[111].mxu1  ;;  %v2536_v7 = vmax.f32 %v2420_v48, 0.0 }
 0x438   :  { %v2415_v34 = vadd.f32 %v5845_v11, %v2414_v37  ;;  %v2534_v58 = vmax.f32 %v2412_v22, 0.0 }
 0x439   :  { %v2537_v15 = vmax.f32 %v2423_v62, 0.0 }
 0x43a   :  { %v2535_v49 = vmax.f32 %v2415_v34, 0.0 }
 0x43b   :  { %v2577_v38 = vpack.c.bf16 %v2537_v15, %v2536_v7 }
 0x43c   :  { %v2576_v5 = vpack.c.bf16 %v2535_v49, %v2534_v58 }
 0x43e   :  { %4263 = vmatprep.mubr.bf16.mxu0 %v2576_v5 }
 0x43f   :  { %v4189_v51 = vpop.f32.mrb[112].mxu1  ;;  %4264 = vmatmul.mubr.bf16.gmra.mrb[172].mxu0 %v2577_v38 }
 0x440   :  { %v2436_v33 = vadd.f32 %v4189_v51, %v5845_v11  ;;  %v2427_v29 = vpop.f32.mrb[113].mxu1 }
 0x441   :  { %v2428_v30 = vadd.f32 %v5845_v11, %v2427_v29  ;;  %v4190_v4 = vpop.f32.mrb[114].mxu1 }
 0x442   :  { %v2439_v40 = vadd.f32 %v4190_v4, %v5845_v11  ;;  %v2430_v0 = vpop.f32.mrb[115].mxu1  ;;  %v2540_v44 = vmax.f32 %v2436_v33, 0.0 }
 0x443   :  { %v2431_v42 = vadd.f32 %v5845_v11, %v2430_v0  ;;  %v2538_v57 = vmax.f32 %v2428_v30, 0.0 }
 0x444   :  { %v2541_v61 = vmax.f32 %v2439_v40, 0.0 }
 0x445   :  { %v2539_v3 = vmax.f32 %v2431_v42, 0.0 }
 0x446   :  { %v2579_v56 = vpack.c.bf16 %v2541_v61, %v2540_v44 }
 0x447   :  { %v2578_v21 = vpack.c.bf16 %v2539_v3, %v2538_v57  ;;  %v4193_v35 = vpop.f32.mrb[116].mxu1 }
 0x448   :  { %v2452_v53 = vadd.f32 %v4193_v35, %v5845_v11  ;;  %v2443_v27 = vpop.f32.mrb[117].mxu1 }
 0x449   :  { %v2444_v41 = vadd.f32 %v5845_v11, %v2443_v27  ;;  %v4194_v26 = vpop.f32.mrb[118].mxu1  ;;  %4267 = vmatprep.mubr.bf16.mxu0 %v2578_v21 }
 0x44a   :  { %v2455_v6 = vadd.f32 %v4194_v26, %v5845_v11  ;;  %v2446_v43 = vpop.f32.mrb[119].mxu1  ;;  %4268 = vmatmul.mubr.bf16.gmra.mrb[176].mxu0 %v2579_v56  ;;  %v2544_v48 = vmax.f32 %v2452_v53, 0.0 }
 0x44b   :  { %v2447_v45 = vadd.f32 %v5845_v11, %v2446_v43  ;;  %v2542_v22 = vmax.f32 %v2444_v41, 0.0 }
 0x44c   :  { %v2545_v9 = vmax.f32 %v2455_v6, 0.0 }
 0x44d   :  { %v2543_v55 = vmax.f32 %v2447_v45, 0.0  ;;  %v5914_v45 = vld [vmem:[%s6127_s2 + $0x4] ss:$0 sm:$0xff] }
 0x44e   :  { %v2581_v62 = vpack.c.bf16 %v2545_v9, %v2544_v48 }
 0x44f   :  { %v2580_v37 = vpack.c.bf16 %v2543_v55, %v2542_v22  ;;  %v4197_v34 = vpop.f32.mrb[120].mxu1 }
 0x450   :  { %v2468_v7 = vadd.f32 %v4197_v34, %v5845_v11  ;;  %v2459_v15 = vpop.f32.mrb[121].mxu1 }
 0x451   :  { %v2460_v58 = vadd.f32 %v5845_v11, %v2459_v15  ;;  %v4198_v49 = vpop.f32.mrb[122].mxu1  ;;  %4271 = vmatprep.mubr.bf16.mxu0 %v2580_v37 }
 0x452   :  { %v2471_v38 = vadd.f32 %v4198_v49, %v5845_v11  ;;  %v2462_v5 = vpop.f32.mrb[123].mxu1  ;;  %4272 = vmatmul.mubr.bf16.gmra.mrb[180].mxu0 %v2581_v62  ;;  %v2548_v33 = vmax.f32 %v2468_v7, 0.0 }
 0x453   :  { %v2463_v51 = vadd.f32 %v5845_v11, %v2462_v5  ;;  %v2546_v30 = vmax.f32 %v2460_v58, 0.0 }
 0x454   :  { %v2549_v29 = vmax.f32 %v2471_v38, 0.0 }
 0x455   :  { %v2547_v4 = vmax.f32 %v2463_v51, 0.0 }
 0x456   :  { %v2583_v40 = vpack.c.bf16 %v2549_v29, %v2548_v33 }
 0x457   :  { %v2582_v0 = vpack.c.bf16 %v2547_v4, %v2546_v30  ;;  %v4201_v42 = vpop.f32.mrb[124].mxu1 }
 0x458   :  { %v2484_v44 = vadd.f32 %v4201_v42, %v5845_v11  ;;  %v2475_v61 = vpop.f32.mrb[125].mxu1 }
 0x459   :  { %v2476_v57 = vadd.f32 %v5845_v11, %v2475_v61  ;;  %v4202_v3 = vpop.f32.mrb[126].mxu1  ;;  %4275 = vmatprep.mubr.bf16.mxu0 %v2582_v0 }
 0x45a   :  { %v2487_v56 = vadd.f32 %v4202_v3, %v5845_v11  ;;  %v2478_v21 = vpop.f32.mrb[127].mxu1  ;;  %4276 = vmatmul.mubr.bf16.gmra.mrb[184].mxu0 %v2583_v40  ;;  %v2552_v53 = vmax.f32 %v2484_v44, 0.0 }
 0x45b   :  { %v2479_v35 = vadd.f32 %v5845_v11, %v2478_v21  ;;  %v2550_v41 = vmax.f32 %v2476_v57, 0.0 }
 0x45c   :  { %v2553_v27 = vmax.f32 %v2487_v56, 0.0 }
 0x45d   :  { %v2551_v26 = vmax.f32 %v2479_v35, 0.0 }
 0x45e   :  { %v2585_v6 = vpack.c.bf16 %v2553_v27, %v2552_v53 }
 0x45f   :  { %v2584_v43 = vpack.c.bf16 %v2551_v26, %v2550_v41 }
 0x461   :  { %4279 = vmatprep.mubr.bf16.mxu0 %v2584_v43 }
 0x462   :  { %4280 = vmatmul.mubr.bf16.gmra.mrb[188].mxu0 %v2585_v6 }
 0x4a6   :  { %v4221_v48 = vpop.f32.mrb[128].mxu0 }
 0x4a7   :  { %v2702_v9 = vadd.f32 %v4221_v48, %v5914_v45  ;;  %v2693_v22 = vpop.f32.mrb[129].mxu0 }
 0x4a8   :  { %v2694_v55 = vadd.f32 %v5914_v45, %v2693_v22  ;;  %v4222_v11 = vpop.f32.mrb[130].mxu0 }
 0x4a9   :  { %v2705_v62 = vadd.f32 %v4222_v11, %v5914_v45  ;;  %v2696_v37 = vpop.f32.mrb[131].mxu0  ;;  %v2950_v7 = vmax.f32 %v2702_v9, 0.0 }
 0x4aa   :  { %v2697_v34 = vadd.f32 %v5914_v45, %v2696_v37  ;;  %v2948_v58 = vmax.f32 %v2694_v55, 0.0 }
 0x4ab   :  { %v2951_v15 = vmax.f32 %v2705_v62, 0.0 }
 0x4ac   :  { %v2949_v49 = vmax.f32 %v2697_v34, 0.0 }
 0x4ad   :  { %v3013_v38 = vpack.c.bf16 %v2951_v15, %v2950_v7 }
 0x4ae   :  { %v3012_v5 = vpack.c.bf16 %v2949_v49, %v2948_v58 }
 0x4af   :  { %v4225_v51 = vpop.f32.mrb[132].mxu0 }
 0x4b0   :  { %v2718_v33 = vadd.f32 %v4225_v51, %v5914_v45  ;;  %v2709_v29 = vpop.f32.mrb[133].mxu0  ;;  %4299 = vmatprep.mubr.bf16.mxu1 %v3012_v5 }
 0x4b1   :  { %v2710_v30 = vadd.f32 %v5914_v45, %v2709_v29  ;;  %v4226_v4 = vpop.f32.mrb[134].mxu0  ;;  %4300 = vmatmul.mubr.bf16.vlgmr.msra.gmra.mrb[128].mxu1 %v3013_v38 }
 0x4b2   :  { %v2721_v40 = vadd.f32 %v4226_v4, %v5914_v45  ;;  %v2712_v0 = vpop.f32.mrb[135].mxu0  ;;  %v2954_v44 = vmax.f32 %v2718_v33, 0.0 }
 0x4b3   :  { %v2713_v42 = vadd.f32 %v5914_v45, %v2712_v0  ;;  %v2952_v57 = vmax.f32 %v2710_v30, 0.0 }
 0x4b4   :  { %v2955_v61 = vmax.f32 %v2721_v40, 0.0 }
 0x4b5   :  { %v2953_v3 = vmax.f32 %v2713_v42, 0.0 }
 0x4b6   :  { %v3015_v56 = vpack.c.bf16 %v2955_v61, %v2954_v44 }
 0x4b7   :  { %v3014_v21 = vpack.c.bf16 %v2953_v3, %v2952_v57 }
 0x4b9   :  { %4303 = vmatprep.mubr.bf16.mxu1 %v3014_v21 }
 0x4ba   :  { %v4229_v35 = vpop.f32.mrb[136].mxu0  ;;  %4304 = vmatmul.mubr.bf16.gmra.mrb[132].mxu1 %v3015_v56 }
 0x4bb   :  { %v2734_v53 = vadd.f32 %v4229_v35, %v5914_v45  ;;  %v2725_v27 = vpop.f32.mrb[137].mxu0 }
 0x4bc   :  { %v2726_v41 = vadd.f32 %v5914_v45, %v2725_v27  ;;  %v4230_v26 = vpop.f32.mrb[138].mxu0 }
 0x4bd   :  { %v2737_v6 = vadd.f32 %v4230_v26, %v5914_v45  ;;  %v2728_v43 = vpop.f32.mrb[139].mxu0  ;;  %v2958_v9 = vmax.f32 %v2734_v53, 0.0 }
 0x4be   :  { %v2729_v48 = vadd.f32 %v5914_v45, %v2728_v43  ;;  %v2956_v55 = vmax.f32 %v2726_v41, 0.0 }
 0x4bf   :  { %v2959_v22 = vmax.f32 %v2737_v6, 0.0 }
 0x4c0   :  { %v2957_v11 = vmax.f32 %v2729_v48, 0.0 }
 0x4c1   :  { %v3017_v62 = vpack.c.bf16 %v2959_v22, %v2958_v9 }
 0x4c2   :  { %v3016_v37 = vpack.c.bf16 %v2957_v11, %v2956_v55 }
 0x4c4   :  { %v4233_v34 = vpop.f32.mrb[140].mxu0  ;;  %4307 = vmatprep.mubr.bf16.mxu1 %v3016_v37 }
 0x4c5   :  { %v2750_v7 = vadd.f32 %v4233_v34, %v5914_v45  ;;  %v2741_v15 = vpop.f32.mrb[141].mxu0  ;;  %4308 = vmatmul.mubr.bf16.gmra.mrb[136].mxu1 %v3017_v62 }
 0x4c6   :  { %v2742_v58 = vadd.f32 %v5914_v45, %v2741_v15  ;;  %v4234_v49 = vpop.f32.mrb[142].mxu0 }
 0x4c7   :  { %v2753_v38 = vadd.f32 %v4234_v49, %v5914_v45  ;;  %v2744_v5 = vpop.f32.mrb[143].mxu0  ;;  %v2962_v33 = vmax.f32 %v2750_v7, 0.0 }
 0x4c8   :  { %v2745_v51 = vadd.f32 %v5914_v45, %v2744_v5  ;;  %v2960_v30 = vmax.f32 %v2742_v58, 0.0 }
 0x4c9   :  { %v2963_v29 = vmax.f32 %v2753_v38, 0.0 }
 0x4ca   :  { %v2961_v4 = vmax.f32 %v2745_v51, 0.0 }
 0x4cb   :  { %v3019_v40 = vpack.c.bf16 %v2963_v29, %v2962_v33 }
 0x4cc   :  { %v3018_v0 = vpack.c.bf16 %v2961_v4, %v2960_v30 }
 0x4ce   :  { %4311 = vmatprep.mubr.bf16.mxu1 %v3018_v0 }
 0x4cf   :  { %v4237_v42 = vpop.f32.mrb[144].mxu0  ;;  %4312 = vmatmul.mubr.bf16.gmra.mrb[140].mxu1 %v3019_v40 }
 0x4d0   :  { %v2766_v44 = vadd.f32 %v4237_v42, %v5914_v45  ;;  %v2757_v61 = vpop.f32.mrb[145].mxu0 }
 0x4d1   :  { %v2758_v57 = vadd.f32 %v5914_v45, %v2757_v61  ;;  %v4238_v3 = vpop.f32.mrb[146].mxu0 }
 0x4d2   :  { %v2769_v56 = vadd.f32 %v4238_v3, %v5914_v45  ;;  %v2760_v21 = vpop.f32.mrb[147].mxu0  ;;  %v2966_v53 = vmax.f32 %v2766_v44, 0.0 }
 0x4d3   :  { %v2761_v35 = vadd.f32 %v5914_v45, %v2760_v21  ;;  %v2964_v41 = vmax.f32 %v2758_v57, 0.0 }
 0x4d4   :  { %v2967_v27 = vmax.f32 %v2769_v56, 0.0 }
 0x4d5   :  { %v2965_v26 = vmax.f32 %v2761_v35, 0.0 }
 0x4d6   :  { %v3021_v6 = vpack.c.bf16 %v2967_v27, %v2966_v53 }
 0x4d7   :  { %v3020_v43 = vpack.c.bf16 %v2965_v26, %v2964_v41 }
 0x4d9   :  { %v4241_v48 = vpop.f32.mrb[148].mxu0  ;;  %4315 = vmatprep.mubr.bf16.mxu1 %v3020_v43 }
 0x4da   :  { %v2782_v9 = vadd.f32 %v4241_v48, %v5914_v45  ;;  %v2773_v22 = vpop.f32.mrb[149].mxu0  ;;  %4316 = vmatmul.mubr.bf16.gmra.mrb[144].mxu1 %v3021_v6 }
 0x4db   :  { %v2774_v55 = vadd.f32 %v5914_v45, %v2773_v22  ;;  %v4242_v11 = vpop.f32.mrb[150].mxu0 }
 0x4dc   :  { %v2785_v62 = vadd.f32 %v4242_v11, %v5914_v45  ;;  %v2776_v37 = vpop.f32.mrb[151].mxu0  ;;  %v2970_v7 = vmax.f32 %v2782_v9, 0.0 }
 0x4dd   :  { %v2777_v34 = vadd.f32 %v5914_v45, %v2776_v37  ;;  %v2968_v58 = vmax.f32 %v2774_v55, 0.0 }
 0x4de   :  { %v2971_v15 = vmax.f32 %v2785_v62, 0.0 }
 0x4df   :  { %v2969_v49 = vmax.f32 %v2777_v34, 0.0 }
 0x4e0   :  { %v3023_v38 = vpack.c.bf16 %v2971_v15, %v2970_v7 }
 0x4e1   :  { %v3022_v5 = vpack.c.bf16 %v2969_v49, %v2968_v58 }
 0x4e2   :  { %v4245_v51 = vpop.f32.mrb[152].mxu0 }
 0x4e3   :  { %v2798_v33 = vadd.f32 %v4245_v51, %v5914_v45  ;;  %v2789_v29 = vpop.f32.mrb[153].mxu0  ;;  %4319 = vmatprep.mubr.bf16.mxu1 %v3022_v5 }
 0x4e4   :  { %v2790_v30 = vadd.f32 %v5914_v45, %v2789_v29  ;;  %v4246_v4 = vpop.f32.mrb[154].mxu0  ;;  %4320 = vmatmul.mubr.bf16.gmra.mrb[148].mxu1 %v3023_v38 }
 0x4e5   :  { %v2801_v40 = vadd.f32 %v4246_v4, %v5914_v45  ;;  %v2792_v0 = vpop.f32.mrb[155].mxu0  ;;  %v2974_v44 = vmax.f32 %v2798_v33, 0.0 }
 0x4e6   :  { %v2793_v42 = vadd.f32 %v5914_v45, %v2792_v0  ;;  %v2972_v57 = vmax.f32 %v2790_v30, 0.0 }
 0x4e7   :  { %v2975_v61 = vmax.f32 %v2801_v40, 0.0 }
 0x4e8   :  { %v2973_v3 = vmax.f32 %v2793_v42, 0.0 }
 0x4e9   :  { %v3025_v56 = vpack.c.bf16 %v2975_v61, %v2974_v44 }
 0x4ea   :  { %v3024_v21 = vpack.c.bf16 %v2973_v3, %v2972_v57 }
 0x4ec   :  { %v4249_v35 = vpop.f32.mrb[156].mxu0  ;;  %4323 = vmatprep.mubr.bf16.mxu1 %v3024_v21 }
 0x4ed   :  { %v2814_v53 = vadd.f32 %v4249_v35, %v5914_v45  ;;  %v2805_v27 = vpop.f32.mrb[157].mxu0  ;;  %4324 = vmatmul.mubr.bf16.gmra.mrb[152].mxu1 %v3025_v56 }
 0x4ee   :  { %v2806_v41 = vadd.f32 %v5914_v45, %v2805_v27  ;;  %v4250_v26 = vpop.f32.mrb[158].mxu0 }
 0x4ef   :  { %v2817_v6 = vadd.f32 %v4250_v26, %v5914_v45  ;;  %v2808_v43 = vpop.f32.mrb[159].mxu0  ;;  %v2978_v9 = vmax.f32 %v2814_v53, 0.0 }
 0x4f0   :  { %v2809_v48 = vadd.f32 %v5914_v45, %v2808_v43  ;;  %v2976_v55 = vmax.f32 %v2806_v41, 0.0 }
 0x4f1   :  { %v2979_v22 = vmax.f32 %v2817_v6, 0.0 }
 0x4f2   :  { %v2977_v11 = vmax.f32 %v2809_v48, 0.0 }
 0x4f3   :  { %v3027_v62 = vpack.c.bf16 %v2979_v22, %v2978_v9 }
 0x4f4   :  { %v3026_v37 = vpack.c.bf16 %v2977_v11, %v2976_v55 }
 0x4f6   :  { %v4253_v34 = vpop.f32.mrb[160].mxu0  ;;  %4327 = vmatprep.mubr.bf16.mxu1 %v3026_v37 }
 0x4f7   :  { %v2830_v7 = vadd.f32 %v4253_v34, %v5914_v45  ;;  %v2821_v15 = vpop.f32.mrb[161].mxu0  ;;  %4328 = vmatmul.mubr.bf16.gmra.mrb[156].mxu1 %v3027_v62 }
 0x4f8   :  { %v2822_v58 = vadd.f32 %v5914_v45, %v2821_v15  ;;  %v4254_v49 = vpop.f32.mrb[162].mxu0 }
 0x4f9   :  { %v2833_v38 = vadd.f32 %v4254_v49, %v5914_v45  ;;  %v2824_v5 = vpop.f32.mrb[163].mxu0  ;;  %v2982_v33 = vmax.f32 %v2830_v7, 0.0 }
 0x4fa   :  { %v2825_v51 = vadd.f32 %v5914_v45, %v2824_v5  ;;  %v2980_v30 = vmax.f32 %v2822_v58, 0.0 }
 0x4fb   :  { %v2983_v29 = vmax.f32 %v2833_v38, 0.0 }
 0x4fc   :  { %v2981_v4 = vmax.f32 %v2825_v51, 0.0 }
 0x4fd   :  { %v3029_v40 = vpack.c.bf16 %v2983_v29, %v2982_v33 }
 0x4fe   :  { %v3028_v0 = vpack.c.bf16 %v2981_v4, %v2980_v30 }
 0x500   :  { %v4257_v42 = vpop.f32.mrb[164].mxu0  ;;  %4331 = vmatprep.mubr.bf16.mxu1 %v3028_v0 }
 0x501   :  { %v2846_v44 = vadd.f32 %v4257_v42, %v5914_v45  ;;  %v2837_v61 = vpop.f32.mrb[165].mxu0  ;;  %4332 = vmatmul.mubr.bf16.gmra.mrb[160].mxu1 %v3029_v40 }
 0x502   :  { %v2838_v57 = vadd.f32 %v5914_v45, %v2837_v61  ;;  %v4258_v3 = vpop.f32.mrb[166].mxu0 }
 0x503   :  { %v2849_v56 = vadd.f32 %v4258_v3, %v5914_v45  ;;  %v2840_v21 = vpop.f32.mrb[167].mxu0  ;;  %v2986_v53 = vmax.f32 %v2846_v44, 0.0 }
 0x504   :  { %v2841_v35 = vadd.f32 %v5914_v45, %v2840_v21  ;;  %v2984_v41 = vmax.f32 %v2838_v57, 0.0 }
 0x505   :  { %v2987_v27 = vmax.f32 %v2849_v56, 0.0 }
 0x506   :  { %v2985_v26 = vmax.f32 %v2841_v35, 0.0 }
 0x507   :  { %v3031_v6 = vpack.c.bf16 %v2987_v27, %v2986_v53 }
 0x508   :  { %v3030_v43 = vpack.c.bf16 %v2985_v26, %v2984_v41 }
 0x509   :  { %v4261_v48 = vpop.f32.mrb[168].mxu0 }
 0x50a   :  { %v2862_v9 = vadd.f32 %v4261_v48, %v5914_v45  ;;  %v2853_v22 = vpop.f32.mrb[169].mxu0  ;;  %4335 = vmatprep.mubr.bf16.mxu1 %v3030_v43 }
 0x50b   :  { %v2854_v55 = vadd.f32 %v5914_v45, %v2853_v22  ;;  %v4262_v11 = vpop.f32.mrb[170].mxu0  ;;  %4336 = vmatmul.mubr.bf16.gmra.mrb[164].mxu1 %v3031_v6 }
 0x50c   :  { %v2865_v62 = vadd.f32 %v4262_v11, %v5914_v45  ;;  %v2856_v37 = vpop.f32.mrb[171].mxu0  ;;  %v2990_v7 = vmax.f32 %v2862_v9, 0.0 }
 0x50d   :  { %v2857_v34 = vadd.f32 %v5914_v45, %v2856_v37  ;;  %v2988_v58 = vmax.f32 %v2854_v55, 0.0 }
 0x50e   :  { %v2991_v15 = vmax.f32 %v2865_v62, 0.0 }
 0x50f   :  { %v2989_v49 = vmax.f32 %v2857_v34, 0.0 }
 0x510   :  { %v3033_v38 = vpack.c.bf16 %v2991_v15, %v2990_v7 }
 0x511   :  { %v3032_v5 = vpack.c.bf16 %v2989_v49, %v2988_v58 }
 0x512   :  { %v4265_v51 = vpop.f32.mrb[172].mxu0 }
 0x513   :  { %v2878_v33 = vadd.f32 %v4265_v51, %v5914_v45  ;;  %v2869_v29 = vpop.f32.mrb[173].mxu0  ;;  %4339 = vmatprep.mubr.bf16.mxu1 %v3032_v5 }
 0x514   :  { %v2870_v30 = vadd.f32 %v5914_v45, %v2869_v29  ;;  %v4266_v4 = vpop.f32.mrb[174].mxu0  ;;  %4340 = vmatmul.mubr.bf16.gmra.mrb[168].mxu1 %v3033_v38 }
 0x515   :  { %v2881_v40 = vadd.f32 %v4266_v4, %v5914_v45  ;;  %v2872_v0 = vpop.f32.mrb[175].mxu0  ;;  %v2994_v44 = vmax.f32 %v2878_v33, 0.0 }
 0x516   :  { %v2873_v42 = vadd.f32 %v5914_v45, %v2872_v0  ;;  %v2992_v57 = vmax.f32 %v2870_v30, 0.0 }
 0x517   :  { %v2995_v61 = vmax.f32 %v2881_v40, 0.0 }
 0x518   :  { %v2993_v3 = vmax.f32 %v2873_v42, 0.0 }
 0x519   :  { %v3035_v56 = vpack.c.bf16 %v2995_v61, %v2994_v44 }
 0x51a   :  { %v3034_v21 = vpack.c.bf16 %v2993_v3, %v2992_v57 }
 0x51c   :  { %4343 = vmatprep.mubr.bf16.mxu1 %v3034_v21 }
 0x51d   :  { %v4269_v35 = vpop.f32.mrb[176].mxu0  ;;  %4344 = vmatmul.mubr.bf16.gmra.mrb[172].mxu1 %v3035_v56 }
 0x51e   :  { %v2894_v53 = vadd.f32 %v4269_v35, %v5914_v45  ;;  %v2885_v27 = vpop.f32.mrb[177].mxu0 }
 0x51f   :  { %v2886_v41 = vadd.f32 %v5914_v45, %v2885_v27  ;;  %v4270_v26 = vpop.f32.mrb[178].mxu0 }
 0x520   :  { %v2897_v6 = vadd.f32 %v4270_v26, %v5914_v45  ;;  %v2888_v43 = vpop.f32.mrb[179].mxu0  ;;  %v2998_v9 = vmax.f32 %v2894_v53, 0.0 }
 0x521   :  { %v2889_v48 = vadd.f32 %v5914_v45, %v2888_v43  ;;  %v2996_v55 = vmax.f32 %v2886_v41, 0.0 }
 0x522   :  { %v2999_v22 = vmax.f32 %v2897_v6, 0.0 }
 0x523   :  { %v2997_v11 = vmax.f32 %v2889_v48, 0.0 }
 0x524   :  { %v3037_v62 = vpack.c.bf16 %v2999_v22, %v2998_v9 }
 0x525   :  { %v3036_v37 = vpack.c.bf16 %v2997_v11, %v2996_v55  ;;  %v4273_v34 = vpop.f32.mrb[180].mxu0 }
 0x526   :  { %v2910_v7 = vadd.f32 %v4273_v34, %v5914_v45  ;;  %v2901_v15 = vpop.f32.mrb[181].mxu0 }
 0x527   :  { %v2902_v58 = vadd.f32 %v5914_v45, %v2901_v15  ;;  %v4274_v49 = vpop.f32.mrb[182].mxu0  ;;  %4347 = vmatprep.mubr.bf16.mxu1 %v3036_v37 }
 0x528   :  { %v2913_v38 = vadd.f32 %v4274_v49, %v5914_v45  ;;  %v2904_v5 = vpop.f32.mrb[183].mxu0  ;;  %4348 = vmatmul.mubr.bf16.gmra.mrb[176].mxu1 %v3037_v62  ;;  %v3002_v33 = vmax.f32 %v2910_v7, 0.0 }
 0x529   :  { %v2905_v51 = vadd.f32 %v5914_v45, %v2904_v5  ;;  %v3000_v30 = vmax.f32 %v2902_v58, 0.0 }
 0x52a   :  { %v3003_v29 = vmax.f32 %v2913_v38, 0.0 }
 0x52b   :  { %v3001_v4 = vmax.f32 %v2905_v51, 0.0  ;;  %v5983_v51 = vld [vmem:[%s6127_s2 + $0x5] ss:$0 sm:$0xff]  ;;  %s4719_s2 = smov [#allocation7]  }
 0x52c   :  { %v3039_v40 = vpack.c.bf16 %v3003_v29, %v3002_v33  ;;  %s3539_s23 = sshll.u32 %s4719_s2, 4  ;;  %s3540_s23 = int_to_ptr.vmem [resolvable:$true] %s3539_s23 }
 0x52d   :  { %v3038_v0 = vpack.c.bf16 %v3001_v4, %v3000_v30  ;;  %v4277_v42 = vpop.f32.mrb[184].mxu0  ;;  %s4687_s24 = scalar_lea.vmem %s3540_s23, 8192  ;;  %p4692_p3 = scmp.lt.s32.totalorder %s3540_s23, %s3540_s23 }
 0x52e   :  { %v2926_v44 = vadd.f32 %v4277_v42, %v5914_v45  ;;  %v2917_v61 = vpop.f32.mrb[185].mxu0  ;;  %p4688_p2 = scmp.ne.s32.totalorder %s3540_s23, %s4687_s24  ;;  %p4693_p4 = scmp.lt.s32.totalorder %s4687_s24, %s4687_s24 }
 0x52f   :  { %v2918_v57 = vadd.f32 %v5914_v45, %v2917_v61  ;;  %v4278_v3 = vpop.f32.mrb[186].mxu0  ;;  %4351 = vmatprep.mubr.bf16.mxu1 %v3038_v0 }
 0x530   :  { %v2929_v56 = vadd.f32 %v4278_v3, %v5914_v45  ;;  %v2920_v21 = vpop.f32.mrb[187].mxu0  ;;  %4352 = vmatmul.mubr.bf16.gmra.mrb[180].mxu1 %v3039_v40  ;;  %v3006_v53 = vmax.f32 %v2926_v44, 0.0  ;;  %v6284_v44 = vld [vmem:[#allocation11_spill] sm:$0xff]  ;;  %v6285_v3 = vld [vmem:[#allocation12_spill] sm:$0xff]  ;;  %p4694_p5 = por %p4693_p4, %p4692_p3 }
 0x531   :  { %v2921_v35 = vadd.f32 %v5914_v45, %v2920_v21  ;;  %v3004_v41 = vmax.f32 %v2918_v57, 0.0  ;;  %v6286_v21 = vld [vmem:[#allocation13_spill] sm:$0xff] }
 0x532   :  { %v3007_v27 = vmax.f32 %v2929_v56, 0.0  ;;  %p4695_p6 = pnand %p4694_p5, %p4688_p2 }
 0x533   :  { %v3005_v26 = vmax.f32 %v2921_v35, 0.0 }
 0x534   :  { %v3041_v6 = vpack.c.bf16 %v3007_v27, %v3006_v53 }
 0x535   :  { %v3040_v43 = vpack.c.bf16 %v3005_v26, %v3004_v41  ;;  %v4281_v48 = vpop.f32.mrb[188].mxu0 }
 0x536   :  { %v2942_v9 = vadd.f32 %v4281_v48, %v5914_v45  ;;  %v2933_v22 = vpop.f32.mrb[189].mxu0 }
 0x537   :  { %v2934_v55 = vadd.f32 %v5914_v45, %v2933_v22  ;;  %v4282_v11 = vpop.f32.mrb[190].mxu0  ;;  %4355 = vmatprep.mubr.bf16.mxu1 %v3040_v43  ;;  %v6288_v22 = vld [vmem:[#allocation15_spill] sm:$0xff] }
 0x538   :  { %v2945_v62 = vadd.f32 %v4282_v11, %v5914_v45  ;;  %v2936_v37 = vpop.f32.mrb[191].mxu0  ;;  %4356 = vmatmul.mubr.bf16.gmra.mrb[184].mxu1 %v3041_v6  ;;  %v3010_v7 = vmax.f32 %v2942_v9, 0.0  ;;  %v6287_v6 = vld [vmem:[#allocation14_spill] sm:$0xff] }
 0x539   :  { %v2937_v34 = vadd.f32 %v5914_v45, %v2936_v37  ;;  %v3008_v58 = vmax.f32 %v2934_v55, 0.0 }
 0x53a   :  { %v3011_v15 = vmax.f32 %v2945_v62, 0.0  ;;  %v6289_v62 = vld [vmem:[#allocation16_spill] sm:$0xff] }
 0x53b   :  { %v3009_v49 = vmax.f32 %v2937_v34, 0.0  ;;  %v6290_v34 = vld [vmem:[#allocation17_spill] sm:$0xff] }
 0x53c   :  { %v3043_v38 = vpack.c.bf16 %v3011_v15, %v3010_v7 }
 0x53d   :  { %v3042_v5 = vpack.c.bf16 %v3009_v49, %v3008_v58 }
 0x53f   :  { %4359 = vmatprep.mubr.bf16.mxu1 %v3042_v5 }
 0x540   :  { %4360 = vmatmul.mubr.bf16.gmra.mrb[188].mxu1 %v3043_v38 }
 0x584   :  { %v4301_v33 = vpop.f32.mrb[128].mxu1 }
 0x585   :  { %v3160_v29 = vadd.f32 %v4301_v33, %v5983_v51  ;;  %v3151_v30 = vpop.f32.mrb[129].mxu1  ;;  %v6291_v33 = vld [vmem:[#allocation18_spill] sm:$0xff] }
 0x586   :  { %v3152_v4 = vadd.f32 %v5983_v51, %v3151_v30  ;;  %v4302_v45 = vpop.f32.mrb[130].mxu1 }
 0x587   :  { %v3408_v40 = vadd.f32 %v3160_v29, %v4961_v47  ;;  %v3163_v0 = vadd.f32 %v4302_v45, %v5983_v51  ;;  %v3154_v42 = vpop.f32.mrb[131].mxu1  ;;  %v6292_v45 = vld [vmem:[#allocation19_spill] sm:$0xff] }
 0x588   :  { %v3406_v61 = vadd.f32 %v3152_v4, %v6284_v44  ;;  %v3155_v57 = vadd.f32 %v5983_v51, %v3154_v42  ;;  %v6293_v42 = vld [vmem:[#allocation20_spill] sm:$0xff] }
 0x589   :  { %3472 = vst [vmem:[#allocation7 + $0x10] sm:$0xff] %v3408_v40  ;;  %v3409_v56 = vadd.f32 %v3163_v0, %v6285_v3 }
 0x58a   :  { %3470 = vst [vmem:[#allocation7] sm:$0xff] %v3406_v61  ;;  %v3407_v35 = vadd.f32 %v3155_v57, %v6286_v21  ;;  %v6294_v61 = vld [vmem:[#allocation21_spill] sm:$0xff] }
 0x58b   :  { %3473 = vst [vmem:[#allocation7 + $0x18] sm:$0xff] %v3409_v56 }
 0x58c   :  { %3471 = vst [vmem:[#allocation7 + $0x8] sm:$0xff] %v3407_v35 }
 0x58d   :  { %v4305_v53 = vpop.f32.mrb[132].mxu1 }
 0x58e   :  { %v3176_v27 = vadd.f32 %v4305_v53, %v5983_v51  ;;  %v3167_v41 = vpop.f32.mrb[133].mxu1 }
 0x58f   :  { %v3168_v47 = vadd.f32 %v5983_v51, %v3167_v41  ;;  %v4306_v26 = vpop.f32.mrb[134].mxu1 }
 0x590   :  { %v3412_v43 = vadd.f32 %v3176_v27, %v6287_v6  ;;  %v3179_v48 = vadd.f32 %v4306_v26, %v5983_v51  ;;  %v3170_v9 = vpop.f32.mrb[135].mxu1  ;;  %v6295_v27 = vld [vmem:[#allocation22_spill] sm:$0xff]  ;;  %v6296_v6 = vld [vmem:[#allocation23_spill] sm:$0xff] }
 0x591   :  { %v3410_v55 = vadd.f32 %v3168_v47, %v6288_v22  ;;  %v3171_v11 = vadd.f32 %v5983_v51, %v3170_v9  ;;  %v6297_v9 = vld [vmem:[#allocation24_spill] sm:$0xff] }
 0x592   :  { %3476 = vst [vmem:[#allocation7 + $0x30] sm:$0xff] %v3412_v43  ;;  %v3413_v37 = vadd.f32 %v3179_v48, %v6289_v62 }
 0x593   :  { %3474 = vst [vmem:[#allocation7 + $0x20] sm:$0xff] %v3410_v55  ;;  %v3411_v7 = vadd.f32 %v3171_v11, %v6290_v34 }
 0x594   :  { %3477 = vst [vmem:[#allocation7 + $0x38] sm:$0xff] %v3413_v37 }
 0x595   :  { %3475 = vst [vmem:[#allocation7 + $0x28] sm:$0xff] %v3411_v7 }
 0x598   :  { %v4309_v15 = vpop.f32.mrb[136].mxu1 }
 0x599   :  { %v3192_v58 = vadd.f32 %v4309_v15, %v5983_v51  ;;  %v3183_v49 = vpop.f32.mrb[137].mxu1 }
 0x59a   :  { %v3184_v38 = vadd.f32 %v5983_v51, %v3183_v49  ;;  %v4310_v5 = vpop.f32.mrb[138].mxu1 }
 0x59b   :  { %v3416_v29 = vadd.f32 %v3192_v58, %v6291_v33  ;;  %v3195_v30 = vadd.f32 %v4310_v5, %v5983_v51  ;;  %v3186_v4 = vpop.f32.mrb[139].mxu1  ;;  %v6298_v33 = vld [vmem:[#allocation25_spill] sm:$0xff] }
 0x59c   :  { %v3414_v40 = vadd.f32 %v3184_v38, %v6292_v45  ;;  %v3187_v0 = vadd.f32 %v5983_v51, %v3186_v4 }
 0x59d   :  { %3480 = vst [vmem:[#allocation7 + $0x50] sm:$0xff] %v3416_v29  ;;  %v3417_v44 = vadd.f32 %v3195_v30, %v6293_v42 }
 0x59e   :  { %3478 = vst [vmem:[#allocation7 + $0x40] sm:$0xff] %v3414_v40  ;;  %v3415_v57 = vadd.f32 %v3187_v0, %v6294_v61  ;;  %v6299_v61 = vld [vmem:[#allocation27_spill] sm:$0xff] }
 0x59f   :  { %3481 = vst [vmem:[#allocation7 + $0x58] sm:$0xff] %v3417_v44 }
 0x5a0   :  { %3479 = vst [vmem:[#allocation7 + $0x48] sm:$0xff] %v3415_v57 }
 0x5a2   :  { %v4313_v3 = vpop.f32.mrb[140].mxu1 }
 0x5a3   :  { %v3208_v56 = vadd.f32 %v4313_v3, %v5983_v51  ;;  %v3199_v21 = vpop.f32.mrb[141].mxu1  ;;  %v6300_v3 = vld [vmem:[#allocation26_spill] sm:$0xff] }
 0x5a4   :  { %v3200_v35 = vadd.f32 %v5983_v51, %v3199_v21  ;;  %v4314_v53 = vpop.f32.mrb[142].mxu1 }
 0x5a5   :  { %v3420_v41 = vadd.f32 %v3208_v56, %v6295_v27  ;;  %v3211_v47 = vadd.f32 %v4314_v53, %v5983_v51  ;;  %v3202_v26 = vpop.f32.mrb[143].mxu1 }
 0x5a6   :  { %v3418_v43 = vadd.f32 %v3200_v35, %v6296_v6  ;;  %v3203_v48 = vadd.f32 %v5983_v51, %v3202_v26  ;;  %v6301_v26 = vld [vmem:[#allocation28_spill] sm:$0xff] }
 0x5a7   :  { %3484 = vst [vmem:[#allocation7 + $0x70] sm:$0xff] %v3420_v41  ;;  %v3421_v22 = vadd.f32 %v3211_v47, %v6297_v9  ;;  %v6302_v9 = vld [vmem:[#allocation29_spill] sm:$0xff] }
 0x5a8   :  { %3482 = vst [vmem:[#allocation7 + $0x60] sm:$0xff] %v3418_v43  ;;  %v3419_v55 = vadd.f32 %v3203_v48, %v5126_v32 }
 0x5a9   :  { %3485 = vst [vmem:[#allocation7 + $0x78] sm:$0xff] %v3421_v22 }
 0x5aa   :  { %3483 = vst [vmem:[#allocation7 + $0x68] sm:$0xff] %v3419_v55 }
 0x5ad   :  { %v4317_v11 = vpop.f32.mrb[144].mxu1 }
 0x5ae   :  { %v3224_v62 = vadd.f32 %v4317_v11, %v5983_v51  ;;  %v3215_v37 = vpop.f32.mrb[145].mxu1 }
 0x5af   :  { %v3216_v34 = vadd.f32 %v5983_v51, %v3215_v37  ;;  %v4318_v7 = vpop.f32.mrb[146].mxu1 }
 0x5b0   :  { %v3424_v15 = vadd.f32 %v3224_v62, %v5150_v60  ;;  %v3227_v58 = vadd.f32 %v4318_v7, %v5983_v51  ;;  %v3218_v49 = vpop.f32.mrb[147].mxu1 }
 0x5b1   :  { %v3422_v38 = vadd.f32 %v3216_v34, %v5155_v10  ;;  %v3219_v5 = vadd.f32 %v5983_v51, %v3218_v49  ;;  %v6303_v34 = vld [vmem:[#allocation31_spill] sm:$0xff]  ;;  %v6304_v49 = vld [vmem:[#allocation30_spill] sm:$0xff] }
 0x5b2   :  { %3488 = vst [vmem:[#allocation7 + $0x90] sm:$0xff] %v3424_v15  ;;  %v3425_v32 = vadd.f32 %v3227_v58, %v5163_v17 }
 0x5b3   :  { %3486 = vst [vmem:[#allocation7 + $0x80] sm:$0xff] %v3422_v38  ;;  %v3423_v29 = vadd.f32 %v3219_v5, %v6298_v33  ;;  %v6305_v5 = vld [vmem:[#allocation33_spill] sm:$0xff]  ;;  %v6306_v33 = vld [vmem:[#allocation32_spill] sm:$0xff] }
 0x5b4   :  { %3489 = vst [vmem:[#allocation7 + $0x98] sm:$0xff] %v3425_v32 }
 0x5b5   :  { %3487 = vst [vmem:[#allocation7 + $0x88] sm:$0xff] %v3423_v29 }
 0x5b7   :  { %v4321_v30 = vpop.f32.mrb[148].mxu1 }
 0x5b8   :  { %v3240_v4 = vadd.f32 %v4321_v30, %v5983_v51  ;;  %v3231_v45 = vpop.f32.mrb[149].mxu1 }
 0x5b9   :  { %v3232_v60 = vadd.f32 %v5983_v51, %v3231_v45  ;;  %v4322_v40 = vpop.f32.mrb[150].mxu1 }
 0x5ba   :  { %v3428_v0 = vadd.f32 %v3240_v4, %v5194_v19  ;;  %v3243_v10 = vadd.f32 %v4322_v40, %v5983_v51  ;;  %v3234_v42 = vpop.f32.mrb[151].mxu1 }
 0x5bb   :  { %v3426_v44 = vadd.f32 %v3232_v60, %v5201_v14  ;;  %v3235_v17 = vadd.f32 %v5983_v51, %v3234_v42 }
 0x5bc   :  { %3492 = vst [vmem:[#allocation7 + $0xb0] sm:$0xff] %v3428_v0  ;;  %v3429_v57 = vadd.f32 %v3243_v10, %v6299_v61 }
 0x5bd   :  { %3490 = vst [vmem:[#allocation7 + $0xa0] sm:$0xff] %v3426_v44  ;;  %v3427_v56 = vadd.f32 %v3235_v17, %v6300_v3  ;;  %v6307_v44 = vld [vmem:[#allocation34_spill] sm:$0xff] }
 0x5be   :  { %3493 = vst [vmem:[#allocation7 + $0xb8] sm:$0xff] %v3429_v57  ;;  %v6308_v57 = vld [vmem:[#allocation36_spill] sm:$0xff] }
 0x5bf   :  { %3491 = vst [vmem:[#allocation7 + $0xa8] sm:$0xff] %v3427_v56  ;;  %v6309_v56 = vld [vmem:[#allocation35_spill] sm:$0xff] }
 0x5c0   :  { %v4325_v21 = vpop.f32.mrb[152].mxu1 }
 0x5c1   :  { %v3256_v35 = vadd.f32 %v4325_v21, %v5983_v51  ;;  %v3247_v53 = vpop.f32.mrb[153].mxu1 }
 0x5c2   :  { %v3248_v19 = vadd.f32 %v5983_v51, %v3247_v53  ;;  %v4326_v27 = vpop.f32.mrb[154].mxu1 }
 0x5c3   :  { %v3432_v41 = vadd.f32 %v3256_v35, %v5233_v20  ;;  %v3259_v14 = vadd.f32 %v4326_v27, %v5983_v51  ;;  %v3250_v47 = vpop.f32.mrb[155].mxu1 }
 0x5c4   :  { %v3430_v6 = vadd.f32 %v3248_v19, %v6301_v26  ;;  %v3251_v43 = vadd.f32 %v5983_v51, %v3250_v47  ;;  %v6310_v26 = vld [vmem:[#allocation37_spill] sm:$0xff] }
 0x5c5   :  { %3496 = vst [vmem:[#allocation7 + $0xd0] sm:$0xff] %v3432_v41  ;;  %v3433_v48 = vadd.f32 %v3259_v14, %v5270_v31 }
 0x5c6   :  { %3494 = vst [vmem:[#allocation7 + $0xc0] sm:$0xff] %v3430_v6  ;;  %v3431_v22 = vadd.f32 %v3251_v43, %v6302_v9 }
 0x5c7   :  { %3497 = vst [vmem:[#allocation7 + $0xd8] sm:$0xff] %v3433_v48  ;;  %v6311_v48 = vld [vmem:[#allocation39_spill] sm:$0xff] }
 0x5c8   :  { %3495 = vst [vmem:[#allocation7 + $0xc8] sm:$0xff] %v3431_v22  ;;  %v6312_v22 = vld [vmem:[#allocation38_spill] sm:$0xff] }
 0x5ca   :  { %v4329_v55 = vpop.f32.mrb[156].mxu1 }
 0x5cb   :  { %v3272_v11 = vadd.f32 %v4329_v55, %v5983_v51  ;;  %v3263_v62 = vpop.f32.mrb[157].mxu1 }
 0x5cc   :  { %v3264_v20 = vadd.f32 %v5983_v51, %v3263_v62  ;;  %v4330_v37 = vpop.f32.mrb[158].mxu1 }
 0x5cd   :  { %v3436_v7 = vadd.f32 %v3272_v11, %v6303_v34  ;;  %v3275_v15 = vadd.f32 %v4330_v37, %v5983_v51  ;;  %v3266_v58 = vpop.f32.mrb[159].mxu1 }
 0x5ce   :  { %v3434_v38 = vadd.f32 %v3264_v20, %v6304_v49  ;;  %v3267_v31 = vadd.f32 %v5983_v51, %v3266_v58  ;;  %v6313_v58 = vld [vmem:[#allocation40_spill] sm:$0xff] }
 0x5cf   :  { %3500 = vst [vmem:[#allocation7 + $0xf0] sm:$0xff] %v3436_v7  ;;  %v3437_v32 = vadd.f32 %v3275_v15, %v6305_v5  ;;  %v6314_v5 = vld [vmem:[#allocation41_spill] sm:$0xff] }
 0x5d0   :  { %3498 = vst [vmem:[#allocation7 + $0xe0] sm:$0xff] %v3434_v38  ;;  %v3435_v29 = vadd.f32 %v3267_v31, %v6306_v33 }
 0x5d1   :  { %3501 = vst [vmem:[#allocation7 + $0xf8] sm:$0xff] %v3437_v32 }
 0x5d2   :  { %3499 = vst [vmem:[#allocation7 + $0xe8] sm:$0xff] %v3435_v29 }
 0x5d4   :  { %v4333_v30 = vpop.f32.mrb[160].mxu1 }
 0x5d5   :  { %v3288_v4 = vadd.f32 %v4333_v30, %v5983_v51  ;;  %v3279_v45 = vpop.f32.mrb[161].mxu1 }
 0x5d6   :  { %v3280_v60 = vadd.f32 %v5983_v51, %v3279_v45  ;;  %v4334_v40 = vpop.f32.mrb[162].mxu1 }
 0x5d7   :  { %v3440_v0 = vadd.f32 %v3288_v4, %v5335_v28  ;;  %v3291_v10 = vadd.f32 %v4334_v40, %v5983_v51  ;;  %v3282_v42 = vpop.f32.mrb[163].mxu1 }
 0x5d8   :  { %v3438_v17 = vadd.f32 %v3280_v60, %v6307_v44  ;;  %v3283_v61 = vadd.f32 %v5983_v51, %v3282_v42  ;;  %v6315_v42 = vld [vmem:[#allocation42_spill] sm:$0xff] }
 0x5d9   :  { %3504 = vst [vmem:[#allocation7 + $0x110] sm:$0xff] %v3440_v0  ;;  %v3441_v3 = vadd.f32 %v3291_v10, %v6308_v57 }
 0x5da   :  { %3502 = vst [vmem:[#allocation7 + $0x100] sm:$0xff] %v3438_v17  ;;  %v3439_v21 = vadd.f32 %v3283_v61, %v6309_v56 }
 0x5db   :  { %3505 = vst [vmem:[#allocation7 + $0x118] sm:$0xff] %v3441_v3 }
 0x5dc   :  { %3503 = vst [vmem:[#allocation7 + $0x108] sm:$0xff] %v3439_v21 }
 0x5de   :  { %v4337_v35 = vpop.f32.mrb[164].mxu1 }
 0x5df   :  { %v3304_v53 = vadd.f32 %v4337_v35, %v5983_v51  ;;  %v3295_v19 = vpop.f32.mrb[165].mxu1 }
 0x5e0   :  { %v3296_v28 = vadd.f32 %v5983_v51, %v3295_v19  ;;  %v4338_v27 = vpop.f32.mrb[166].mxu1 }
 0x5e1   :  { %v3444_v41 = vadd.f32 %v3304_v53, %v5382_v2  ;;  %v3307_v14 = vadd.f32 %v4338_v27, %v5983_v51  ;;  %v3298_v47 = vpop.f32.mrb[167].mxu1  ;;  %v6316_v53 = vld [vmem:[#allocation43_spill] sm:$0xff] }
 0x5e2   :  { %v3442_v6 = vadd.f32 %v3296_v28, %v6310_v26  ;;  %v3299_v43 = vadd.f32 %v5983_v51, %v3298_v47  ;;  %v6317_v28 = vld [vmem:[#allocation44_spill] sm:$0xff] }
 0x5e3   :  { %3508 = vst [vmem:[#allocation7 + $0x130] sm:$0xff] %v3444_v41  ;;  %v3445_v9 = vadd.f32 %v3307_v14, %v6311_v48  ;;  %v6318_v48 = vld [vmem:[#allocation45_spill] sm:$0xff] }
 0x5e4   :  { %3506 = vst [vmem:[#allocation7 + $0x120] sm:$0xff] %v3442_v6  ;;  %v3443_v55 = vadd.f32 %v3299_v43, %v6312_v22 }
 0x5e5   :  { %3509 = vst [vmem:[#allocation7 + $0x138] sm:$0xff] %v3445_v9 }
 0x5e6   :  { %3507 = vst [vmem:[#allocation7 + $0x128] sm:$0xff] %v3443_v55 }
 0x5e7   :  { %v4341_v11 = vpop.f32.mrb[168].mxu1 }
 0x5e8   :  { %v3320_v62 = vadd.f32 %v4341_v11, %v5983_v51  ;;  %v3311_v20 = vpop.f32.mrb[169].mxu1  ;;  %v6319_v11 = vld [vmem:[#allocation46_spill] sm:$0xff] }
 0x5e9   :  { %v3312_v2 = vadd.f32 %v5983_v51, %v3311_v20  ;;  %v4342_v37 = vpop.f32.mrb[170].mxu1 }
 0x5ea   :  { %v3448_v34 = vadd.f32 %v3320_v62, %v5459_v36  ;;  %v3323_v7 = vadd.f32 %v4342_v37, %v5983_v51  ;;  %v3314_v15 = vpop.f32.mrb[171].mxu1 }
 0x5eb   :  { %v3446_v49 = vadd.f32 %v3312_v2, %v6313_v58  ;;  %v3315_v38 = vadd.f32 %v5983_v51, %v3314_v15 }
 0x5ec   :  { %3512 = vst [vmem:[#allocation7 + $0x150] sm:$0xff] %v3448_v34  ;;  %v3449_v31 = vadd.f32 %v3323_v7, %v5462_v13 }
 0x5ed   :  { %3510 = vst [vmem:[#allocation7 + $0x140] sm:$0xff] %v3446_v49  ;;  %v3447_v32 = vadd.f32 %v3315_v38, %v6314_v5 }
 0x5ee   :  { %3513 = vst [vmem:[#allocation7 + $0x158] sm:$0xff] %v3449_v31 }
 0x5ef   :  { %3511 = vst [vmem:[#allocation7 + $0x148] sm:$0xff] %v3447_v32 }
 0x5f0   :  { %v4345_v33 = vpop.f32.mrb[172].mxu1 }
 0x5f1   :  { %v3336_v29 = vadd.f32 %v4345_v33, %v5983_v51  ;;  %v3327_v30 = vpop.f32.mrb[173].mxu1 }
 0x5f2   :  { %v3328_v36 = vadd.f32 %v5983_v51, %v3327_v30  ;;  %v4346_v4 = vpop.f32.mrb[174].mxu1 }
 0x5f3   :  { %v3452_v45 = vadd.f32 %v3336_v29, %v5498_v8  ;;  %v3339_v60 = vadd.f32 %v4346_v4, %v5983_v51  ;;  %v3330_v40 = vpop.f32.mrb[175].mxu1 }
 0x5f4   :  { %v3450_v0 = vadd.f32 %v3328_v36, %v5506_v24  ;;  %v3331_v13 = vadd.f32 %v5983_v51, %v3330_v40 }
 0x5f5   :  { %3516 = vst [vmem:[#allocation7 + $0x170] sm:$0xff] %v3452_v45  ;;  %v3453_v10 = vadd.f32 %v3339_v60, %v5520_v1 }
 0x5f6   :  { %3514 = vst [vmem:[#allocation7 + $0x160] sm:$0xff] %v3450_v0  ;;  %v3451_v44 = vadd.f32 %v3331_v13, %v6315_v42 }
 0x5f7   :  { %3517 = vst [vmem:[#allocation7 + $0x178] sm:$0xff] %v3453_v10 }
 0x5f8   :  { %3515 = vst [vmem:[#allocation7 + $0x168] sm:$0xff] %v3451_v44 }
 0x5fb   :  { %v4349_v17 = vpop.f32.mrb[176].mxu1 }
 0x5fc   :  { %v3352_v61 = vadd.f32 %v4349_v17, %v5983_v51  ;;  %v3343_v57 = vpop.f32.mrb[177].mxu1 }
 0x5fd   :  { %v3344_v8 = vadd.f32 %v5983_v51, %v3343_v57  ;;  %v4350_v3 = vpop.f32.mrb[178].mxu1 }
 0x5fe   :  { %v3456_v56 = vadd.f32 %v3352_v61, %v5558_v25  ;;  %v3355_v24 = vadd.f32 %v4350_v3, %v5983_v51  ;;  %v3346_v21 = vpop.f32.mrb[179].mxu1 }
 0x5ff   :  { %v3454_v35 = vadd.f32 %v3344_v8, %v5567_v50  ;;  %v3347_v1 = vadd.f32 %v5983_v51, %v3346_v21 }
 0x600   :  { %3520 = vst [vmem:[#allocation7 + $0x190] sm:$0xff] %v3456_v56  ;;  %v3457_v19 = vadd.f32 %v3355_v24, %v6316_v53 }
 0x601   :  { %3518 = vst [vmem:[#allocation7 + $0x180] sm:$0xff] %v3454_v35  ;;  %v3455_v27 = vadd.f32 %v3347_v1, %v6317_v28 }
 0x602   :  { %3521 = vst [vmem:[#allocation7 + $0x198] sm:$0xff] %v3457_v19 }
 0x603   :  { %3519 = vst [vmem:[#allocation7 + $0x188] sm:$0xff] %v3455_v27  ;;  %v4353_v41 = vpop.f32.mrb[180].mxu1 }
 0x604   :  { %v3368_v14 = vadd.f32 %v4353_v41, %v5983_v51  ;;  %v3359_v47 = vpop.f32.mrb[181].mxu1 }
 0x605   :  { %v3360_v25 = vadd.f32 %v5983_v51, %v3359_v47  ;;  %v4354_v26 = vpop.f32.mrb[182].mxu1 }
 0x606   :  { %v3460_v6 = vadd.f32 %v3368_v14, %v5614_v18  ;;  %v3371_v50 = vadd.f32 %v4354_v26, %v5983_v51  ;;  %v3362_v43 = vpop.f32.mrb[183].mxu1 }
 0x607   :  { %v3458_v9 = vadd.f32 %v3360_v25, %v6318_v48  ;;  %v3363_v22 = vadd.f32 %v5983_v51, %v3362_v43 }
 0x608   :  { %3524 = vst [vmem:[#allocation7 + $0x1b0] sm:$0xff] %v3460_v6  ;;  %v3461_v55 = vadd.f32 %v3371_v50, %v5627_v59 }
 0x609   :  { %3522 = vst [vmem:[#allocation7 + $0x1a0] sm:$0xff] %v3458_v9  ;;  %v3459_v62 = vadd.f32 %v3363_v22, %v6319_v11 }
 0x60a   :  { %3525 = vst [vmem:[#allocation7 + $0x1b8] sm:$0xff] %v3461_v55 }
 0x60b   :  { %3523 = vst [vmem:[#allocation7 + $0x1a8] sm:$0xff] %v3459_v62  ;;  %v4357_v20 = vpop.f32.mrb[184].mxu1 }
 0x60c   :  { %v3384_v2 = vadd.f32 %v4357_v20, %v5983_v51  ;;  %v3375_v37 = vpop.f32.mrb[185].mxu1 }
 0x60d   :  { %v3376_v18 = vadd.f32 %v5983_v51, %v3375_v37  ;;  %v4358_v34 = vpop.f32.mrb[186].mxu1 }
 0x60e   :  { %v3464_v7 = vadd.f32 %v3384_v2, %v5685_v23  ;;  %v3387_v15 = vadd.f32 %v4358_v34, %v5983_v51  ;;  %v3378_v58 = vpop.f32.mrb[187].mxu1 }
 0x60f   :  { %v3462_v49 = vadd.f32 %v3376_v18, %v5669_v54  ;;  %v3379_v59 = vadd.f32 %v5983_v51, %v3378_v58 }
 0x610   :  { %3528 = vst [vmem:[#allocation7 + $0x1d0] sm:$0xff] %v3464_v7  ;;  %v3465_v38 = vadd.f32 %v3387_v15, %v5672_v39 }
 0x611   :  { %3526 = vst [vmem:[#allocation7 + $0x1c0] sm:$0xff] %v3462_v49  ;;  %v3463_v31 = vadd.f32 %v3379_v59, %v5693_v46 }
 0x612   :  { %3529 = vst [vmem:[#allocation7 + $0x1d8] sm:$0xff] %v3465_v38 }
 0x613   :  { %3527 = vst [vmem:[#allocation7 + $0x1c8] sm:$0xff] %v3463_v31  ;;  %v4361_v5 = vpop.f32.mrb[188].mxu1 }
 0x614   :  { %v3400_v32 = vadd.f32 %v4361_v5, %v5983_v51  ;;  %v3391_v33 = vpop.f32.mrb[189].mxu1 }
 0x615   :  { %v3392_v23 = vadd.f32 %v5983_v51, %v3391_v33  ;;  %v4362_v29 = vpop.f32.mrb[190].mxu1 }
 0x616   :  { %v3468_v30 = vadd.f32 %v3400_v32, %v5729_v12  ;;  %v3403_v54 = vadd.f32 %v4362_v29, %v5983_v51  ;;  %v3394_v36 = vpop.f32.mrb[191].mxu1 }
 0x617   :  { %v3466_v39 = vadd.f32 %v3392_v23, %v5732_v52  ;;  %v3395_v46 = vadd.f32 %v5983_v51, %v3394_v36 }
 0x618   :  { %3532 = vst [vmem:[#allocation7 + $0x1f0] sm:$0xff] %v3468_v30  ;;  %v3469_v4 = vadd.f32 %v3403_v54, %v5735_v63 }
 0x619   :  { %3530 = vst [vmem:[#allocation7 + $0x1e0] sm:$0xff] %v3466_v39  ;;  %v3467_v45 = vadd.f32 %v3395_v46, %v5738_v16 }
 0x61a   :  { %3533 = vst [vmem:[#allocation7 + $0x1f8] sm:$0xff] %v3469_v4 }
 0x61b   :  { %3531 = vst [vmem:[#allocation7 + $0x1e8] sm:$0xff] %v3467_v45 }
 0x61c   :  { %4698 = shalt.err (!%p4695_p6)
}
 0x61d   :  { %s4699_s27 = scalar_lea.hbm %s6128_s3, 8192 }
 0x61e   :  { %p4700_p7 = scmp.ne.s32.totalorder %s6128_s3, %s4699_s27  ;;  %p4703_p8 = scmp.lt.u32.totalorder %s4699_s27, %s6128_s3 }
 0x620   :  { %p4705_p9 = pnand %p4703_p8, %p4700_p7 }
 0x622   :  { %4708 = shalt.err (!%p4705_p9)
}
 0x623   :  { %s4720_s5 = smov 128   ;;  %s4721_s6 = smov 8  }
 0x624   :  { %3545 = dma.vmem_to_hbm [thread:$0]  %s3540_s23, 8192, %s6128_s3, [#allocation4], %s4720_s5, %s4720_s5, %s4721_s6  }
 0x625   :  { %4713 = dma.done.wait [#allocation4], 8192  }
 0x626   :  { %4714 = vsyncadd [#allocation4], 4294959104 }
 0x627   :  { %3549 = vsyncpa [#allocation3], 1 }
 0x628   :  { %3550 = vsyncpa [#allocation6], 1 }
 0x629   :  { %3551 = vsyncpa [#allocation4], 1 }

</bundles_post_ra>
